<compile_context>
chip_gen: v5e
topology: v5e:2x2
jax: 0.10.0
libtpu: 0.0.40
codegen_flags: <defaults>
</compile_context>

<pallas_src>
import functools

import jax
import jax.numpy as jnp
import numpy as np
from jax import lax
from jax.experimental import pallas as pl
from jax.experimental.pallas import tpu as pltpu

EPS = 1e-5
EXPANSION = 4
_LANE = 128
_SUBLANE = 8


def _round_up(x, m):
    return (x + m - 1) // m * m


def _vmem_budget_bytes():
    """~75% of this generation's physical VMEM (64 MiB v7x, 128 MiB v5e/v6e)."""
    try:
        cap = pltpu.get_tpu_info().vmem_capacity_bytes
    except Exception:
        cap = 64 << 20                      # conservative (v7x-sized) default
    return int(cap) * 3 // 4


def _choose_m_tiling(m):
    """Pad M to a multiple of 512; pick tm so there are always >= 2 M tiles
    (both v7x TensorCores get work) and tm is as large as possible."""
    mp = _round_up(max(m, 1), 512)
    tm = 512 if mp // 512 >= 2 else 256
    return mp, tm


def _largest_divisor_tile(n, candidates=(512, 384, 256, 128)):
    for c in candidates:
        if n % c == 0:
            return c
    return 128


# ---------------------------------------------------------------------------
# Pallas kernels
# ---------------------------------------------------------------------------
def _matmul_stats_resident_kernel(x_ref, w_ref, y_ref, stats_ref):
    """One M tile: y = x @ W with the full (Kp, Cp) weight resident in VMEM.
    Emits per-M-tile per-channel (sum, sumsq) rows from the f32 accumulator."""
    y = jnp.dot(x_ref[...], w_ref[...], preferred_element_type=jnp.float32)
    y_ref[...] = y.astype(y_ref.dtype)
    stats_ref[...] = jnp.zeros_like(stats_ref)
    stats_ref[0:1, :] = jnp.sum(y, axis=0, keepdims=True)
    stats_ref[1:2, :] = jnp.sum(y * y, axis=0, keepdims=True)


def _matmul_stats_tiled_kernel(x_ref, w_ref, y_ref, stats_ref, acc_ref):
    """Fallback for huge K: K-tiled accumulation in an f32 scratch accumulator."""
    k = pl.program_id(1)

    @pl.when(k == 0)
    def _init():
        acc_ref[...] = jnp.zeros_like(acc_ref)

    acc_ref[...] += jnp.dot(x_ref[...], w_ref[...],
                            preferred_element_type=jnp.float32)

    @pl.when(k == pl.num_programs(1) - 1)
    def _finalize():
        y = acc_ref[...]
        y_ref[...] = y.astype(y_ref.dtype)
        stats_ref[...] = jnp.zeros_like(stats_ref)
        stats_ref[0:1, :] = jnp.sum(y, axis=0, keepdims=True)
        stats_ref[1:2, :] = jnp.sum(y * y, axis=0, keepdims=True)


def _bn_act_kernel(y_ref, sc_ref, sh_ref, out_ref, *, relu, valid_rows, tm):
    out = y_ref[...].astype(jnp.float32) * sc_ref[...] + sh_ref[...]
    if relu:
        out = jnp.maximum(out, 0.0)
    row = pl.program_id(0) * tm + lax.broadcasted_iota(jnp.int32, out.shape, 0)
    out = jnp.where(row < valid_rows, out, 0.0)   # padded rows -> exact zeros
    out_ref[...] = out.astype(out_ref.dtype)


def _bn_add_relu_kernel(y_ref, sc_ref, sh_ref, ry_ref, rsc_ref, rsh_ref, out_ref,
                        *, valid_rows, tm):
    main = y_ref[...].astype(jnp.float32) * sc_ref[...] + sh_ref[...]
    res = ry_ref[...].astype(jnp.float32) * rsc_ref[...] + rsh_ref[...]
    out = jnp.maximum(main + res, 0.0)
    row = pl.program_id(0) * tm + lax.broadcasted_iota(jnp.int32, out.shape, 0)
    out_ref[...] = jnp.where(row < valid_rows, out, 0.0).astype(out_ref.dtype)


# ---------------------------------------------------------------------------
# pallas_call wrappers
# ---------------------------------------------------------------------------
def _matmul_stats(x_mat, w_mat):
    """y = x @ w with (rows, K, Cout) zero-padded; also per-M-tile (sum, sumsq)
    rows.  Weight is K-resident unless it would bust the VMEM budget."""
    m, k = x_mat.shape
    kw, cout = w_mat.shape
    assert k == kw
    mp, tm = _choose_m_tiling(m)
    kp = _round_up(k, _LANE)
    cp = _round_up(cout, _LANE)
    mt = mp // tm

    x_p = x_mat.astype(jnp.bfloat16)
    if (mp, kp) != (m, k):
        x_p = jnp.pad(x_p, ((0, mp - m), (0, kp - k)))
    w_p = w_mat.astype(jnp.bfloat16)
    if (kp, cp) != (k, cout):
        w_p = jnp.pad(w_p, ((0, kp - k), (0, cp - cout)))

    budget = _vmem_budget_bytes()
    flops = 2 * mp * kp * cp
    out_shape = (jax.ShapeDtypeStruct((mp, cp), jnp.bfloat16),
                 jax.ShapeDtypeStruct((mt * _SUBLANE, cp), jnp.float32))

    # Resident-weight path VMEM estimate (double-buffered blocks + slack).
    resident_bytes = (2 * tm * kp * 2            # x blocks (bf16)
                      + 2 * kp * cp * 2          # weight (constant block)
                      + 2 * (tm * cp * 2 + _SUBLANE * cp * 4)   # outputs
                      + (4 << 20))

    if resident_bytes <= budget:
        bytes_accessed = (mp * kp * 2 + kp * cp * 2 + mp * cp * 2
                          + mt * _SUBLANE * cp * 4)
        y, stats = pl.pallas_call(
            _matmul_stats_resident_kernel,
            out_shape=out_shape,
            grid=(mt,),
            in_specs=[pl.BlockSpec((tm, kp), lambda i: (i, 0)),
                      pl.BlockSpec((kp, cp), lambda i: (0, 0))],   # resident
            out_specs=(pl.BlockSpec((tm, cp), lambda i: (i, 0)),
                       pl.BlockSpec((_SUBLANE, cp), lambda i: (i, 0))),
            compiler_params=pltpu.CompilerParams(
                dimension_semantics=("parallel",),
                vmem_limit_bytes=int(min(max(resident_bytes, 16 << 20), budget))),
            cost_estimate=pl.CostEstimate(flops=flops, transcendentals=0,
                                          bytes_accessed=bytes_accessed),
        )(x_p, w_p)
    else:
        # Fallback for huge K: K-tiled accumulator loop.
        tk = _largest_divisor_tile(kp)
        kt = kp // tk
        tiled_bytes = (2 * (tm * tk + tk * cp) * 2
                       + 2 * (tm * cp * 2 + _SUBLANE * cp * 4)
                       + tm * cp * 4 + (4 << 20))
        bytes_accessed = (mp * kp * 2 + mt * kp * cp * 2 + mp * cp * 2
                          + mt * _SUBLANE * cp * 4)
        y, stats = pl.pallas_call(
            _matmul_stats_tiled_kernel,
            out_shape=out_shape,
            grid=(mt, kt),
            in_specs=[pl.BlockSpec((tm, tk), lambda i, kk: (i, kk)),
                      pl.BlockSpec((tk, cp), lambda i, kk: (kk, 0))],
            out_specs=(pl.BlockSpec((tm, cp), lambda i, kk: (i, 0)),
                       pl.BlockSpec((_SUBLANE, cp), lambda i, kk: (i, 0))),
            scratch_shapes=[pltpu.VMEM((tm, cp), jnp.float32)],
            compiler_params=pltpu.CompilerParams(
                dimension_semantics=("parallel", "arbitrary"),
                vmem_limit_bytes=int(min(max(tiled_bytes, 16 << 20), budget))),
            cost_estimate=pl.CostEstimate(flops=flops, transcendentals=0,
                                          bytes_accessed=bytes_accessed),
        )(x_p, w_p)
    return y, stats, (mp, cp, tm)


def _bn_scale_shift(stats, gamma, beta, m_valid, cp):
    """Global (biased) batch stats from per-tile partials -> affine scale/shift."""
    mt = stats.shape[0] // _SUBLANE
    st = stats.reshape(mt, _SUBLANE, cp)
    total = jnp.sum(st[:, 0, :], axis=0)
    total_sq = jnp.sum(st[:, 1, :], axis=0)
    mean = total / m_valid
    var = jnp.maximum(total_sq / m_valid - mean * mean, 0.0)  # biased (PyTorch fwd)
    g = jnp.pad(gamma.astype(jnp.float32), (0, cp - gamma.shape[0]))
    b = jnp.pad(beta.astype(jnp.float32), (0, cp - beta.shape[0]))
    scale = g * lax.rsqrt(var + EPS)
    shift = b - mean * scale
    return scale.reshape(1, cp), shift.reshape(1, cp)


def _weight_matrix(w_oihw):
    o, i, kh, kw = w_oihw.shape
    return jnp.transpose(w_oihw, (2, 3, 1, 0)).reshape(kh * kw * i, o)


def _conv_bn(x_mat, w_oihw, gamma, beta, m_valid):
    """x_mat: (rows, kh*kw*x_ch) matrix whose per-tap channel count x_ch may be a
    zero-padded superset of the weight's input channels (padding is inert).
    Padded (all-zero) rows are allowed; BN stats divide by m_valid."""
    o, i, kh, kw = w_oihw.shape
    k_cols = x_mat.shape[1]
    assert k_cols % (kh * kw) == 0
    x_ch = k_cols // (kh * kw)
    if x_ch != i:
        assert x_ch > i
        w_oihw = jnp.pad(w_oihw, ((0, 0), (0, x_ch - i), (0, 0), (0, 0)))
    wmat = _weight_matrix(w_oihw)
    y, stats, (mp, cp, tm) = _matmul_stats(x_mat, wmat)
    scale, shift = _bn_scale_shift(stats, gamma, beta, m_valid, cp)
    return y, scale, shift, (mp, cp, tm)


def _bn_epilogue(y, scale, shift, *, relu, out_dtype, tm, valid_rows, residual=None):
    """Pass 2: out = [relu]( y*scale + shift [+ ry*rscale + rshift] ), tiled over M;
    padded tail rows are written as exact zeros."""
    mp, cp = y.shape
    mt = mp // tm
    row_spec = pl.BlockSpec((tm, cp), lambda i: (i, 0))
    vec_spec = pl.BlockSpec((1, cp), lambda i: (0, 0))
    in_bytes = y.dtype.itemsize
    if residual is None:
        kernel = functools.partial(_bn_act_kernel, relu=relu,
                                   valid_rows=valid_rows, tm=tm)
        args = (y, scale, shift)
        in_specs = [row_spec, vec_spec, vec_spec]
    else:
        ry, rsc, rsh = residual
        in_bytes += ry.dtype.itemsize
        kernel = functools.partial(_bn_add_relu_kernel,
                                   valid_rows=valid_rows, tm=tm)
        args = (y, scale, shift, ry, rsc, rsh)
        in_specs = [row_spec, vec_spec, vec_spec, row_spec, vec_spec, vec_spec]

    budget = _vmem_budget_bytes()
    vmem_est = (2 * tm * cp * (in_bytes + jnp.dtype(out_dtype).itemsize)
                + (2 << 20))
    return pl.pallas_call(
        kernel,
        out_shape=jax.ShapeDtypeStruct((mp, cp), out_dtype),
        grid=(mt,),
        in_specs=in_specs,
        out_specs=row_spec,
        compiler_params=pltpu.CompilerParams(
            dimension_semantics=("parallel",),
            vmem_limit_bytes=int(min(max(vmem_est, 16 << 20), budget))),
    )(*args)


def _im2col(x_nhwc, ksize, stride, pad):
    n, h, w, c = x_nhwc.shape
    xp = jnp.pad(x_nhwc, ((0, 0), (pad, pad), (pad, pad), (0, 0)))
    hout = (h + 2 * pad - ksize) // stride + 1
    wout = (w + 2 * pad - ksize) // stride + 1
    cols = []
    for i in range(ksize):
        for j in range(ksize):
            cols.append(xp[:,
                           i:i + (hout - 1) * stride + 1:stride,
                           j:j + (wout - 1) * stride + 1:stride, :])
    patches = jnp.concatenate(cols, axis=-1)          # (N, Ho, Wo, k*k*C)
    return patches.reshape(n * hout * wout, ksize * ksize * c), (hout, wout)


# ---------------------------------------------------------------------------
# Bottleneck forward
# ---------------------------------------------------------------------------
@functools.partial(jax.jit, static_argnames=("stride",))
def bottleneck_forward(x_nchw, params, stride):
    xf = jnp.transpose(x_nchw, (0, 2, 3, 1)).astype(jnp.float32)   # NCHW -> NHWC
    n, h, w, cin = xf.shape
    planes = params["w1"].shape[0]
    out_planes = EXPANSION * planes

    # conv1 (1x1) + BN1 + ReLU  -- a1 kept channel-padded (cp1), tail rows zeroed.
    m1 = n * h * w
    y1, sc1, sh1, (mp1, cp1, tm1) = _conv_bn(
        xf.reshape(m1, cin), params["w1"], params["g1"], params["b1"], m1)
    a1 = _bn_epilogue(y1, sc1, sh1, relu=True, out_dtype=jnp.bfloat16,
                      tm=tm1, valid_rows=m1)
    a1_nhwc = a1[:m1].reshape(n, h, w, cp1)   # contiguous row slice only

    # conv2 (3x3, stride) + BN2 + ReLU.  Explicit im2col over the channel-padded
    # activation; conv2's input channels are zero-padded to match (inert).
    # TODO(synk): implicit im2col (halo'd NHWC tiles + 9 shifted MXU dots) to
    #             remove the 9x HBM expansion of the patch matrix.
    patches2, (ho, wo) = _im2col(a1_nhwc, 3, stride, 1)
    m2 = n * ho * wo
    y2, sc2, sh2, (mp2, cp2, tm2) = _conv_bn(
        patches2, params["w2"], params["g2"], params["b2"], m2)
    a2 = _bn_epilogue(y2, sc2, sh2, relu=True, out_dtype=jnp.bfloat16,
                      tm=tm2, valid_rows=m2)

    # conv3 (1x1) + BN3 -- a2 fed directly in its padded (mp2, cp2) layout;
    # padded rows/channels of a2 are exact zeros, so no slice + re-pad needed.
    y3, sc3, sh3, (mp3, cp3, tm3) = _conv_bn(
        a2, params["w3"], params["g3"], params["b3"], m2)

    # shortcut
    if stride != 1 or cin != out_planes:
        xs = xf[:, ::stride, ::stride, :].reshape(m2, cin)   # 1x1 conv w/ stride
        ys, scs, shs, (msp, cps, tms) = _conv_bn(
            xs, params["ws"], params["gs"], params["bs"], m2)
        assert (msp, cps, tms) == (mp3, cp3, tm3)
        residual = (ys, scs, shs)
        # TODO(synk): fuse this matmul into the conv3 pass-1 kernel (shared M tiles).
    else:
        res = jnp.pad(xf.reshape(m2, cin).astype(jnp.bfloat16),
                      ((0, mp3 - m2), (0, cp3 - cin)))
        residual = (res,
                    jnp.ones((1, cp3), jnp.float32),
                    jnp.zeros((1, cp3), jnp.float32))

    out = _bn_epilogue(y3, sc3, sh3, relu=True, out_dtype=jnp.float32, tm=tm3,
                       valid_rows=m2, residual=residual)
    out = out[:m2, :out_planes].reshape(n, ho, wo, out_planes)
    return jnp.transpose(out, (0, 3, 1, 2))                         # NHWC -> NCHW


# ---------------------------------------------------------------------------
# Pure-JAX reference
# ---------------------------------------------------------------------------
def _ref_bn(y, gamma, beta):
    mean = y.mean(axis=(0, 2, 3), keepdims=True)
    var = jnp.square(y - mean).mean(axis=(0, 2, 3), keepdims=True)
    return ((y - mean) / jnp.sqrt(var + EPS)) * gamma.reshape(1, -1, 1, 1) \
        + beta.reshape(1, -1, 1, 1)


def _ref_conv(x, w, stride, pad):
    return lax.conv_general_dilated(
        x, w, (stride, stride), [(pad, pad), (pad, pad)],
        dimension_numbers=("NCHW", "OIHW", "NCHW"),
        precision=lax.Precision.HIGHEST)


def bottleneck_ref(x, p, stride):
    out = jax.nn.relu(_ref_bn(_ref_conv(x, p["w1"], 1, 0), p["g1"], p["b1"]))
    out = jax.nn.relu(_ref_bn(_ref_conv(out, p["w2"], stride, 1), p["g2"], p["b2"]))
    out = _ref_bn(_ref_conv(out, p["w3"], 1, 0), p["g3"], p["b3"])
    in_planes, out_planes = x.shape[1], p["w3"].shape[0]
    if stride != 1 or in_planes != out_planes:
        sc = _ref_bn(_ref_conv(x, p["ws"], stride, 0), p["gs"], p["bs"])
    else:
        sc = x
    return jax.nn.relu(out + sc)


def _make_params(key, in_planes, planes):
    out_planes = EXPANSION * planes
    ks = jax.random.split(key, 12)
    conv = lambda k, o, i, s: 0.1 * jax.random.normal(k, (o, i, s, s), jnp.float32)
    gam = lambda k, c: 1.0 + 0.1 * jax.random.normal(k, (c,), jnp.float32)
    bet = lambda k, c: 0.1 * jax.random.normal(k, (c,), jnp.float32)
    return {
        "w1": conv(ks[0], planes, in_planes, 1),
        "g1": gam(ks[1], planes), "b1": bet(ks[2], planes),
        "w2": conv(ks[3], planes, planes, 3),
        "g2": gam(ks[4], planes), "b2": bet(ks[5], planes),
        "w3": conv(ks[6], out_planes, planes, 1),
        "g3": gam(ks[7], out_planes), "b3": bet(ks[8], out_planes),
        "ws": conv(ks[9], out_planes, in_planes, 1),
        "gs": gam(ks[10], out_planes), "bs": bet(ks[11], out_planes),
    }


if __name__ == "__main__":
    key = jax.random.PRNGKey(0)
    k_a, k_b, k_pa, k_pb = jax.random.split(key, 4)

    # Config A: projection shortcut (conv1x1 + BN), stride 2.
    in_planes, planes, stride = 4, 8, 2
    n, hw = 2, 16
    x_a = jax.random.normal(k_a, (n, in_planes, hw, hw), jnp.float32)
    p_a = _make_params(k_pa, in_planes, planes)
    out_a = jax.block_until_ready(bottleneck_forward(x_a, p_a, stride=stride))
    ref_a = jax.block_until_ready(bottleneck_ref(x_a, p_a, stride))
    assert out_a.shape == (n, EXPANSION * planes, hw // stride, hw // stride)
    np.testing.assert_allclose(np.asarray(out_a), np.asarray(ref_a),
                               atol=5e-2, rtol=5e-2)

    # Config B: identity shortcut (stride 1, in_planes == 4*planes).
    in_planes_b, planes_b, stride_b, hw_b = 32, 8, 1, 8
    x_b = jax.random.normal(k_b, (n, in_planes_b, hw_b, hw_b), jnp.float32)
    p_b = _make_params(k_pb, in_planes_b, planes_b)
    out_b = jax.block_until_ready(bottleneck_forward(x_b, p_b, stride=stride_b))
    ref_b = jax.block_until_ready(bottleneck_ref(x_b, p_b, stride_b))
    assert out_b.shape == (n, EXPANSION * planes_b, hw_b, hw_b)
    np.testing.assert_allclose(np.asarray(out_b), np.asarray(ref_b),
                               atol=5e-2, rtol=5e-2)

    print("KERNEL_OK")
</pallas_src>

<mosaic_0001>
module attributes {stable_mosaic.version = 11 : i64} {
  func.func @_matmul_stats_resident_kernel(%arg0: i32, %arg1: memref<256x128xbf16, #tpu.memory_space<vmem>>, %arg2: memref<128x128xbf16, #tpu.memory_space<vmem>>, %arg3: memref<256x128xbf16, #tpu.memory_space<vmem>>, %arg4: memref<8x128xf32, #tpu.memory_space<vmem>>) attributes {dimension_semantics = [#tpu.dimension_semantics<parallel>], iteration_bounds = array<i64: 2>, scalar_prefetch = 0 : i64, scratch_operands = 0 : i64, tpu.core_type = #tpu.core_type<tc>, window_params = [{transform_indices = @transform_0, window_bounds = array<i64: 256, 128>}, {pipeline_mode = #tpu.pipeline_mode<synchronous>, transform_indices = @transform_1, window_bounds = array<i64: 128, 128>}, {transform_indices = @transform_2, window_bounds = array<i64: 256, 128>}, {transform_indices = @transform_3, window_bounds = array<i64: 8, 128>}]} {
    %c0 = arith.constant 0 : index
    %c0_0 = arith.constant 0 : index
    %0 = vector.load %arg1[%c0, %c0_0] : memref<256x128xbf16, #tpu.memory_space<vmem>>, vector<256x128xbf16>
    %c0_1 = arith.constant 0 : index
    %c0_2 = arith.constant 0 : index
    %1 = vector.load %arg2[%c0_1, %c0_2] : memref<128x128xbf16, #tpu.memory_space<vmem>>, vector<128x128xbf16>
    %cst = arith.constant dense<0.000000e+00> : vector<256x128xf32>
    %2 = tpu.matmul %0, %1, %cst {dimension_numbers = #tpu.dot_dimension_numbers<[1], [0], [0], [1], [0, 0, 1, 1], [], []>} : vector<256x128xbf16>, vector<128x128xbf16>, vector<256x128xf32> -> vector<256x128xf32>
    %3 = arith.truncf %2 : vector<256x128xf32> to vector<256x128xbf16>
    %c0_3 = arith.constant 0 : index
    %c0_4 = arith.constant 0 : index
    %4 = vector.load %arg3[%c0_3, %c0_4] : memref<256x128xbf16, #tpu.memory_space<vmem>>, vector<256x128xbf16>
    tpu.vector_store %arg3[%c0_3, %c0_4], %3 {strides = array<i32>} : memref<256x128xbf16, #tpu.memory_space<vmem>>, vector<256x128xbf16>,
    %cst_5 = arith.constant 0.000000e+00 : f32
    %5 = vector.broadcast %cst_5 : f32 to vector<8x128xf32>
    %c0_6 = arith.constant 0 : index
    %c0_7 = arith.constant 0 : index
    %6 = vector.load %arg4[%c0_6, %c0_7] : memref<8x128xf32, #tpu.memory_space<vmem>>, vector<8x128xf32>
    tpu.vector_store %arg4[%c0_6, %c0_7], %5 {strides = array<i32>} : memref<8x128xf32, #tpu.memory_space<vmem>>, vector<8x128xf32>,
    %cst_8 = arith.constant dense<0.000000e+00> : vector<128xf32>
    %7 = vector.multi_reduction <add>, %2, %cst_8 [0] : vector<256x128xf32> to vector<128xf32>
    %8 = vector.shape_cast %7 : vector<128xf32> to vector<1x128xf32>
    %c0_9 = arith.constant 0 : index
    %c0_10 = arith.constant 0 : index
    %9 = vector.load %arg4[%c0_9, %c0_10] : memref<8x128xf32, #tpu.memory_space<vmem>>, vector<1x128xf32>
    tpu.vector_store %arg4[%c0_9, %c0_10], %8 {strides = array<i32>} : memref<8x128xf32, #tpu.memory_space<vmem>>, vector<1x128xf32>,
    %10 = arith.mulf %2, %2 : vector<256x128xf32>
    %cst_11 = arith.constant dense<0.000000e+00> : vector<128xf32>
    %11 = vector.multi_reduction <add>, %10, %cst_11 [0] : vector<256x128xf32> to vector<128xf32>
    %12 = vector.shape_cast %11 : vector<128xf32> to vector<1x128xf32>
    %c1 = arith.constant 1 : index
    %c0_12 = arith.constant 0 : index
    %13 = vector.load %arg4[%c1, %c0_12] : memref<8x128xf32, #tpu.memory_space<vmem>>, vector<1x128xf32>
    tpu.vector_store %arg4[%c1, %c0_12], %12 {strides = array<i32>} : memref<8x128xf32, #tpu.memory_space<vmem>>, vector<1x128xf32>,
    return
  }
  func.func @transform_0(%arg0: i32) -> (i32, i32) {
    %c0_i32 = arith.constant 0 : i32
    %c0_i32_0 = arith.constant 0 : i32
    return %arg0, %c0_i32 : i32, i32
  }
  func.func @transform_1(%arg0: i32) -> (i32, i32) {
    %c0_i32 = arith.constant 0 : i32
    %c0_i32_0 = arith.constant 0 : i32
    %c0_i32_1 = arith.constant 0 : i32
    return %c0_i32, %c0_i32_0 : i32, i32
  }
  func.func @transform_2(%arg0: i32) -> (i32, i32) {
    %c0_i32 = arith.constant 0 : i32
    %c0_i32_0 = arith.constant 0 : i32
    return %arg0, %c0_i32 : i32, i32
  }
  func.func @transform_3(%arg0: i32) -> (i32, i32) {
    %c0_i32 = arith.constant 0 : i32
    %c0_i32_0 = arith.constant 0 : i32
    return %arg0, %c0_i32 : i32, i32
  }
}

module attributes {stable_mosaic.version = 11 : i64} {
  func.func @_bn_act_kernel(%arg0: i32, %arg1: memref<256x128xbf16, #tpu.memory_space<vmem>>, %arg2: memref<1x128xf32, #tpu.memory_space<vmem>>, %arg3: memref<1x128xf32, #tpu.memory_space<vmem>>, %arg4: memref<256x128xbf16, #tpu.memory_space<vmem>>) attributes {dimension_semantics = [#tpu.dimension_semantics<parallel>], iteration_bounds = array<i64: 2>, scalar_prefetch = 0 : i64, scratch_operands = 0 : i64, tpu.core_type = #tpu.core_type<tc>, window_params = [{transform_indices = @transform_0, window_bounds = array<i64: 256, 128>}, {pipeline_mode = #tpu.pipeline_mode<synchronous>, transform_indices = @transform_1, window_bounds = array<i64: 1, 128>}, {pipeline_mode = #tpu.pipeline_mode<synchronous>, transform_indices = @transform_2, window_bounds = array<i64: 1, 128>}, {transform_indices = @transform_3, window_bounds = array<i64: 256, 128>}]} {
    %c0 = arith.constant 0 : index
    %c0_0 = arith.constant 0 : index
    %0 = vector.load %arg1[%c0, %c0_0] : memref<256x128xbf16, #tpu.memory_space<vmem>>, vector<256x128xbf16>
    %1 = arith.extf %0 : vector<256x128xbf16> to vector<256x128xf32>
    %c0_1 = arith.constant 0 : index
    %c0_2 = arith.constant 0 : index
    %2 = vector.load %arg2[%c0_1, %c0_2] : memref<1x128xf32, #tpu.memory_space<vmem>>, vector<1x128xf32>
    %3 = vector.broadcast %2 : vector<1x128xf32> to vector<256x128xf32>
    %4 = arith.mulf %1, %3 : vector<256x128xf32>
    %c0_3 = arith.constant 0 : index
    %c0_4 = arith.constant 0 : index
    %5 = vector.load %arg3[%c0_3, %c0_4] : memref<1x128xf32, #tpu.memory_space<vmem>>, vector<1x128xf32>
    %6 = vector.broadcast %5 : vector<1x128xf32> to vector<256x128xf32>
    %7 = arith.addf %4, %6 : vector<256x128xf32>
    %cst = arith.constant 0.000000e+00 : f32
    %8 = vector.broadcast %cst : f32 to vector<256x128xf32>
    %9 = arith.maximumf %7, %8 : vector<256x128xf32>
    %c256_i32 = arith.constant 256 : i32
    %10 = arith.muli %arg0, %c256_i32 : i32
    %11 = tpu.iota {dimensions = array<i32: 0>} : vector<256x128xi32>
    %12 = vector.broadcast %10 : i32 to vector<256x128xi32>
    %13 = arith.addi %12, %11 : vector<256x128xi32>
    %c512_i32 = arith.constant 512 : i32
    %14 = vector.broadcast %c512_i32 : i32 to vector<256x128xi32>
    %15 = arith.cmpi slt, %13, %14 : vector<256x128xi32>
    %cst_5 = arith.constant 0.000000e+00 : f32
    %16 = vector.broadcast %cst_5 : f32 to vector<256x128xf32>
    %17 = arith.select %15, %9, %16 : vector<256x128xi1>, vector<256x128xf32>
    %18 = arith.truncf %17 : vector<256x128xf32> to vector<256x128xbf16>
    %c0_6 = arith.constant 0 : index
    %c0_7 = arith.constant 0 : index
    %19 = vector.load %arg4[%c0_6, %c0_7] : memref<256x128xbf16, #tpu.memory_space<vmem>>, vector<256x128xbf16>
    tpu.vector_store %arg4[%c0_6, %c0_7], %18 {strides = array<i32>} : memref<256x128xbf16, #tpu.memory_space<vmem>>, vector<256x128xbf16>,
    return
  }
  func.func @transform_0(%arg0: i32) -> (i32, i32) {
    %c0_i32 = arith.constant 0 : i32
    %c0_i32_0 = arith.constant 0 : i32
    return %arg0, %c0_i32 : i32, i32
  }
  func.func @transform_1(%arg0: i32) -> (i32, i32) {
    %c0_i32 = arith.constant 0 : i32
    %c0_i32_0 = arith.constant 0 : i32
    %c0_i32_1 = arith.constant 0 : i32
    return %c0_i32, %c0_i32_0 : i32, i32
  }
  func.func @transform_2(%arg0: i32) -> (i32, i32) {
    %c0_i32 = arith.constant 0 : i32
    %c0_i32_0 = arith.constant 0 : i32
    %c0_i32_1 = arith.constant 0 : i32
    return %c0_i32, %c0_i32_0 : i32, i32
  }
  func.func @transform_3(%arg0: i32) -> (i32, i32) {
    %c0_i32 = arith.constant 0 : i32
    %c0_i32_0 = arith.constant 0 : i32
    return %arg0, %c0_i32 : i32, i32
  }
}

module attributes {stable_mosaic.version = 11 : i64} {
  func.func @_matmul_stats_resident_kernel(%arg0: i32, %arg1: memref<256x1152xbf16, #tpu.memory_space<vmem>>, %arg2: memref<1152x128xbf16, #tpu.memory_space<vmem>>, %arg3: memref<256x128xbf16, #tpu.memory_space<vmem>>, %arg4: memref<8x128xf32, #tpu.memory_space<vmem>>) attributes {dimension_semantics = [#tpu.dimension_semantics<parallel>], iteration_bounds = array<i64: 2>, scalar_prefetch = 0 : i64, scratch_operands = 0 : i64, tpu.core_type = #tpu.core_type<tc>, window_params = [{transform_indices = @transform_0, window_bounds = array<i64: 256, 1152>}, {pipeline_mode = #tpu.pipeline_mode<synchronous>, transform_indices = @transform_1, window_bounds = array<i64: 1152, 128>}, {transform_indices = @transform_2, window_bounds = array<i64: 256, 128>}, {transform_indices = @transform_3, window_bounds = array<i64: 8, 128>}]} {
    %c0 = arith.constant 0 : index
    %c0_0 = arith.constant 0 : index
    %0 = vector.load %arg1[%c0, %c0_0] : memref<256x1152xbf16, #tpu.memory_space<vmem>>, vector<256x1152xbf16>
    %c0_1 = arith.constant 0 : index
    %c0_2 = arith.constant 0 : index
    %1 = vector.load %arg2[%c0_1, %c0_2] : memref<1152x128xbf16, #tpu.memory_space<vmem>>, vector<1152x128xbf16>
    %cst = arith.constant dense<0.000000e+00> : vector<256x128xf32>
    %2 = tpu.matmul %0, %1, %cst {dimension_numbers = #tpu.dot_dimension_numbers<[1], [0], [0], [1], [0, 0, 1, 1], [], []>} : vector<256x1152xbf16>, vector<1152x128xbf16>, vector<256x128xf32> -> vector<256x128xf32>
    %3 = arith.truncf %2 : vector<256x128xf32> to vector<256x128xbf16>
    %c0_3 = arith.constant 0 : index
    %c0_4 = arith.constant 0 : index
    %4 = vector.load %arg3[%c0_3, %c0_4] : memref<256x128xbf16, #tpu.memory_space<vmem>>, vector<256x128xbf16>
    tpu.vector_store %arg3[%c0_3, %c0_4], %3 {strides = array<i32>} : memref<256x128xbf16, #tpu.memory_space<vmem>>, vector<256x128xbf16>,
    %cst_5 = arith.constant 0.000000e+00 : f32
    %5 = vector.broadcast %cst_5 : f32 to vector<8x128xf32>
    %c0_6 = arith.constant 0 : index
    %c0_7 = arith.constant 0 : index
    %6 = vector.load %arg4[%c0_6, %c0_7] : memref<8x128xf32, #tpu.memory_space<vmem>>, vector<8x128xf32>
    tpu.vector_store %arg4[%c0_6, %c0_7], %5 {strides = array<i32>} : memref<8x128xf32, #tpu.memory_space<vmem>>, vector<8x128xf32>,
    %cst_8 = arith.constant dense<0.000000e+00> : vector<128xf32>
    %7 = vector.multi_reduction <add>, %2, %cst_8 [0] : vector<256x128xf32> to vector<128xf32>
    %8 = vector.shape_cast %7 : vector<128xf32> to vector<1x128xf32>
    %c0_9 = arith.constant 0 : index
    %c0_10 = arith.constant 0 : index
    %9 = vector.load %arg4[%c0_9, %c0_10] : memref<8x128xf32, #tpu.memory_space<vmem>>, vector<1x128xf32>
    tpu.vector_store %arg4[%c0_9, %c0_10], %8 {strides = array<i32>} : memref<8x128xf32, #tpu.memory_space<vmem>>, vector<1x128xf32>,
    %10 = arith.mulf %2, %2 : vector<256x128xf32>
    %cst_11 = arith.constant dense<0.000000e+00> : vector<128xf32>
    %11 = vector.multi_reduction <add>, %10, %cst_11 [0] : vector<256x128xf32> to vector<128xf32>
    %12 = vector.shape_cast %11 : vector<128xf32> to vector<1x128xf32>
    %c1 = arith.constant 1 : index
    %c0_12 = arith.constant 0 : index
    %13 = vector.load %arg4[%c1, %c0_12] : memref<8x128xf32, #tpu.memory_space<vmem>>, vector<1x128xf32>
    tpu.vector_store %arg4[%c1, %c0_12], %12 {strides = array<i32>} : memref<8x128xf32, #tpu.memory_space<vmem>>, vector<1x128xf32>,
    return
  }
  func.func @transform_0(%arg0: i32) -> (i32, i32) {
    %c0_i32 = arith.constant 0 : i32
    %c0_i32_0 = arith.constant 0 : i32
    return %arg0, %c0_i32 : i32, i32
  }
  func.func @transform_1(%arg0: i32) -> (i32, i32) {
    %c0_i32 = arith.constant 0 : i32
    %c0_i32_0 = arith.constant 0 : i32
    %c0_i32_1 = arith.constant 0 : i32
    return %c0_i32, %c0_i32_0 : i32, i32
  }
  func.func @transform_2(%arg0: i32) -> (i32, i32) {
    %c0_i32 = arith.constant 0 : i32
    %c0_i32_0 = arith.constant 0 : i32
    return %arg0, %c0_i32 : i32, i32
  }
  func.func @transform_3(%arg0: i32) -> (i32, i32) {
    %c0_i32 = arith.constant 0 : i32
    %c0_i32_0 = arith.constant 0 : i32
    return %arg0, %c0_i32 : i32, i32
  }
}

module attributes {stable_mosaic.version = 11 : i64} {
  func.func @_bn_act_kernel(%arg0: i32, %arg1: memref<256x128xbf16, #tpu.memory_space<vmem>>, %arg2: memref<1x128xf32, #tpu.memory_space<vmem>>, %arg3: memref<1x128xf32, #tpu.memory_space<vmem>>, %arg4: memref<256x128xbf16, #tpu.memory_space<vmem>>) attributes {dimension_semantics = [#tpu.dimension_semantics<parallel>], iteration_bounds = array<i64: 2>, scalar_prefetch = 0 : i64, scratch_operands = 0 : i64, tpu.core_type = #tpu.core_type<tc>, window_params = [{transform_indices = @transform_0, window_bounds = array<i64: 256, 128>}, {pipeline_mode = #tpu.pipeline_mode<synchronous>, transform_indices = @transform_1, window_bounds = array<i64: 1, 128>}, {pipeline_mode = #tpu.pipeline_mode<synchronous>, transform_indices = @transform_2, window_bounds = array<i64: 1, 128>}, {transform_indices = @transform_3, window_bounds = array<i64: 256, 128>}]} {
    %c0 = arith.constant 0 : index
    %c0_0 = arith.constant 0 : index
    %0 = vector.load %arg1[%c0, %c0_0] : memref<256x128xbf16, #tpu.memory_space<vmem>>, vector<256x128xbf16>
    %1 = arith.extf %0 : vector<256x128xbf16> to vector<256x128xf32>
    %c0_1 = arith.constant 0 : index
    %c0_2 = arith.constant 0 : index
    %2 = vector.load %arg2[%c0_1, %c0_2] : memref<1x128xf32, #tpu.memory_space<vmem>>, vector<1x128xf32>
    %3 = vector.broadcast %2 : vector<1x128xf32> to vector<256x128xf32>
    %4 = arith.mulf %1, %3 : vector<256x128xf32>
    %c0_3 = arith.constant 0 : index
    %c0_4 = arith.constant 0 : index
    %5 = vector.load %arg3[%c0_3, %c0_4] : memref<1x128xf32, #tpu.memory_space<vmem>>, vector<1x128xf32>
    %6 = vector.broadcast %5 : vector<1x128xf32> to vector<256x128xf32>
    %7 = arith.addf %4, %6 : vector<256x128xf32>
    %cst = arith.constant 0.000000e+00 : f32
    %8 = vector.broadcast %cst : f32 to vector<256x128xf32>
    %9 = arith.maximumf %7, %8 : vector<256x128xf32>
    %c256_i32 = arith.constant 256 : i32
    %10 = arith.muli %arg0, %c256_i32 : i32
    %11 = tpu.iota {dimensions = array<i32: 0>} : vector<256x128xi32>
    %12 = vector.broadcast %10 : i32 to vector<256x128xi32>
    %13 = arith.addi %12, %11 : vector<256x128xi32>
    %c128_i32 = arith.constant 128 : i32
    %14 = vector.broadcast %c128_i32 : i32 to vector<256x128xi32>
    %15 = arith.cmpi slt, %13, %14 : vector<256x128xi32>
    %cst_5 = arith.constant 0.000000e+00 : f32
    %16 = vector.broadcast %cst_5 : f32 to vector<256x128xf32>
    %17 = arith.select %15, %9, %16 : vector<256x128xi1>, vector<256x128xf32>
    %18 = arith.truncf %17 : vector<256x128xf32> to vector<256x128xbf16>
    %c0_6 = arith.constant 0 : index
    %c0_7 = arith.constant 0 : index
    %19 = vector.load %arg4[%c0_6, %c0_7] : memref<256x128xbf16, #tpu.memory_space<vmem>>, vector<256x128xbf16>
    tpu.vector_store %arg4[%c0_6, %c0_7], %18 {strides = array<i32>} : memref<256x128xbf16, #tpu.memory_space<vmem>>, vector<256x128xbf16>,
    return
  }
  func.func @transform_0(%arg0: i32) -> (i32, i32) {
    %c0_i32 = arith.constant 0 : i32
    %c0_i32_0 = arith.constant 0 : i32
    return %arg0, %c0_i32 : i32, i32
  }
  func.func @transform_1(%arg0: i32) -> (i32, i32) {
    %c0_i32 = arith.constant 0 : i32
    %c0_i32_0 = arith.constant 0 : i32
    %c0_i32_1 = arith.constant 0 : i32
    return %c0_i32, %c0_i32_0 : i32, i32
  }
  func.func @transform_2(%arg0: i32) -> (i32, i32) {
    %c0_i32 = arith.constant 0 : i32
    %c0_i32_0 = arith.constant 0 : i32
    %c0_i32_1 = arith.constant 0 : i32
    return %c0_i32, %c0_i32_0 : i32, i32
  }
  func.func @transform_3(%arg0: i32) -> (i32, i32) {
    %c0_i32 = arith.constant 0 : i32
    %c0_i32_0 = arith.constant 0 : i32
    return %arg0, %c0_i32 : i32, i32
  }
}

module attributes {stable_mosaic.version = 11 : i64} {
  func.func @_bn_add_relu_kernel(%arg0: i32, %arg1: memref<256x128xbf16, #tpu.memory_space<vmem>>, %arg2: memref<1x128xf32, #tpu.memory_space<vmem>>, %arg3: memref<1x128xf32, #tpu.memory_space<vmem>>, %arg4: memref<256x128xbf16, #tpu.memory_space<vmem>>, %arg5: memref<1x128xf32, #tpu.memory_space<vmem>>, %arg6: memref<1x128xf32, #tpu.memory_space<vmem>>, %arg7: memref<256x128xf32, #tpu.memory_space<vmem>>) attributes {dimension_semantics = [#tpu.dimension_semantics<parallel>], iteration_bounds = array<i64: 2>, scalar_prefetch = 0 : i64, scratch_operands = 0 : i64, tpu.core_type = #tpu.core_type<tc>, window_params = [{transform_indices = @transform_0, window_bounds = array<i64: 256, 128>}, {pipeline_mode = #tpu.pipeline_mode<synchronous>, transform_indices = @transform_1, window_bounds = array<i64: 1, 128>}, {pipeline_mode = #tpu.pipeline_mode<synchronous>, transform_indices = @transform_2, window_bounds = array<i64: 1, 128>}, {transform_indices = @transform_3, window_bounds = array<i64: 256, 128>}, {pipeline_mode = #tpu.pipeline_mode<synchronous>, transform_indices = @transform_4, window_bounds = array<i64: 1, 128>}, {pipeline_mode = #tpu.pipeline_mode<synchronous>, transform_indices = @transform_5, window_bounds = array<i64: 1, 128>}, {transform_indices = @transform_6, window_bounds = array<i64: 256, 128>}]} {
    %c0 = arith.constant 0 : index
    %c0_0 = arith.constant 0 : index
    %0 = vector.load %arg1[%c0, %c0_0] : memref<256x128xbf16, #tpu.memory_space<vmem>>, vector<256x128xbf16>
    %1 = arith.extf %0 : vector<256x128xbf16> to vector<256x128xf32>
    %c0_1 = arith.constant 0 : index
    %c0_2 = arith.constant 0 : index
    %2 = vector.load %arg2[%c0_1, %c0_2] : memref<1x128xf32, #tpu.memory_space<vmem>>, vector<1x128xf32>
    %3 = vector.broadcast %2 : vector<1x128xf32> to vector<256x128xf32>
    %4 = arith.mulf %1, %3 : vector<256x128xf32>
    %c0_3 = arith.constant 0 : index
    %c0_4 = arith.constant 0 : index
    %5 = vector.load %arg3[%c0_3, %c0_4] : memref<1x128xf32, #tpu.memory_space<vmem>>, vector<1x128xf32>
    %6 = vector.broadcast %5 : vector<1x128xf32> to vector<256x128xf32>
    %7 = arith.addf %4, %6 : vector<256x128xf32>
    %c0_5 = arith.constant 0 : index
    %c0_6 = arith.constant 0 : index
    %8 = vector.load %arg4[%c0_5, %c0_6] : memref<256x128xbf16, #tpu.memory_space<vmem>>, vector<256x128xbf16>
    %9 = arith.extf %8 : vector<256x128xbf16> to vector<256x128xf32>
    %c0_7 = arith.constant 0 : index
    %c0_8 = arith.constant 0 : index
    %10 = vector.load %arg5[%c0_7, %c0_8] : memref<1x128xf32, #tpu.memory_space<vmem>>, vector<1x128xf32>
    %11 = vector.broadcast %10 : vector<1x128xf32> to vector<256x128xf32>
    %12 = arith.mulf %9, %11 : vector<256x128xf32>
    %c0_9 = arith.constant 0 : index
    %c0_10 = arith.constant 0 : index
    %13 = vector.load %arg6[%c0_9, %c0_10] : memref<1x128xf32, #tpu.memory_space<vmem>>, vector<1x128xf32>
    %14 = vector.broadcast %13 : vector<1x128xf32> to vector<256x128xf32>
    %15 = arith.addf %12, %14 : vector<256x128xf32>
    %16 = arith.addf %7, %15 : vector<256x128xf32>
    %cst = arith.constant 0.000000e+00 : f32
    %17 = vector.broadcast %cst : f32 to vector<256x128xf32>
    %18 = arith.maximumf %16, %17 : vector<256x128xf32>
    %c256_i32 = arith.constant 256 : i32
    %19 = arith.muli %arg0, %c256_i32 : i32
    %20 = tpu.iota {dimensions = array<i32: 0>} : vector<256x128xi32>
    %21 = vector.broadcast %19 : i32 to vector<256x128xi32>
    %22 = arith.addi %21, %20 : vector<256x128xi32>
    %c128_i32 = arith.constant 128 : i32
    %23 = vector.broadcast %c128_i32 : i32 to vector<256x128xi32>
    %24 = arith.cmpi slt, %22, %23 : vector<256x128xi32>
    %cst_11 = arith.constant 0.000000e+00 : f32
    %25 = vector.broadcast %cst_11 : f32 to vector<256x128xf32>
    %26 = arith.select %24, %18, %25 : vector<256x128xi1>, vector<256x128xf32>
    %c0_12 = arith.constant 0 : index
    %c0_13 = arith.constant 0 : index
    %27 = vector.load %arg7[%c0_12, %c0_13] : memref<256x128xf32, #tpu.memory_space<vmem>>, vector<256x128xf32>
    tpu.vector_store %arg7[%c0_12, %c0_13], %26 {strides = array<i32>} : memref<256x128xf32, #tpu.memory_space<vmem>>, vector<256x128xf32>,
    return
  }
  func.func @transform_0(%arg0: i32) -> (i32, i32) {
    %c0_i32 = arith.constant 0 : i32
    %c0_i32_0 = arith.constant 0 : i32
    return %arg0, %c0_i32 : i32, i32
  }
  func.func @transform_1(%arg0: i32) -> (i32, i32) {
    %c0_i32 = arith.constant 0 : i32
    %c0_i32_0 = arith.constant 0 : i32
    %c0_i32_1 = arith.constant 0 : i32
    return %c0_i32, %c0_i32_0 : i32, i32
  }
  func.func @transform_2(%arg0: i32) -> (i32, i32) {
    %c0_i32 = arith.constant 0 : i32
    %c0_i32_0 = arith.constant 0 : i32
    %c0_i32_1 = arith.constant 0 : i32
    return %c0_i32, %c0_i32_0 : i32, i32
  }
  func.func @transform_3(%arg0: i32) -> (i32, i32) {
    %c0_i32 = arith.constant 0 : i32
    %c0_i32_0 = arith.constant 0 : i32
    return %arg0, %c0_i32 : i32, i32
  }
  func.func @transform_4(%arg0: i32) -> (i32, i32) {
    %c0_i32 = arith.constant 0 : i32
    %c0_i32_0 = arith.constant 0 : i32
    %c0_i32_1 = arith.constant 0 : i32
    return %c0_i32, %c0_i32_0 : i32, i32
  }
  func.func @transform_5(%arg0: i32) -> (i32, i32) {
    %c0_i32 = arith.constant 0 : i32
    %c0_i32_0 = arith.constant 0 : i32
    %c0_i32_1 = arith.constant 0 : i32
    return %c0_i32, %c0_i32_0 : i32, i32
  }
  func.func @transform_6(%arg0: i32) -> (i32, i32) {
    %c0_i32 = arith.constant 0 : i32
    %c0_i32_0 = arith.constant 0 : i32
    return %arg0, %c0_i32 : i32, i32
  }
}

</mosaic_0001>

<bundles_post_ra>
// kernel: bottleneck_forward.8
= control target key start
LH: loop header
LB: loop body
LE: loop exit
PB: predicated region body
PF: predicated region fallthrough
CT: control target
= control target key end

     0   :  { %s817_s12 = smov 0   ;;  %s1031_s0 = inlined_call_operand.vmem [shape: bf16[512,128], index: 0, kind: input, shape index: {}]   ;;  %s1032_s1 = inlined_call_operand.vmem [shape: f32[1,128], index: 1, kind: input, shape index: {}]   ;;  %s1033_s2 = inlined_call_operand.vmem [shape: f32[1,128], index: 2, kind: input, shape index: {}]   ;;  %s1034_s3 = inlined_call_operand.vmem [shape: bf16[512,128], index: 3, kind: output, shape index: {}]  }
   0x1 LB: > { %s593_s13 = sadd.s32 4294967295, %s795_s12   ;;  %p597_p0 = scmp.ge.s32.totalorder %s795_s12, 1  ;;  %s795_s12 = sphi %s817_s12, %s13_s12  }
   0x2   : > { %p138_p1 = scmp.lt.s32.totalorder %s795_s12, 3 }
   0x4   : > { %p139_p2 = pnand %p597_p0, %p138_p1 }
   0x5   : > { %s598_s14 = sshll.u32 (!%p139_p2), %s593_s13, 5  ;;  %s602_s15 = sshll.u32 (!%p139_p2), %s593_s13, 8 }
   0x6   : > { %142 = sbr.rel (%p139_p2) target bundleno = 88 (0x58), region = 32  ;;  %p163_p3 = scmp.lt.s32.totalorder (!%p139_p2), %s598_s14, 63 }
   0xb   : > { %v343_v0 = vlaneseq  ;;  %v825_v1 = vstv %s602_s15  ;;  %s1036_s14 = smov (!%p163_p3, %s598_s14), 63  ;;  %v851_v11 = vld [vmem:[%s1032_s1] ss:$0 sm:$0xff] }
   0xc   : > { %s599_s16 = sshll.u32 %s1036_s14, 2  ;;  %v870_v24 = vld [vmem:[%s1033_s2] ss:$0 sm:$0xff] }
   0xd   : > { %v827_v2 = vshrl.u32 %v343_v0, 7  ;;  %s846_s19 = scalar_lea.vmem %s1031_s0, %s599_s16  ;;  %s892_s26 = scalar_lea.vmem %s1034_s3, %s599_s16 }
   0xe   : > { %v606_v15 = vld [vmem:[%s846_s19] sm:$0xff]   ;;  %v749_v16 = vld [vmem:[%s846_s19 + $0x8] sm:$0xff]   ;;  %v750_v17 = vld [vmem:[%s846_s19 + $0x10] sm:$0xff]  }
   0xf   : > { %v345_v3 = vadd.s32 8, %v827_v2  ;;  %v377_v4 = vadd.s32 %v825_v1, %v827_v2  ;;  %v346_v5 = vadd.s32 16, %v827_v2  ;;  %v347_v6 = vadd.s32 24, %v827_v2  ;;  %v751_v32 = vld [vmem:[%s846_s19 + $0x18] sm:$0xff]   ;;  %v752_v55 = vld [vmem:[%s846_s19 + $0x20] sm:$0xff]   ;;  %v753_v63 = vld [vmem:[%s846_s19 + $0x28] sm:$0xff]  }
  0x10   : > { %v348_v7 = vadd.s32 32, %v827_v2  ;;  %v349_v8 = vadd.s32 40, %v827_v2  ;;  %v350_v9 = vadd.s32 48, %v827_v2  ;;  %v351_v10 = vadd.s32 56, %v827_v2 }
  0x11   : > { %v378_v12 = vadd.s32 %v825_v1, %v345_v3  ;;  %vm409_vm0 = vcmp.lt.s32.totalorder %v377_v4, 512  ;;  %v379_v13 = vadd.s32 %v825_v1, %v346_v5  ;;  %v380_v14 = vadd.s32 %v825_v1, %v347_v6 }
  0x12   : > { %v381_v18 = vadd.s32 %v825_v1, %v348_v7  ;;  %v382_v19 = vadd.s32 %v825_v1, %v349_v8  ;;  %v862_v20 = vadd.s32 %v825_v1, %v350_v9  ;;  %v865_v21 = vadd.s32 %v825_v1, %v351_v10 }
  0x13   : > { %v607_v22 = vunpack.c.l.bf16 %v606_v15  ;;  %v608_v23 = vunpack.c.h.bf16 %v606_v15  ;;  %vm410_vm1 = vcmp.lt.s32.totalorder %v378_v12, 512  ;;  %v611_v25 = vunpack.c.l.bf16 %v749_v16 }
  0x14   : > { %v612_v26 = vunpack.c.h.bf16 %v749_v16  ;;  %vm411_vm2 = vcmp.lt.s32.totalorder %v379_v13, 512  ;;  %vm412_vm3 = vcmp.lt.s32.totalorder %v380_v14, 512  ;;  %v615_v27 = vunpack.c.l.bf16 %v750_v17 }
  0x15   : > { %v242_v28 = vmul.f32 %v851_v11, %v607_v22  ;;  %v243_v29 = vmul.f32 %v851_v11, %v608_v23  ;;  %v244_v30 = vmul.f32 %v851_v11, %v611_v25  ;;  %v616_v31 = vunpack.c.h.bf16 %v750_v17  ;;  %v754_v22 = vld [vmem:[%s846_s19 + $0x30] sm:$0xff]  }
  0x16   : > { %v245_v33 = vmul.f32 %v851_v11, %v612_v26  ;;  %v246_v34 = vmul.f32 %v851_v11, %v615_v27  ;;  %vm413_vm4 = vcmp.lt.s32.totalorder %v381_v18, 512  ;;  %vm414_vm5 = vcmp.lt.s32.totalorder %v382_v19, 512 }
  0x17   : > { %v278_v35 = vadd.f32 %v870_v24, %v242_v28  ;;  %v279_v36 = vadd.f32 %v870_v24, %v243_v29  ;;  %v280_v37 = vadd.f32 %v870_v24, %v244_v30  ;;  %v247_v38 = vmul.f32 %v851_v11, %v616_v31 }
  0x18   : > { %v281_v39 = vadd.f32 %v870_v24, %v245_v33  ;;  %v282_v40 = vadd.f32 %v870_v24, %v246_v34  ;;  %v619_v41 = vunpack.c.l.bf16 %v751_v32  ;;  %v620_v42 = vunpack.c.h.bf16 %v751_v32 }
  0x19   : > { %v310_v43 = vmax.f32 %v278_v35, 0.0  ;;  %v311_v44 = vmax.f32 %v279_v36, 0.0  ;;  %v312_v45 = vmax.f32 %v280_v37, 0.0  ;;  %v283_v46 = vadd.f32 %v870_v24, %v247_v38 }
  0x1a   : > { %v313_v47 = vmax.f32 %v281_v39, 0.0  ;;  %v314_v48 = vmax.f32 %v282_v40, 0.0  ;;  %v248_v49 = vmul.f32 %v851_v11, %v619_v41  ;;  %v249_v50 = vmul.f32 %v851_v11, %v620_v42  ;;  %v755_v41 = vld [vmem:[%s846_s19 + $0x38] sm:$0xff]  }
  0x1b   : > { %v441_v51 = vsel %vm409_vm0, %v310_v43, 0.0  ;;  %v442_v52 = vsel %vm410_vm1, %v311_v44, 0.0  ;;  %v443_v53 = vsel %vm411_vm2, %v312_v45, 0.0  ;;  %v315_v54 = vmax.f32 %v283_v46, 0.0 }
  0x1c   : > { %v672_v56 = vpack.c.bf16 %v442_v52, %v441_v51  ;;  %v444_v57 = vsel %vm412_vm3, %v313_v47, 0.0  ;;  %v445_v58 = vsel %vm413_vm4, %v314_v48, 0.0  ;;  %v284_v59 = vadd.f32 %v870_v24, %v248_v49 }
  0x1d   : > { %v677_v60 = vpack.c.bf16 %v444_v57, %v443_v53  ;;  %v446_v61 = vsel %vm414_vm5, %v315_v54, 0.0  ;;  %v285_v62 = vadd.f32 %v870_v24, %v249_v50  ;;  %vm415_vm6 = vcmp.lt.s32.totalorder %v862_v20, 512  ;;  %v756_v53 = vld [vmem:[%s846_s19 + $0x40] sm:$0xff]  }
  0x1e   : > { %673 = vst [vmem:[%s892_s26] sm:$0xff] %v672_v56   ;;  %v682_v0 = vpack.c.bf16 %v446_v61, %v445_v58  ;;  %v316_v3 = vmax.f32 %v284_v59, 0.0  ;;  %vm416_vm7 = vcmp.lt.s32.totalorder %v865_v21, 512  ;;  %v623_v4 = vunpack.c.l.bf16 %v752_v55 }
  0x1f   : > { %764 = vst [vmem:[%s892_s26 + $0x8] sm:$0xff] %v677_v60   ;;  %v317_v5 = vmax.f32 %v285_v62, 0.0  ;;  %v624_v6 = vunpack.c.h.bf16 %v752_v55  ;;  %v352_v7 = vadd.s32 64, %v827_v2  ;;  %v353_v8 = vadd.s32 72, %v827_v2 }
  0x20   : > { %765 = vst [vmem:[%s892_s26 + $0x10] sm:$0xff] %v682_v0   ;;  %v447_v9 = vsel %vm415_vm6, %v316_v3, 0.0  ;;  %v250_v10 = vmul.f32 %v851_v11, %v623_v4  ;;  %v627_v12 = vunpack.c.l.bf16 %v753_v63  ;;  %v628_v13 = vunpack.c.h.bf16 %v753_v63 }
  0x21   : > { %v448_v14 = vsel %vm416_vm7, %v317_v5, 0.0  ;;  %v251_v15 = vmul.f32 %v851_v11, %v624_v6  ;;  %v385_v16 = vadd.s32 %v825_v1, %v352_v7  ;;  %v386_v17 = vadd.s32 %v825_v1, %v353_v8  ;;  %v757_v6 = vld [vmem:[%s846_s19 + $0x48] sm:$0xff]  }
  0x22   : > { %v687_v18 = vpack.c.bf16 %v448_v14, %v447_v9  ;;  %v286_v19 = vadd.f32 %v870_v24, %v250_v10  ;;  %v252_v20 = vmul.f32 %v851_v11, %v627_v12  ;;  %v253_v21 = vmul.f32 %v851_v11, %v628_v13 }
  0x23   : > { %v287_v23 = vadd.f32 %v870_v24, %v251_v15  ;;  %vm417_vm8 = vcmp.lt.s32.totalorder %v385_v16, 512  ;;  %vm418_vm9 = vcmp.lt.s32.totalorder %v386_v17, 512  ;;  %v354_v25 = vadd.s32 80, %v827_v2 }
  0x24   : > { %766 = vst [vmem:[%s892_s26 + $0x18] sm:$0xff] %v687_v18   ;;  %v318_v26 = vmax.f32 %v286_v19, 0.0  ;;  %v288_v27 = vadd.f32 %v870_v24, %v252_v20  ;;  %v289_v28 = vadd.f32 %v870_v24, %v253_v21  ;;  %v355_v29 = vadd.s32 88, %v827_v2 }
  0x25   : > { %v319_v30 = vmax.f32 %v287_v23, 0.0  ;;  %v387_v31 = vadd.s32 %v825_v1, %v354_v25  ;;  %v631_v32 = vunpack.c.l.bf16 %v754_v22  ;;  %v632_v33 = vunpack.c.h.bf16 %v754_v22 }
  0x26   : > { %v449_v34 = vsel %vm417_vm8, %v318_v26, 0.0  ;;  %v320_v35 = vmax.f32 %v288_v27, 0.0  ;;  %v321_v36 = vmax.f32 %v289_v28, 0.0  ;;  %v388_v37 = vadd.s32 %v825_v1, %v355_v29  ;;  %v758_v27 = vld [vmem:[%s846_s19 + $0x50] sm:$0xff]  }
  0x27   : > { %v450_v38 = vsel %vm418_vm9, %v319_v30, 0.0  ;;  %vm419_vm10 = vcmp.lt.s32.totalorder %v387_v31, 512  ;;  %v254_v39 = vmul.f32 %v851_v11, %v631_v32  ;;  %v255_v40 = vmul.f32 %v851_v11, %v632_v33 }
  0x28   : > { %v692_v42 = vpack.c.bf16 %v450_v38, %v449_v34  ;;  %vm420_vm11 = vcmp.lt.s32.totalorder %v388_v37, 512  ;;  %v451_v43 = vsel %vm419_vm10, %v320_v35, 0.0  ;;  %v356_v44 = vadd.s32 96, %v827_v2 }
  0x29   : > { %v452_v45 = vsel %vm420_vm11, %v321_v36, 0.0  ;;  %v290_v46 = vadd.f32 %v870_v24, %v254_v39  ;;  %v291_v47 = vadd.f32 %v870_v24, %v255_v40  ;;  %v357_v48 = vadd.s32 104, %v827_v2 }
  0x2a   : > { %767 = vst [vmem:[%s892_s26 + $0x20] sm:$0xff] %v692_v42   ;;  %v697_v49 = vpack.c.bf16 %v452_v45, %v451_v43  ;;  %v389_v50 = vadd.s32 %v825_v1, %v356_v44  ;;  %v635_v51 = vunpack.c.l.bf16 %v755_v41  ;;  %v636_v52 = vunpack.c.h.bf16 %v755_v41  ;;  %v759_v42 = vld [vmem:[%s846_s19 + $0x58] sm:$0xff]  }
  0x2b   : > { %v322_v54 = vmax.f32 %v290_v46, 0.0  ;;  %v323_v55 = vmax.f32 %v291_v47, 0.0  ;;  %v390_v56 = vadd.s32 %v825_v1, %v357_v48  ;;  %v358_v57 = vadd.s32 112, %v827_v2 }
  0x2c   : > { %768 = vst [vmem:[%s892_s26 + $0x28] sm:$0xff] %v697_v49   ;;  %vm421_vm12 = vcmp.lt.s32.totalorder %v389_v50, 512  ;;  %v256_v58 = vmul.f32 %v851_v11, %v635_v51  ;;  %v257_v59 = vmul.f32 %v851_v11, %v636_v52  ;;  %v359_v60 = vadd.s32 120, %v827_v2 }
  0x2d   : > { %vm422_vm13 = vcmp.lt.s32.totalorder %v390_v56, 512  ;;  %v453_v61 = vsel %vm421_vm12, %v322_v54, 0.0  ;;  %v391_v62 = vadd.s32 %v825_v1, %v358_v57  ;;  %v639_v63 = vunpack.c.l.bf16 %v756_v53  ;;  %v760_v57 = vld [vmem:[%s846_s19 + $0x60] sm:$0xff]  }
  0x2e   : > { %v454_v0 = vsel %vm422_vm13, %v323_v55, 0.0  ;;  %v292_v3 = vadd.f32 %v870_v24, %v256_v58  ;;  %v293_v4 = vadd.f32 %v870_v24, %v257_v59  ;;  %v392_v5 = vadd.s32 %v825_v1, %v359_v60 }
  0x2f   : > { %v702_v7 = vpack.c.bf16 %v454_v0, %v453_v61  ;;  %vm423_vm14 = vcmp.lt.s32.totalorder %v391_v62, 512  ;;  %v640_v8 = vunpack.c.h.bf16 %v756_v53  ;;  %v258_v9 = vmul.f32 %v851_v11, %v639_v63 }
  0x30   : > { %v324_v10 = vmax.f32 %v292_v3, 0.0  ;;  %v325_v12 = vmax.f32 %v293_v4, 0.0  ;;  %vm424_vm15 = vcmp.lt.s32.totalorder %v392_v5, 512  ;;  %v360_v13 = vadd.s32 128, %v827_v2 }
  0x31   : > { %769 = vst [vmem:[%s892_s26 + $0x30] sm:$0xff] %v702_v7   ;;  %v259_v14 = vmul.f32 %v851_v11, %v640_v8  ;;  %v294_v15 = vadd.f32 %v870_v24, %v258_v9  ;;  %v361_v16 = vadd.s32 136, %v827_v2  ;;  %v643_v17 = vunpack.c.l.bf16 %v757_v6 }
  0x32   : > { %v455_v18 = vsel %vm423_vm14, %v324_v10, 0.0  ;;  %v456_v19 = vsel %vm424_vm15, %v325_v12, 0.0  ;;  %v393_v20 = vadd.s32 %v825_v1, %v360_v13  ;;  %v644_v21 = vunpack.c.h.bf16 %v757_v6  ;;  %v761_v10 = vld [vmem:[%s846_s19 + $0x68] sm:$0xff]  }
  0x33   : > { %v707_v22 = vpack.c.bf16 %v456_v19, %v455_v18  ;;  %v295_v23 = vadd.f32 %v870_v24, %v259_v14  ;;  %v326_v25 = vmax.f32 %v294_v15, 0.0  ;;  %v394_v26 = vadd.s32 %v825_v1, %v361_v16 }
  0x34   : > { %vm425_vm0 = vcmp.lt.s32.totalorder %v393_v20, 512  ;;  %v260_v28 = vmul.f32 %v851_v11, %v643_v17  ;;  %v261_v29 = vmul.f32 %v851_v11, %v644_v21  ;;  %v362_v30 = vadd.s32 144, %v827_v2 }
  0x35   : > { %770 = vst [vmem:[%s892_s26 + $0x38] sm:$0xff] %v707_v22   ;;  %v327_v31 = vmax.f32 %v295_v23, 0.0  ;;  %vm426_vm1 = vcmp.lt.s32.totalorder %v394_v26, 512  ;;  %v457_v32 = vsel %vm425_vm0, %v326_v25, 0.0  ;;  %v363_v33 = vadd.s32 152, %v827_v2 }
  0x36   : > { %v296_v34 = vadd.f32 %v870_v24, %v260_v28  ;;  %v297_v35 = vadd.f32 %v870_v24, %v261_v29  ;;  %v395_v36 = vadd.s32 %v825_v1, %v362_v30  ;;  %v647_v37 = vunpack.c.l.bf16 %v758_v27 }
  0x37   : > { %v458_v38 = vsel %vm426_vm1, %v327_v31, 0.0  ;;  %v396_v39 = vadd.s32 %v825_v1, %v363_v33  ;;  %v648_v40 = vunpack.c.h.bf16 %v758_v27  ;;  %v364_v41 = vadd.s32 160, %v827_v2  ;;  %v762_v31 = vld [vmem:[%s846_s19 + $0x70] sm:$0xff]  }
  0x38   : > { %v712_v43 = vpack.c.bf16 %v458_v38, %v457_v32  ;;  %v328_v44 = vmax.f32 %v296_v34, 0.0  ;;  %v329_v45 = vmax.f32 %v297_v35, 0.0  ;;  %vm427_vm2 = vcmp.lt.s32.totalorder %v395_v36, 512 }
  0x39   : > { %vm428_vm3 = vcmp.lt.s32.totalorder %v396_v39, 512  ;;  %v262_v46 = vmul.f32 %v851_v11, %v647_v37  ;;  %v263_v47 = vmul.f32 %v851_v11, %v648_v40  ;;  %v365_v48 = vadd.s32 168, %v827_v2 }
  0x3a   : > { %771 = vst [vmem:[%s892_s26 + $0x40] sm:$0xff] %v712_v43   ;;  %v459_v49 = vsel %vm427_vm2, %v328_v44, 0.0  ;;  %v460_v50 = vsel %vm428_vm3, %v329_v45, 0.0  ;;  %v397_v51 = vadd.s32 %v825_v1, %v364_v41  ;;  %v651_v52 = vunpack.c.l.bf16 %v759_v42 }
  0x3b   : > { %v717_v53 = vpack.c.bf16 %v460_v50, %v459_v49  ;;  %v298_v54 = vadd.f32 %v870_v24, %v262_v46  ;;  %v299_v55 = vadd.f32 %v870_v24, %v263_v47  ;;  %v398_v56 = vadd.s32 %v825_v1, %v365_v48  ;;  %v763_v46 = vld [vmem:[%s846_s19 + $0x78] sm:$0xff]  }
  0x3c   : > { %vm429_vm4 = vcmp.lt.s32.totalorder %v397_v51, 512  ;;  %v652_v58 = vunpack.c.h.bf16 %v759_v42  ;;  %v264_v59 = vmul.f32 %v851_v11, %v651_v52  ;;  %v366_v60 = vadd.s32 176, %v827_v2 }
  0x3d   : > { %772 = vst [vmem:[%s892_s26 + $0x48] sm:$0xff] %v717_v53   ;;  %v330_v61 = vmax.f32 %v298_v54, 0.0  ;;  %v331_v62 = vmax.f32 %v299_v55, 0.0  ;;  %vm430_vm5 = vcmp.lt.s32.totalorder %v398_v56, 512  ;;  %v367_v63 = vadd.s32 184, %v827_v2 }
  0x3e   : > { %v265_v0 = vmul.f32 %v851_v11, %v652_v58  ;;  %v300_v3 = vadd.f32 %v870_v24, %v264_v59  ;;  %v399_v4 = vadd.s32 %v825_v1, %v366_v60  ;;  %v655_v5 = vunpack.c.l.bf16 %v760_v57 }
  0x3f   : > { %v461_v6 = vsel %vm429_vm4, %v330_v61, 0.0  ;;  %v462_v7 = vsel %vm430_vm5, %v331_v62, 0.0  ;;  %v400_v8 = vadd.s32 %v825_v1, %v367_v63  ;;  %v656_v9 = vunpack.c.h.bf16 %v760_v57 }
  0x40   : > { %v722_v12 = vpack.c.bf16 %v462_v7, %v461_v6  ;;  %v301_v13 = vadd.f32 %v870_v24, %v265_v0  ;;  %v332_v14 = vmax.f32 %v300_v3, 0.0  ;;  %vm431_vm6 = vcmp.lt.s32.totalorder %v399_v4, 512 }
  0x41   : > { %vm432_vm7 = vcmp.lt.s32.totalorder %v400_v8, 512  ;;  %v266_v15 = vmul.f32 %v851_v11, %v655_v5  ;;  %v267_v16 = vmul.f32 %v851_v11, %v656_v9  ;;  %v368_v17 = vadd.s32 192, %v827_v2 }
  0x42   : > { %773 = vst [vmem:[%s892_s26 + $0x50] sm:$0xff] %v722_v12   ;;  %v333_v18 = vmax.f32 %v301_v13, 0.0  ;;  %v463_v19 = vsel %vm431_vm6, %v332_v14, 0.0  ;;  %v369_v20 = vadd.s32 200, %v827_v2  ;;  %v659_v21 = vunpack.c.l.bf16 %v761_v10 }
  0x43   : > { %v302_v22 = vadd.f32 %v870_v24, %v266_v15  ;;  %v303_v23 = vadd.f32 %v870_v24, %v267_v16  ;;  %v401_v25 = vadd.s32 %v825_v1, %v368_v17  ;;  %v660_v26 = vunpack.c.h.bf16 %v761_v10 }
  0x44   : > { %v464_v27 = vsel %vm432_vm7, %v333_v18, 0.0  ;;  %v402_v28 = vadd.s32 %v825_v1, %v369_v20  ;;  %v268_v29 = vmul.f32 %v851_v11, %v659_v21  ;;  %v370_v30 = vadd.s32 208, %v827_v2 }
  0x45   : > { %v727_v32 = vpack.c.bf16 %v464_v27, %v463_v19  ;;  %v334_v33 = vmax.f32 %v302_v22, 0.0  ;;  %v335_v34 = vmax.f32 %v303_v23, 0.0  ;;  %vm433_vm8 = vcmp.lt.s32.totalorder %v401_v25, 512 }
  0x46   : > { %vm434_vm9 = vcmp.lt.s32.totalorder %v402_v28, 512  ;;  %v269_v35 = vmul.f32 %v851_v11, %v660_v26  ;;  %v304_v36 = vadd.f32 %v870_v24, %v268_v29  ;;  %v371_v37 = vadd.s32 216, %v827_v2 }
  0x47   : > { %774 = vst [vmem:[%s892_s26 + $0x58] sm:$0xff] %v727_v32   ;;  %v465_v38 = vsel %vm433_vm8, %v334_v33, 0.0  ;;  %v466_v39 = vsel %vm434_vm9, %v335_v34, 0.0  ;;  %v403_v40 = vadd.s32 %v825_v1, %v370_v30  ;;  %v663_v41 = vunpack.c.l.bf16 %v762_v31 }
  0x48   : > { %v732_v42 = vpack.c.bf16 %v466_v39, %v465_v38  ;;  %v305_v43 = vadd.f32 %v870_v24, %v269_v35  ;;  %v336_v44 = vmax.f32 %v304_v36, 0.0  ;;  %v404_v45 = vadd.s32 %v825_v1, %v371_v37 }
  0x49   : > { %vm435_vm10 = vcmp.lt.s32.totalorder %v403_v40, 512  ;;  %v664_v47 = vunpack.c.h.bf16 %v762_v31  ;;  %v270_v48 = vmul.f32 %v851_v11, %v663_v41  ;;  %v372_v49 = vadd.s32 224, %v827_v2 }
  0x4a   : > { %775 = vst [vmem:[%s892_s26 + $0x60] sm:$0xff] %v732_v42   ;;  %v337_v50 = vmax.f32 %v305_v43, 0.0  ;;  %vm436_vm11 = vcmp.lt.s32.totalorder %v404_v45, 512  ;;  %v467_v51 = vsel %vm435_vm10, %v336_v44, 0.0  ;;  %v373_v52 = vadd.s32 232, %v827_v2 }
  0x4b   : > { %v271_v53 = vmul.f32 %v851_v11, %v664_v47  ;;  %v306_v54 = vadd.f32 %v870_v24, %v270_v48  ;;  %v405_v55 = vadd.s32 %v825_v1, %v372_v49  ;;  %v667_v56 = vunpack.c.l.bf16 %v763_v46 }
  0x4c   : > { %v468_v57 = vsel %vm436_vm11, %v337_v50, 0.0  ;;  %v406_v58 = vadd.s32 %v825_v1, %v373_v52  ;;  %v668_v59 = vunpack.c.h.bf16 %v763_v46  ;;  %v374_v60 = vadd.s32 240, %v827_v2 }
  0x4d   : > { %v737_v61 = vpack.c.bf16 %v468_v57, %v467_v51  ;;  %v307_v62 = vadd.f32 %v870_v24, %v271_v53  ;;  %v338_v63 = vmax.f32 %v306_v54, 0.0  ;;  %vm437_vm12 = vcmp.lt.s32.totalorder %v405_v55, 512 }
  0x4e   : > { %vm438_vm13 = vcmp.lt.s32.totalorder %v406_v58, 512  ;;  %v272_v0 = vmul.f32 %v851_v11, %v667_v56  ;;  %v273_v3 = vmul.f32 %v851_v11, %v668_v59  ;;  %v375_v4 = vadd.s32 248, %v827_v2 }
  0x4f   : > { %776 = vst [vmem:[%s892_s26 + $0x68] sm:$0xff] %v737_v61   ;;  %v339_v5 = vmax.f32 %v307_v62, 0.0  ;;  %v469_v6 = vsel %vm437_vm12, %v338_v63, 0.0  ;;  %v407_v7 = vadd.s32 %v825_v1, %v374_v60 }
  0x50   : > { %v308_v8 = vadd.f32 %v870_v24, %v272_v0  ;;  %v309_v9 = vadd.f32 %v870_v24, %v273_v3  ;;  %v408_v10 = vadd.s32 %v825_v1, %v375_v4 }
  0x51   : > { %v470_v12 = vsel %vm438_vm13, %v339_v5, 0.0  ;;  %vm439_vm14 = vcmp.lt.s32.totalorder %v407_v7, 512 }
  0x52   : > { %v742_v13 = vpack.c.bf16 %v470_v12, %v469_v6  ;;  %v340_v14 = vmax.f32 %v308_v8, 0.0  ;;  %v341_v15 = vmax.f32 %v309_v9, 0.0  ;;  %vm440_vm15 = vcmp.lt.s32.totalorder %v408_v10, 512 }
  0x54   : > { %777 = vst [vmem:[%s892_s26 + $0x70] sm:$0xff] %v742_v13   ;;  %v471_v2 = vsel %vm439_vm14, %v340_v14, 0.0  ;;  %v472_v11 = vsel %vm440_vm15, %v341_v15, 0.0 }
  0x55   : > { %v747_v16 = vpack.c.bf16 %v472_v11, %v471_v2 }
  0x57   : > { %778 = vst [vmem:[%s892_s26 + $0x78] sm:$0xff] %v747_v16  }
  0x58 PF: > { %s13_s12 = sadd.s32 1, %s795_s12  }
  0x59   : > { %p10_p4 = scmp.ge.s32.totalorder %s13_s12, 4  }
  0x5b   :  { %12 = sbr.rel (!%p10_p4) target bundleno = 1 (0x1), region = 62 }

// kernel: bottleneck_forward.7
= control target key start
LH: loop header
LB: loop body
LE: loop exit
PB: predicated region body
PF: predicated region fallthrough
CT: control target
= control target key end

     0   :  { %s1015_s12 = smov 0   ;;  %s1238_s0 = inlined_call_operand.vmem [shape: bf16[512,128], index: 0, kind: input, shape index: {}]   ;;  %s1239_s1 = inlined_call_operand.vmem [shape: bf16[128,128], index: 1, kind: input, shape index: {}]   ;;  %s1240_s2 = inlined_call_operand.vmem [shape: bf16[512,128], index: 2, kind: output, shape index: {0}]   ;;  %s1241_s3 = inlined_call_operand.vmem [shape: f32[16,128], index: 3, kind: output, shape index: {1}]  }
   0x1 LB: > { %s1021_s13 = sadd.s32 4294967295, %s992_s12   ;;  %p730_p0 = scmp.ge.s32.totalorder %s992_s12, 1  ;;  %s992_s12 = sphi %s1015_s12, %s14_s12  }
   0x2   : > { %p141_p1 = scmp.lt.s32.totalorder %s992_s12, 3 }
   0x4   : > { %p142_p2 = pnand %p730_p0, %p141_p1 }
   0x5   : > { %s731_s22 = sshll.u32 (!%p142_p2), %s1021_s13, 5  ;;  %p181_p4 = scmp.lt.s32.totalorder (!%p142_p2), %s1021_s13, 1 }
   0x6   : > { %145 = sbr.rel (%p142_p2) target bundleno = 290 (0x122), region = 28  ;;  %p170_p3 = scmp.lt.s32.totalorder (!%p142_p2), %s731_s22, 63 }
   0xb   : > { %v857_v0 = vld [vmem:[%s1239_s1 + $0x38] sm:$0xff]  ;;  %v856_v1 = vld [vmem:[%s1239_s1 + $0x30] sm:$0xff]  ;;  %v855_v2 = vld [vmem:[%s1239_s1 + $0x28] sm:$0xff]  ;;  %s1243_s22 = smov (!%p170_p3, %s731_s22), 63  ;;  %s1245_s13 = smov (!%p181_p4, %s1021_s13), 1 }
   0xc   : > { %377 = vmatpush.bf16.msra.mxu0 %v857_v0  ;;  %953 = vmatpush.bf16.msra.mxu1 %v857_v0  ;;  %v854_v3 = vld [vmem:[%s1239_s1 + $0x20] sm:$0xff]  ;;  %v853_v4 = vld [vmem:[%s1239_s1 + $0x18] sm:$0xff]  ;;  %v852_v5 = vld [vmem:[%s1239_s1 + $0x10] sm:$0xff]  ;;  %s732_s29 = sshll.u32 %s1243_s22, 2  ;;  %s735_s11 = sshll.u32 %s1245_s13, 3 }
   0xd   : > { %954 = vmatpush.bf16.msra.mxu2 %v857_v0  ;;  %955 = vmatpush.bf16.msra.mxu3 %v857_v0  ;;  %v851_v6 = vld [vmem:[%s1239_s1 + $0x8] sm:$0xff]  ;;  %v850_v7 = vld [vmem:[%s1239_s1] sm:$0xff]  ;;  %s1058_s7 = scalar_lea.vmem %s1238_s0, %s732_s29  ;;  %s1085_s10 = scalar_lea.vmem %s1240_s2, %s732_s29 }
   0xe   : > { %v834_v8 = vld [vmem:[%s1058_s7] sm:$0xff]  ;;  %v835_v12 = vld [vmem:[%s1058_s7 + $0x8] sm:$0xff]  ;;  %v836_v16 = vld [vmem:[%s1058_s7 + $0x10] sm:$0xff]  ;;  %s1185_s16 = scalar_lea.vmem %s1241_s3, %s735_s11 }
   0xf   : > { %v838_v9 = vld [vmem:[%s1058_s7 + $0x20] sm:$0xff]  ;;  %v839_v13 = vld [vmem:[%s1058_s7 + $0x28] sm:$0xff]  ;;  %v840_v17 = vld [vmem:[%s1058_s7 + $0x30] sm:$0xff] }
  0x10   : > { %378 = vmatpush.bf16.msra.mxu0 %v856_v1  ;;  %956 = vmatpush.bf16.msra.mxu1 %v856_v1  ;;  %v842_v10 = vld [vmem:[%s1058_s7 + $0x40] sm:$0xff]  ;;  %v843_v14 = vld [vmem:[%s1058_s7 + $0x48] sm:$0xff]  ;;  %v844_v18 = vld [vmem:[%s1058_s7 + $0x50] sm:$0xff] }
  0x11   : > { %957 = vmatpush.bf16.msra.mxu2 %v856_v1  ;;  %958 = vmatpush.bf16.msra.mxu3 %v856_v1  ;;  %v846_v11 = vld [vmem:[%s1058_s7 + $0x60] sm:$0xff]  ;;  %v847_v15 = vld [vmem:[%s1058_s7 + $0x68] sm:$0xff]  ;;  %v848_v19 = vld [vmem:[%s1058_s7 + $0x70] sm:$0xff] }
  0x12   : > { %v837_v20 = vld [vmem:[%s1058_s7 + $0x18] sm:$0xff] }
  0x13   : > { %v841_v21 = vld [vmem:[%s1058_s7 + $0x38] sm:$0xff] }
  0x14   : > { %379 = vmatpush.bf16.msra.mxu0 %v855_v2  ;;  %959 = vmatpush.bf16.msra.mxu1 %v855_v2  ;;  %v845_v22 = vld [vmem:[%s1058_s7 + $0x58] sm:$0xff] }
  0x15   : > { %960 = vmatpush.bf16.msra.mxu2 %v855_v2  ;;  %961 = vmatpush.bf16.msra.mxu3 %v855_v2  ;;  %v849_v23 = vld [vmem:[%s1058_s7 + $0x78] sm:$0xff] }
  0x18   : > { %380 = vmatpush.bf16.msra.mxu0 %v854_v3  ;;  %962 = vmatpush.bf16.msra.mxu1 %v854_v3 }
  0x19   : > { %963 = vmatpush.bf16.msra.mxu2 %v854_v3  ;;  %964 = vmatpush.bf16.msra.mxu3 %v854_v3 }
  0x1c   : > { %381 = vmatpush.bf16.msra.mxu0 %v853_v4  ;;  %965 = vmatpush.bf16.msra.mxu1 %v853_v4 }
  0x1d   : > { %966 = vmatpush.bf16.msra.mxu2 %v853_v4  ;;  %967 = vmatpush.bf16.msra.mxu3 %v853_v4 }
  0x20   : > { %382 = vmatpush.bf16.msra.mxu0 %v852_v5  ;;  %968 = vmatpush.bf16.msra.mxu1 %v852_v5 }
  0x21   : > { %969 = vmatpush.bf16.msra.mxu2 %v852_v5  ;;  %970 = vmatpush.bf16.msra.mxu3 %v852_v5 }
  0x24   : > { %383 = vmatpush.bf16.msra.mxu0 %v851_v6  ;;  %971 = vmatpush.bf16.msra.mxu1 %v851_v6 }
  0x25   : > { %972 = vmatpush.bf16.msra.mxu2 %v851_v6  ;;  %973 = vmatpush.bf16.msra.mxu3 %v851_v6 }
  0x28   : > { %384 = vmatpush.bf16.msra.mxu0 %v850_v7  ;;  %974 = vmatpush.bf16.msra.mxu1 %v850_v7 }
  0x29   : > { %975 = vmatpush.bf16.msra.mxu2 %v850_v7  ;;  %976 = vmatpush.bf16.msra.mxu3 %v850_v7 }
  0x2b   : > { %385 = vmatmul.bf16.vlgmr.msra.gmra.mxu0 %v834_v8  ;;  %405 = vmatmul.bf16.vlgmr.msra.gmra.mxu1 %v838_v9 }
  0x2c   : > { %425 = vmatmul.bf16.vlgmr.msra.gmra.mxu2 %v842_v10  ;;  %445 = vmatmul.bf16.vlgmr.msra.gmra.mxu3 %v846_v11 }
  0x3b   : > { %390 = vmatmul.bf16.gmra.mxu0 %v835_v12  ;;  %410 = vmatmul.bf16.gmra.mxu1 %v839_v13 }
  0x3c   : > { %430 = vmatmul.bf16.gmra.mxu2 %v843_v14  ;;  %450 = vmatmul.bf16.gmra.mxu3 %v847_v15 }
  0x4b   : > { %395 = vmatmul.bf16.gmra.mxu0 %v836_v16  ;;  %415 = vmatmul.bf16.gmra.mxu1 %v840_v17 }
  0x4c   : > { %435 = vmatmul.bf16.gmra.mxu2 %v844_v18  ;;  %455 = vmatmul.bf16.gmra.mxu3 %v848_v19 }
  0x5b   : > { %400 = vmatmul.bf16.gmra.mxu0 %v837_v20  ;;  %420 = vmatmul.bf16.gmra.mxu1 %v841_v21 }
  0x5c   : > { %440 = vmatmul.bf16.gmra.mxu2 %v845_v22  ;;  %460 = vmatmul.bf16.gmra.mxu3 %v849_v23 }
  0xa8   : > { %v386_v24 = vpop.f32.mrf.mxu0  ;;  %v1076_v25 = vpop.f32.mrf.mxu1 }
  0xa9   : > { %v569_v57 = vmul.f32 %v386_v24, %v386_v24 }
  0xaf   : > { %v1078_v26 = vpop.f32.mrf.mxu2  ;;  %v1091_v31 = vpop.f32.mrf.mxu3 }
  0xb0   : > { %v388_v27 = vpop.f32.mrf.mxu0  ;;  %v1087_v28 = vpop.f32.mrf.mxu1 }
  0xb1   : > { %v861_v29 = vpack.c.bf16 %v388_v27, %v386_v24  ;;  %v881_v30 = vpack.c.bf16 %v1087_v28, %v1076_v25  ;;  %v570_v56 = vmul.f32 %v388_v27, %v388_v27  ;;  %v531_v59 = vadd.f32 %v388_v27, %v386_v24 }
  0xb2   : > { %v577_v27 = vmul.f32 %v1076_v25, %v1076_v25 }
  0xb3   : > { %862 = vst [vmem:[%s1085_s10] sm:$0xff] %v861_v29   ;;  %v601_v60 = vadd.f32 %v570_v56, %v569_v57 }
  0xb4   : > { %941 = vst [vmem:[%s1085_s10 + $0x20] sm:$0xff] %v881_v30  }
  0xb7   : > { %v1095_v32 = vpop.f32.mrf.mxu2  ;;  %v1101_v36 = vpop.f32.mrf.mxu3 }
  0xb8   : > { %v391_v33 = vpop.f32.mrf.mxu0  ;;  %v1097_v34 = vpop.f32.mrf.mxu1  ;;  %v901_v35 = vpack.c.bf16 %v1095_v32, %v1078_v26  ;;  %v921_v37 = vpack.c.bf16 %v1101_v36, %v1091_v31 }
  0xb9   : > { %v571_v58 = vmul.f32 %v391_v33, %v391_v33  ;;  %v532_v62 = vadd.f32 %v531_v59, %v391_v33 }
  0xba   : > { %945 = vst [vmem:[%s1085_s10 + $0x40] sm:$0xff] %v901_v35  }
  0xbb   : > { %949 = vst [vmem:[%s1085_s10 + $0x60] sm:$0xff] %v921_v37   ;;  %v602_v0 = vadd.f32 %v601_v60, %v571_v58 }
  0xbf   : > { %v1107_v38 = vpop.f32.mrf.mxu2  ;;  %v1113_v43 = vpop.f32.mrf.mxu3 }
  0xc0   : > { %v393_v39 = vpop.f32.mrf.mxu0  ;;  %v1109_v40 = vpop.f32.mrf.mxu1 }
  0xc1   : > { %v866_v41 = vpack.c.bf16 %v393_v39, %v391_v33  ;;  %v886_v42 = vpack.c.bf16 %v1109_v40, %v1097_v34  ;;  %v572_v61 = vmul.f32 %v393_v39, %v393_v39  ;;  %v533_v5 = vadd.f32 %v532_v62, %v393_v39 }
  0xc2   : > { %v578_v33 = vmul.f32 %v1087_v28, %v1087_v28  ;;  %v579_v39 = vmul.f32 %v1097_v34, %v1097_v34 }
  0xc3   : > { %938 = vst [vmem:[%s1085_s10 + $0x8] sm:$0xff] %v866_v41   ;;  %v603_v7 = vadd.f32 %v602_v0, %v572_v61 }
  0xc4   : > { %942 = vst [vmem:[%s1085_s10 + $0x28] sm:$0xff] %v886_v42  }
  0xc7   : > { %v1117_v44 = vpop.f32.mrf.mxu2  ;;  %v1123_v48 = vpop.f32.mrf.mxu3 }
  0xc8   : > { %v396_v45 = vpop.f32.mrf.mxu0  ;;  %v1119_v46 = vpop.f32.mrf.mxu1  ;;  %v906_v47 = vpack.c.bf16 %v1117_v44, %v1107_v38  ;;  %v926_v49 = vpack.c.bf16 %v1123_v48, %v1113_v43 }
  0xc9   : > { %v573_v1 = vmul.f32 %v396_v45, %v396_v45  ;;  %v534_v10 = vadd.f32 %v533_v5, %v396_v45 }
  0xca   : > { %946 = vst [vmem:[%s1085_s10 + $0x48] sm:$0xff] %v906_v47   ;;  %v580_v47 = vmul.f32 %v1109_v40, %v1109_v40 }
  0xcb   : > { %950 = vst [vmem:[%s1085_s10 + $0x68] sm:$0xff] %v926_v49   ;;  %v604_v11 = vadd.f32 %v603_v7, %v573_v1  ;;  %v994_v1 = vmov 0.0  }
  0xcc   : > { %530 = vst [vmem:[%s1185_s16] sm:$0xff] %v994_v1 }
  0xcf   : > { %v1129_v50 = vpop.f32.mrf.mxu2  ;;  %v1135_v55 = vpop.f32.mrf.mxu3 }
  0xd0   : > { %v398_v51 = vpop.f32.mrf.mxu0  ;;  %v1131_v52 = vpop.f32.mrf.mxu1 }
  0xd1   : > { %v871_v53 = vpack.c.bf16 %v398_v51, %v396_v45  ;;  %v891_v54 = vpack.c.bf16 %v1131_v52, %v1119_v46  ;;  %v574_v8 = vmul.f32 %v398_v51, %v398_v51  ;;  %v535_v13 = vadd.f32 %v534_v10, %v398_v51 }
  0xd2   : > { %v582_v57 = vmul.f32 %v1131_v52, %v1131_v52 }
  0xd3   : > { %939 = vst [vmem:[%s1085_s10 + $0x10] sm:$0xff] %v871_v53   ;;  %v605_v14 = vadd.f32 %v604_v11, %v574_v8  ;;  %v587_v8 = vmul.f32 %v1107_v38, %v1107_v38  ;;  %v588_v11 = vmul.f32 %v1117_v44, %v1117_v44 }
  0xd4   : > { %943 = vst [vmem:[%s1085_s10 + $0x30] sm:$0xff] %v891_v54  }
  0xd7   : > { %v1139_v63 = vpop.f32.mrf.mxu2  ;;  %v1143_v6 = vpop.f32.mrf.mxu3 }
  0xd8   : > { %v401_v2 = vpop.f32.mrf.mxu0  ;;  %v421_v3 = vpop.f32.mrf.mxu1  ;;  %v911_v4 = vpack.c.bf16 %v1139_v63, %v1129_v50  ;;  %v931_v9 = vpack.c.bf16 %v1143_v6, %v1135_v55 }
  0xd9   : > { %v575_v12 = vmul.f32 %v401_v2, %v401_v2  ;;  %v536_v15 = vadd.f32 %v535_v13, %v401_v2  ;;  %v583_v60 = vmul.f32 %v421_v3, %v421_v3 }
  0xda   : > { %947 = vst [vmem:[%s1085_s10 + $0x50] sm:$0xff] %v911_v4  }
  0xdb   : > { %951 = vst [vmem:[%s1085_s10 + $0x70] sm:$0xff] %v931_v9   ;;  %v606_v17 = vadd.f32 %v605_v14, %v575_v12 }
  0xdf   : > { %v1149_v16 = vpop.f32.mrf.mxu2  ;;  %v1151_v24 = vpop.f32.mrf.mxu3 }
  0xe0   : > { %v403_v18 = vpop.f32.mrf.mxu0  ;;  %v423_v19 = vpop.f32.mrf.mxu1 }
  0xe1   : > { %v876_v20 = vpack.c.bf16 %v403_v18, %v401_v2  ;;  %v537_v21 = vadd.f32 %v536_v15, %v403_v18  ;;  %v576_v22 = vmul.f32 %v403_v18, %v403_v18  ;;  %v896_v23 = vpack.c.bf16 %v423_v19, %v421_v3 }
  0xe2   : > { %v584_v0 = vmul.f32 %v423_v19, %v423_v19  ;;  %v585_v2 = vmul.f32 %v1078_v26, %v1078_v26 }
  0xe3   : > { %940 = vst [vmem:[%s1085_s10 + $0x18] sm:$0xff] %v876_v20   ;;  %v538_v29 = vadd.f32 %v537_v21, %v1076_v25  ;;  %v607_v30 = vadd.f32 %v606_v17, %v576_v22  ;;  %v590_v17 = vmul.f32 %v1139_v63, %v1139_v63  ;;  %v591_v20 = vmul.f32 %v1149_v16, %v1149_v16 }
  0xe4   : > { %944 = vst [vmem:[%s1085_s10 + $0x38] sm:$0xff] %v896_v23   ;;  %v593_v23 = vmul.f32 %v1091_v31, %v1091_v31 }
  0xe5   : > { %v539_v35 = vadd.f32 %v538_v29, %v1087_v28  ;;  %v608_v37 = vadd.f32 %v607_v30, %v577_v27  ;;  %v594_v29 = vmul.f32 %v1101_v36, %v1101_v36 }
  0xe7   : > { %v540_v41 = vadd.f32 %v539_v35, %v1097_v34  ;;  %v609_v42 = vadd.f32 %v608_v37, %v578_v33  ;;  %v443_v45 = vpop.f32.mrf.mxu2  ;;  %v1170_v53 = vpop.f32.mrf.mxu3  ;;  %v581_v34 = vmul.f32 %v1119_v46, %v1119_v46  ;;  %v595_v33 = vmul.f32 %v1113_v43, %v1113_v43 }
  0xe8   : > { %v916_v25 = vpack.c.bf16 %v443_v45, %v1149_v16  ;;  %v936_v28 = vpack.c.bf16 %v1170_v53, %v1151_v24  ;;  %v592_v22 = vmul.f32 %v443_v45, %v443_v45  ;;  %v596_v37 = vmul.f32 %v1123_v48, %v1123_v48 }
  0xe9   : > { %v610_v49 = vadd.f32 %v609_v42, %v579_v39  ;;  %v541_v51 = vadd.f32 %v540_v41, %v1109_v40 }
  0xea   : > { %948 = vst [vmem:[%s1085_s10 + $0x58] sm:$0xff] %v916_v25   ;;  %v598_v25 = vmul.f32 %v1143_v6, %v1143_v6 }
  0xeb   : > { %v542_v54 = vadd.f32 %v541_v51, %v1119_v46  ;;  %v611_v56 = vadd.f32 %v610_v49, %v580_v47  ;;  %952 = vst [vmem:[%s1085_s10 + $0x78] sm:$0xff] %v936_v28   ;;  %v599_v51 = vmul.f32 %v1151_v24, %v1151_v24 }
  0xed   : > { %v543_v58 = vadd.f32 %v542_v54, %v1131_v52  ;;  %v612_v40 = vadd.f32 %v611_v56, %v581_v34 }
  0xef   : > { %v544_v59 = vadd.f32 %v543_v58, %v421_v3  ;;  %v613_v61 = vadd.f32 %v612_v40, %v582_v57  ;;  %v586_v3 = vmul.f32 %v1095_v32, %v1095_v32 }
  0xf1   : > { %v614_v62 = vadd.f32 %v613_v61, %v583_v60  ;;  %v545_v46 = vadd.f32 %v544_v59, %v423_v19 }
  0xf3   : > { %v546_v52 = vadd.f32 %v545_v46, %v1078_v26  ;;  %v615_v4 = vadd.f32 %v614_v62, %v584_v0  ;;  %v589_v26 = vmul.f32 %v1129_v50, %v1129_v50 }
  0xf5   : > { %v547_v5 = vadd.f32 %v546_v52, %v1095_v32  ;;  %v616_v7 = vadd.f32 %v615_v4, %v585_v2 }
  0xf7   : > { %v548_v9 = vadd.f32 %v547_v5, %v1107_v38  ;;  %v617_v10 = vadd.f32 %v616_v7, %v586_v3 }
  0xf9   : > { %v618_v12 = vadd.f32 %v617_v10, %v587_v8  ;;  %v549_v13 = vadd.f32 %v548_v9, %v1117_v44 }
  0xfb   : > { %v550_v14 = vadd.f32 %v549_v13, %v1129_v50  ;;  %v619_v15 = vadd.f32 %v618_v12, %v588_v11 }
  0xfd   : > { %v551_v32 = vadd.f32 %v550_v14, %v1139_v63  ;;  %v620_v18 = vadd.f32 %v619_v15, %v589_v26 }
  0xff   : > { %v621_v38 = vadd.f32 %v620_v18, %v590_v17  ;;  %v552_v19 = vadd.f32 %v551_v32, %v1149_v16 }
 0x101   : > { %v622_v21 = vadd.f32 %v621_v38, %v591_v20  ;;  %v553_v44 = vadd.f32 %v552_v19, %v443_v45 }
 0x103   : > { %v554_v50 = vadd.f32 %v553_v44, %v1091_v31  ;;  %v623_v27 = vadd.f32 %v622_v21, %v592_v22  ;;  %v597_v31 = vmul.f32 %v1135_v55, %v1135_v55 }
 0x105   : > { %v555_v63 = vadd.f32 %v554_v50, %v1101_v36  ;;  %v624_v30 = vadd.f32 %v623_v27, %v593_v23 }
 0x107   : > { %v556_v16 = vadd.f32 %v555_v63, %v1113_v43  ;;  %v625_v35 = vadd.f32 %v624_v30, %v594_v29 }
 0x109   : > { %v626_v39 = vadd.f32 %v625_v35, %v595_v33  ;;  %v557_v41 = vadd.f32 %v556_v16, %v1123_v48 }
 0x10b   : > { %v558_v42 = vadd.f32 %v557_v41, %v1135_v55  ;;  %v627_v45 = vadd.f32 %v626_v39, %v596_v37  ;;  %v600_v55 = vmul.f32 %v1170_v53, %v1170_v53 }
 0x10d   : > { %v559_v36 = vadd.f32 %v558_v42, %v1143_v6  ;;  %v628_v47 = vadd.f32 %v627_v45, %v597_v31 }
 0x10f   : > { %v629_v43 = vadd.f32 %v628_v47, %v598_v25  ;;  %v560_v49 = vadd.f32 %v559_v36, %v1151_v24 }
 0x111   : > { %v630_v48 = vadd.f32 %v629_v43, %v599_v51  ;;  %v561_v28 = vadd.f32 %v560_v49, %v1170_v53 }
 0x113   : > { %v562_v34 = vrot.slane %v561_v28, 4  ;;  %v631_v54 = vadd.f32 %v630_v48, %v600_v55 }
 0x115   : > { %v563_v56 = vadd.f32 %v562_v34, %v561_v28  ;;  %v632_v57 = vrot.slane %v631_v54, 4 }
 0x117   : > { %v564_v6 = vrot.slane %v563_v56, 2  ;;  %v633_v58 = vadd.f32 %v632_v57, %v631_v54 }
 0x119   : > { %v565_v40 = vadd.f32 %v564_v6, %v563_v56  ;;  %v634_v59 = vrot.slane %v633_v58, 2 }
 0x11b   : > { %v566_v60 = vrot.slane %v565_v40, 1  ;;  %v635_v61 = vadd.f32 %v634_v59, %v633_v58 }
 0x11d   : > { %v567_v62 = vadd.f32 %v566_v60, %v565_v40  ;;  %v636_v24 = vrot.slane %v635_v61, 1 }
 0x11f   : > { %568 = vst [vmem:[%s1185_s16] sm:$0x1] %v567_v62  ;;  %v637_v46 = vadd.f32 %v636_v24, %v635_v61 }
 0x121   : > { %638 = vst [vmem:[%s1185_s16 + $0x1] sm:$0x1] %v637_v46 }
 0x122 PF: > { %s14_s12 = sadd.s32 1, %s992_s12  }
 0x123   : > { %p11_p5 = scmp.ge.s32.totalorder %s14_s12, 4  }
 0x125   :  { %13 = sbr.rel (!%p11_p5) target bundleno = 1 (0x1), region = 70 }

// kernel: bottleneck_forward.10
= control target key start
LH: loop header
LB: loop body
LE: loop exit
PB: predicated region body
PF: predicated region fallthrough
CT: control target
= control target key end

     0   :  { %s817_s12 = smov 0   ;;  %s1031_s0 = inlined_call_operand.vmem [shape: bf16[512,128], index: 0, kind: input, shape index: {}]   ;;  %s1032_s1 = inlined_call_operand.vmem [shape: f32[1,128], index: 1, kind: input, shape index: {}]   ;;  %s1033_s2 = inlined_call_operand.vmem [shape: f32[1,128], index: 2, kind: input, shape index: {}]   ;;  %s1034_s3 = inlined_call_operand.vmem [shape: bf16[512,128], index: 3, kind: output, shape index: {}]  }
   0x1 LB: > { %s593_s13 = sadd.s32 4294967295, %s795_s12   ;;  %p597_p0 = scmp.ge.s32.totalorder %s795_s12, 1  ;;  %s795_s12 = sphi %s817_s12, %s13_s12  }
   0x2   : > { %p138_p1 = scmp.lt.s32.totalorder %s795_s12, 3 }
   0x4   : > { %p139_p2 = pnand %p597_p0, %p138_p1 }
   0x5   : > { %s598_s14 = sshll.u32 (!%p139_p2), %s593_s13, 5  ;;  %s602_s15 = sshll.u32 (!%p139_p2), %s593_s13, 8 }
   0x6   : > { %142 = sbr.rel (%p139_p2) target bundleno = 88 (0x58), region = 32  ;;  %p163_p3 = scmp.lt.s32.totalorder (!%p139_p2), %s598_s14, 63 }
   0xb   : > { %v343_v0 = vlaneseq  ;;  %v825_v1 = vstv %s602_s15  ;;  %s1036_s14 = smov (!%p163_p3, %s598_s14), 63  ;;  %v851_v11 = vld [vmem:[%s1032_s1] ss:$0 sm:$0xff] }
   0xc   : > { %s599_s16 = sshll.u32 %s1036_s14, 2  ;;  %v870_v24 = vld [vmem:[%s1033_s2] ss:$0 sm:$0xff] }
   0xd   : > { %v827_v2 = vshrl.u32 %v343_v0, 7  ;;  %s846_s19 = scalar_lea.vmem %s1031_s0, %s599_s16  ;;  %s892_s26 = scalar_lea.vmem %s1034_s3, %s599_s16 }
   0xe   : > { %v606_v15 = vld [vmem:[%s846_s19] sm:$0xff]   ;;  %v749_v16 = vld [vmem:[%s846_s19 + $0x8] sm:$0xff]   ;;  %v750_v17 = vld [vmem:[%s846_s19 + $0x10] sm:$0xff]  }
   0xf   : > { %v345_v3 = vadd.s32 8, %v827_v2  ;;  %v377_v4 = vadd.s32 %v825_v1, %v827_v2  ;;  %v346_v5 = vadd.s32 16, %v827_v2  ;;  %v347_v6 = vadd.s32 24, %v827_v2  ;;  %v751_v32 = vld [vmem:[%s846_s19 + $0x18] sm:$0xff]   ;;  %v752_v55 = vld [vmem:[%s846_s19 + $0x20] sm:$0xff]   ;;  %v753_v63 = vld [vmem:[%s846_s19 + $0x28] sm:$0xff]  }
  0x10   : > { %v348_v7 = vadd.s32 32, %v827_v2  ;;  %v349_v8 = vadd.s32 40, %v827_v2  ;;  %v350_v9 = vadd.s32 48, %v827_v2  ;;  %v351_v10 = vadd.s32 56, %v827_v2 }
  0x11   : > { %v378_v12 = vadd.s32 %v825_v1, %v345_v3  ;;  %vm409_vm0 = vcmp.lt.s32.totalorder %v377_v4, 128  ;;  %v379_v13 = vadd.s32 %v825_v1, %v346_v5  ;;  %v380_v14 = vadd.s32 %v825_v1, %v347_v6 }
  0x12   : > { %v381_v18 = vadd.s32 %v825_v1, %v348_v7  ;;  %v382_v19 = vadd.s32 %v825_v1, %v349_v8  ;;  %v862_v20 = vadd.s32 %v825_v1, %v350_v9  ;;  %v865_v21 = vadd.s32 %v825_v1, %v351_v10 }
  0x13   : > { %v607_v22 = vunpack.c.l.bf16 %v606_v15  ;;  %v608_v23 = vunpack.c.h.bf16 %v606_v15  ;;  %vm410_vm1 = vcmp.lt.s32.totalorder %v378_v12, 128  ;;  %v611_v25 = vunpack.c.l.bf16 %v749_v16 }
  0x14   : > { %v612_v26 = vunpack.c.h.bf16 %v749_v16  ;;  %vm411_vm2 = vcmp.lt.s32.totalorder %v379_v13, 128  ;;  %vm412_vm3 = vcmp.lt.s32.totalorder %v380_v14, 128  ;;  %v615_v27 = vunpack.c.l.bf16 %v750_v17 }
  0x15   : > { %v242_v28 = vmul.f32 %v851_v11, %v607_v22  ;;  %v243_v29 = vmul.f32 %v851_v11, %v608_v23  ;;  %v244_v30 = vmul.f32 %v851_v11, %v611_v25  ;;  %v616_v31 = vunpack.c.h.bf16 %v750_v17  ;;  %v754_v22 = vld [vmem:[%s846_s19 + $0x30] sm:$0xff]  }
  0x16   : > { %v245_v33 = vmul.f32 %v851_v11, %v612_v26  ;;  %v246_v34 = vmul.f32 %v851_v11, %v615_v27  ;;  %vm413_vm4 = vcmp.lt.s32.totalorder %v381_v18, 128  ;;  %vm414_vm5 = vcmp.lt.s32.totalorder %v382_v19, 128 }
  0x17   : > { %v278_v35 = vadd.f32 %v870_v24, %v242_v28  ;;  %v279_v36 = vadd.f32 %v870_v24, %v243_v29  ;;  %v280_v37 = vadd.f32 %v870_v24, %v244_v30  ;;  %v247_v38 = vmul.f32 %v851_v11, %v616_v31 }
  0x18   : > { %v281_v39 = vadd.f32 %v870_v24, %v245_v33  ;;  %v282_v40 = vadd.f32 %v870_v24, %v246_v34  ;;  %v619_v41 = vunpack.c.l.bf16 %v751_v32  ;;  %v620_v42 = vunpack.c.h.bf16 %v751_v32 }
  0x19   : > { %v310_v43 = vmax.f32 %v278_v35, 0.0  ;;  %v311_v44 = vmax.f32 %v279_v36, 0.0  ;;  %v312_v45 = vmax.f32 %v280_v37, 0.0  ;;  %v283_v46 = vadd.f32 %v870_v24, %v247_v38 }
  0x1a   : > { %v313_v47 = vmax.f32 %v281_v39, 0.0  ;;  %v314_v48 = vmax.f32 %v282_v40, 0.0  ;;  %v248_v49 = vmul.f32 %v851_v11, %v619_v41  ;;  %v249_v50 = vmul.f32 %v851_v11, %v620_v42  ;;  %v755_v41 = vld [vmem:[%s846_s19 + $0x38] sm:$0xff]  }
  0x1b   : > { %v441_v51 = vsel %vm409_vm0, %v310_v43, 0.0  ;;  %v442_v52 = vsel %vm410_vm1, %v311_v44, 0.0  ;;  %v443_v53 = vsel %vm411_vm2, %v312_v45, 0.0  ;;  %v315_v54 = vmax.f32 %v283_v46, 0.0 }
  0x1c   : > { %v672_v56 = vpack.c.bf16 %v442_v52, %v441_v51  ;;  %v444_v57 = vsel %vm412_vm3, %v313_v47, 0.0  ;;  %v445_v58 = vsel %vm413_vm4, %v314_v48, 0.0  ;;  %v284_v59 = vadd.f32 %v870_v24, %v248_v49 }
  0x1d   : > { %v677_v60 = vpack.c.bf16 %v444_v57, %v443_v53  ;;  %v446_v61 = vsel %vm414_vm5, %v315_v54, 0.0  ;;  %v285_v62 = vadd.f32 %v870_v24, %v249_v50  ;;  %vm415_vm6 = vcmp.lt.s32.totalorder %v862_v20, 128  ;;  %v756_v53 = vld [vmem:[%s846_s19 + $0x40] sm:$0xff]  }
  0x1e   : > { %673 = vst [vmem:[%s892_s26] sm:$0xff] %v672_v56   ;;  %v682_v0 = vpack.c.bf16 %v446_v61, %v445_v58  ;;  %v316_v3 = vmax.f32 %v284_v59, 0.0  ;;  %vm416_vm7 = vcmp.lt.s32.totalorder %v865_v21, 128  ;;  %v623_v4 = vunpack.c.l.bf16 %v752_v55 }
  0x1f   : > { %764 = vst [vmem:[%s892_s26 + $0x8] sm:$0xff] %v677_v60   ;;  %v317_v5 = vmax.f32 %v285_v62, 0.0  ;;  %v624_v6 = vunpack.c.h.bf16 %v752_v55  ;;  %v352_v7 = vadd.s32 64, %v827_v2  ;;  %v353_v8 = vadd.s32 72, %v827_v2 }
  0x20   : > { %765 = vst [vmem:[%s892_s26 + $0x10] sm:$0xff] %v682_v0   ;;  %v447_v9 = vsel %vm415_vm6, %v316_v3, 0.0  ;;  %v250_v10 = vmul.f32 %v851_v11, %v623_v4  ;;  %v627_v12 = vunpack.c.l.bf16 %v753_v63  ;;  %v628_v13 = vunpack.c.h.bf16 %v753_v63 }
  0x21   : > { %v448_v14 = vsel %vm416_vm7, %v317_v5, 0.0  ;;  %v251_v15 = vmul.f32 %v851_v11, %v624_v6  ;;  %v385_v16 = vadd.s32 %v825_v1, %v352_v7  ;;  %v386_v17 = vadd.s32 %v825_v1, %v353_v8  ;;  %v757_v6 = vld [vmem:[%s846_s19 + $0x48] sm:$0xff]  }
  0x22   : > { %v687_v18 = vpack.c.bf16 %v448_v14, %v447_v9  ;;  %v286_v19 = vadd.f32 %v870_v24, %v250_v10  ;;  %v252_v20 = vmul.f32 %v851_v11, %v627_v12  ;;  %v253_v21 = vmul.f32 %v851_v11, %v628_v13 }
  0x23   : > { %v287_v23 = vadd.f32 %v870_v24, %v251_v15  ;;  %vm417_vm8 = vcmp.lt.s32.totalorder %v385_v16, 128  ;;  %vm418_vm9 = vcmp.lt.s32.totalorder %v386_v17, 128  ;;  %v354_v25 = vadd.s32 80, %v827_v2 }
  0x24   : > { %766 = vst [vmem:[%s892_s26 + $0x18] sm:$0xff] %v687_v18   ;;  %v318_v26 = vmax.f32 %v286_v19, 0.0  ;;  %v288_v27 = vadd.f32 %v870_v24, %v252_v20  ;;  %v289_v28 = vadd.f32 %v870_v24, %v253_v21  ;;  %v355_v29 = vadd.s32 88, %v827_v2 }
  0x25   : > { %v319_v30 = vmax.f32 %v287_v23, 0.0  ;;  %v387_v31 = vadd.s32 %v825_v1, %v354_v25  ;;  %v631_v32 = vunpack.c.l.bf16 %v754_v22  ;;  %v632_v33 = vunpack.c.h.bf16 %v754_v22 }
  0x26   : > { %v449_v34 = vsel %vm417_vm8, %v318_v26, 0.0  ;;  %v320_v35 = vmax.f32 %v288_v27, 0.0  ;;  %v321_v36 = vmax.f32 %v289_v28, 0.0  ;;  %v388_v37 = vadd.s32 %v825_v1, %v355_v29  ;;  %v758_v27 = vld [vmem:[%s846_s19 + $0x50] sm:$0xff]  }
  0x27   : > { %v450_v38 = vsel %vm418_vm9, %v319_v30, 0.0  ;;  %vm419_vm10 = vcmp.lt.s32.totalorder %v387_v31, 128  ;;  %v254_v39 = vmul.f32 %v851_v11, %v631_v32  ;;  %v255_v40 = vmul.f32 %v851_v11, %v632_v33 }
  0x28   : > { %v692_v42 = vpack.c.bf16 %v450_v38, %v449_v34  ;;  %vm420_vm11 = vcmp.lt.s32.totalorder %v388_v37, 128  ;;  %v451_v43 = vsel %vm419_vm10, %v320_v35, 0.0  ;;  %v356_v44 = vadd.s32 96, %v827_v2 }
  0x29   : > { %v452_v45 = vsel %vm420_vm11, %v321_v36, 0.0  ;;  %v290_v46 = vadd.f32 %v870_v24, %v254_v39  ;;  %v291_v47 = vadd.f32 %v870_v24, %v255_v40  ;;  %v357_v48 = vadd.s32 104, %v827_v2 }
  0x2a   : > { %767 = vst [vmem:[%s892_s26 + $0x20] sm:$0xff] %v692_v42   ;;  %v697_v49 = vpack.c.bf16 %v452_v45, %v451_v43  ;;  %v389_v50 = vadd.s32 %v825_v1, %v356_v44  ;;  %v635_v51 = vunpack.c.l.bf16 %v755_v41  ;;  %v636_v52 = vunpack.c.h.bf16 %v755_v41  ;;  %v759_v42 = vld [vmem:[%s846_s19 + $0x58] sm:$0xff]  }
  0x2b   : > { %v322_v54 = vmax.f32 %v290_v46, 0.0  ;;  %v323_v55 = vmax.f32 %v291_v47, 0.0  ;;  %v390_v56 = vadd.s32 %v825_v1, %v357_v48  ;;  %v358_v57 = vadd.s32 112, %v827_v2 }
  0x2c   : > { %768 = vst [vmem:[%s892_s26 + $0x28] sm:$0xff] %v697_v49   ;;  %vm421_vm12 = vcmp.lt.s32.totalorder %v389_v50, 128  ;;  %v256_v58 = vmul.f32 %v851_v11, %v635_v51  ;;  %v257_v59 = vmul.f32 %v851_v11, %v636_v52  ;;  %v359_v60 = vadd.s32 120, %v827_v2 }
  0x2d   : > { %vm422_vm13 = vcmp.lt.s32.totalorder %v390_v56, 128  ;;  %v453_v61 = vsel %vm421_vm12, %v322_v54, 0.0  ;;  %v391_v62 = vadd.s32 %v825_v1, %v358_v57  ;;  %v639_v63 = vunpack.c.l.bf16 %v756_v53  ;;  %v760_v57 = vld [vmem:[%s846_s19 + $0x60] sm:$0xff]  }
  0x2e   : > { %v454_v0 = vsel %vm422_vm13, %v323_v55, 0.0  ;;  %v292_v3 = vadd.f32 %v870_v24, %v256_v58  ;;  %v293_v4 = vadd.f32 %v870_v24, %v257_v59  ;;  %v392_v5 = vadd.s32 %v825_v1, %v359_v60 }
  0x2f   : > { %v702_v7 = vpack.c.bf16 %v454_v0, %v453_v61  ;;  %vm423_vm14 = vcmp.lt.s32.totalorder %v391_v62, 128  ;;  %v640_v8 = vunpack.c.h.bf16 %v756_v53  ;;  %v258_v9 = vmul.f32 %v851_v11, %v639_v63 }
  0x30   : > { %v324_v10 = vmax.f32 %v292_v3, 0.0  ;;  %v325_v12 = vmax.f32 %v293_v4, 0.0  ;;  %vm424_vm15 = vcmp.lt.s32.totalorder %v392_v5, 128  ;;  %v360_v13 = vadd.s32 128, %v827_v2 }
  0x31   : > { %769 = vst [vmem:[%s892_s26 + $0x30] sm:$0xff] %v702_v7   ;;  %v259_v14 = vmul.f32 %v851_v11, %v640_v8  ;;  %v294_v15 = vadd.f32 %v870_v24, %v258_v9  ;;  %v361_v16 = vadd.s32 136, %v827_v2  ;;  %v643_v17 = vunpack.c.l.bf16 %v757_v6 }
  0x32   : > { %v455_v18 = vsel %vm423_vm14, %v324_v10, 0.0  ;;  %v456_v19 = vsel %vm424_vm15, %v325_v12, 0.0  ;;  %v393_v20 = vadd.s32 %v825_v1, %v360_v13  ;;  %v644_v21 = vunpack.c.h.bf16 %v757_v6  ;;  %v761_v10 = vld [vmem:[%s846_s19 + $0x68] sm:$0xff]  }
  0x33   : > { %v707_v22 = vpack.c.bf16 %v456_v19, %v455_v18  ;;  %v295_v23 = vadd.f32 %v870_v24, %v259_v14  ;;  %v326_v25 = vmax.f32 %v294_v15, 0.0  ;;  %v394_v26 = vadd.s32 %v825_v1, %v361_v16 }
  0x34   : > { %vm425_vm0 = vcmp.lt.s32.totalorder %v393_v20, 128  ;;  %v260_v28 = vmul.f32 %v851_v11, %v643_v17  ;;  %v261_v29 = vmul.f32 %v851_v11, %v644_v21  ;;  %v362_v30 = vadd.s32 144, %v827_v2 }
  0x35   : > { %770 = vst [vmem:[%s892_s26 + $0x38] sm:$0xff] %v707_v22   ;;  %v327_v31 = vmax.f32 %v295_v23, 0.0  ;;  %vm426_vm1 = vcmp.lt.s32.totalorder %v394_v26, 128  ;;  %v457_v32 = vsel %vm425_vm0, %v326_v25, 0.0  ;;  %v363_v33 = vadd.s32 152, %v827_v2 }
  0x36   : > { %v296_v34 = vadd.f32 %v870_v24, %v260_v28  ;;  %v297_v35 = vadd.f32 %v870_v24, %v261_v29  ;;  %v395_v36 = vadd.s32 %v825_v1, %v362_v30  ;;  %v647_v37 = vunpack.c.l.bf16 %v758_v27 }
  0x37   : > { %v458_v38 = vsel %vm426_vm1, %v327_v31, 0.0  ;;  %v396_v39 = vadd.s32 %v825_v1, %v363_v33  ;;  %v648_v40 = vunpack.c.h.bf16 %v758_v27  ;;  %v364_v41 = vadd.s32 160, %v827_v2  ;;  %v762_v31 = vld [vmem:[%s846_s19 + $0x70] sm:$0xff]  }
  0x38   : > { %v712_v43 = vpack.c.bf16 %v458_v38, %v457_v32  ;;  %v328_v44 = vmax.f32 %v296_v34, 0.0  ;;  %v329_v45 = vmax.f32 %v297_v35, 0.0  ;;  %vm427_vm2 = vcmp.lt.s32.totalorder %v395_v36, 128 }
  0x39   : > { %vm428_vm3 = vcmp.lt.s32.totalorder %v396_v39, 128  ;;  %v262_v46 = vmul.f32 %v851_v11, %v647_v37  ;;  %v263_v47 = vmul.f32 %v851_v11, %v648_v40  ;;  %v365_v48 = vadd.s32 168, %v827_v2 }
  0x3a   : > { %771 = vst [vmem:[%s892_s26 + $0x40] sm:$0xff] %v712_v43   ;;  %v459_v49 = vsel %vm427_vm2, %v328_v44, 0.0  ;;  %v460_v50 = vsel %vm428_vm3, %v329_v45, 0.0  ;;  %v397_v51 = vadd.s32 %v825_v1, %v364_v41  ;;  %v651_v52 = vunpack.c.l.bf16 %v759_v42 }
  0x3b   : > { %v717_v53 = vpack.c.bf16 %v460_v50, %v459_v49  ;;  %v298_v54 = vadd.f32 %v870_v24, %v262_v46  ;;  %v299_v55 = vadd.f32 %v870_v24, %v263_v47  ;;  %v398_v56 = vadd.s32 %v825_v1, %v365_v48  ;;  %v763_v46 = vld [vmem:[%s846_s19 + $0x78] sm:$0xff]  }
  0x3c   : > { %vm429_vm4 = vcmp.lt.s32.totalorder %v397_v51, 128  ;;  %v652_v58 = vunpack.c.h.bf16 %v759_v42  ;;  %v264_v59 = vmul.f32 %v851_v11, %v651_v52  ;;  %v366_v60 = vadd.s32 176, %v827_v2 }
  0x3d   : > { %772 = vst [vmem:[%s892_s26 + $0x48] sm:$0xff] %v717_v53   ;;  %v330_v61 = vmax.f32 %v298_v54, 0.0  ;;  %v331_v62 = vmax.f32 %v299_v55, 0.0  ;;  %vm430_vm5 = vcmp.lt.s32.totalorder %v398_v56, 128  ;;  %v367_v63 = vadd.s32 184, %v827_v2 }
  0x3e   : > { %v265_v0 = vmul.f32 %v851_v11, %v652_v58  ;;  %v300_v3 = vadd.f32 %v870_v24, %v264_v59  ;;  %v399_v4 = vadd.s32 %v825_v1, %v366_v60  ;;  %v655_v5 = vunpack.c.l.bf16 %v760_v57 }
  0x3f   : > { %v461_v6 = vsel %vm429_vm4, %v330_v61, 0.0  ;;  %v462_v7 = vsel %vm430_vm5, %v331_v62, 0.0  ;;  %v400_v8 = vadd.s32 %v825_v1, %v367_v63  ;;  %v656_v9 = vunpack.c.h.bf16 %v760_v57 }
  0x40   : > { %v722_v12 = vpack.c.bf16 %v462_v7, %v461_v6  ;;  %v301_v13 = vadd.f32 %v870_v24, %v265_v0  ;;  %v332_v14 = vmax.f32 %v300_v3, 0.0  ;;  %vm431_vm6 = vcmp.lt.s32.totalorder %v399_v4, 128 }
  0x41   : > { %vm432_vm7 = vcmp.lt.s32.totalorder %v400_v8, 128  ;;  %v266_v15 = vmul.f32 %v851_v11, %v655_v5  ;;  %v267_v16 = vmul.f32 %v851_v11, %v656_v9  ;;  %v368_v17 = vadd.s32 192, %v827_v2 }
  0x42   : > { %773 = vst [vmem:[%s892_s26 + $0x50] sm:$0xff] %v722_v12   ;;  %v333_v18 = vmax.f32 %v301_v13, 0.0  ;;  %v463_v19 = vsel %vm431_vm6, %v332_v14, 0.0  ;;  %v369_v20 = vadd.s32 200, %v827_v2  ;;  %v659_v21 = vunpack.c.l.bf16 %v761_v10 }
  0x43   : > { %v302_v22 = vadd.f32 %v870_v24, %v266_v15  ;;  %v303_v23 = vadd.f32 %v870_v24, %v267_v16  ;;  %v401_v25 = vadd.s32 %v825_v1, %v368_v17  ;;  %v660_v26 = vunpack.c.h.bf16 %v761_v10 }
  0x44   : > { %v464_v27 = vsel %vm432_vm7, %v333_v18, 0.0  ;;  %v402_v28 = vadd.s32 %v825_v1, %v369_v20  ;;  %v268_v29 = vmul.f32 %v851_v11, %v659_v21  ;;  %v370_v30 = vadd.s32 208, %v827_v2 }
  0x45   : > { %v727_v32 = vpack.c.bf16 %v464_v27, %v463_v19  ;;  %v334_v33 = vmax.f32 %v302_v22, 0.0  ;;  %v335_v34 = vmax.f32 %v303_v23, 0.0  ;;  %vm433_vm8 = vcmp.lt.s32.totalorder %v401_v25, 128 }
  0x46   : > { %vm434_vm9 = vcmp.lt.s32.totalorder %v402_v28, 128  ;;  %v269_v35 = vmul.f32 %v851_v11, %v660_v26  ;;  %v304_v36 = vadd.f32 %v870_v24, %v268_v29  ;;  %v371_v37 = vadd.s32 216, %v827_v2 }
  0x47   : > { %774 = vst [vmem:[%s892_s26 + $0x58] sm:$0xff] %v727_v32   ;;  %v465_v38 = vsel %vm433_vm8, %v334_v33, 0.0  ;;  %v466_v39 = vsel %vm434_vm9, %v335_v34, 0.0  ;;  %v403_v40 = vadd.s32 %v825_v1, %v370_v30  ;;  %v663_v41 = vunpack.c.l.bf16 %v762_v31 }
  0x48   : > { %v732_v42 = vpack.c.bf16 %v466_v39, %v465_v38  ;;  %v305_v43 = vadd.f32 %v870_v24, %v269_v35  ;;  %v336_v44 = vmax.f32 %v304_v36, 0.0  ;;  %v404_v45 = vadd.s32 %v825_v1, %v371_v37 }
  0x49   : > { %vm435_vm10 = vcmp.lt.s32.totalorder %v403_v40, 128  ;;  %v664_v47 = vunpack.c.h.bf16 %v762_v31  ;;  %v270_v48 = vmul.f32 %v851_v11, %v663_v41  ;;  %v372_v49 = vadd.s32 224, %v827_v2 }
  0x4a   : > { %775 = vst [vmem:[%s892_s26 + $0x60] sm:$0xff] %v732_v42   ;;  %v337_v50 = vmax.f32 %v305_v43, 0.0  ;;  %vm436_vm11 = vcmp.lt.s32.totalorder %v404_v45, 128  ;;  %v467_v51 = vsel %vm435_vm10, %v336_v44, 0.0  ;;  %v373_v52 = vadd.s32 232, %v827_v2 }
  0x4b   : > { %v271_v53 = vmul.f32 %v851_v11, %v664_v47  ;;  %v306_v54 = vadd.f32 %v870_v24, %v270_v48  ;;  %v405_v55 = vadd.s32 %v825_v1, %v372_v49  ;;  %v667_v56 = vunpack.c.l.bf16 %v763_v46 }
  0x4c   : > { %v468_v57 = vsel %vm436_vm11, %v337_v50, 0.0  ;;  %v406_v58 = vadd.s32 %v825_v1, %v373_v52  ;;  %v668_v59 = vunpack.c.h.bf16 %v763_v46  ;;  %v374_v60 = vadd.s32 240, %v827_v2 }
  0x4d   : > { %v737_v61 = vpack.c.bf16 %v468_v57, %v467_v51  ;;  %v307_v62 = vadd.f32 %v870_v24, %v271_v53  ;;  %v338_v63 = vmax.f32 %v306_v54, 0.0  ;;  %vm437_vm12 = vcmp.lt.s32.totalorder %v405_v55, 128 }
  0x4e   : > { %vm438_vm13 = vcmp.lt.s32.totalorder %v406_v58, 128  ;;  %v272_v0 = vmul.f32 %v851_v11, %v667_v56  ;;  %v273_v3 = vmul.f32 %v851_v11, %v668_v59  ;;  %v375_v4 = vadd.s32 248, %v827_v2 }
  0x4f   : > { %776 = vst [vmem:[%s892_s26 + $0x68] sm:$0xff] %v737_v61   ;;  %v339_v5 = vmax.f32 %v307_v62, 0.0  ;;  %v469_v6 = vsel %vm437_vm12, %v338_v63, 0.0  ;;  %v407_v7 = vadd.s32 %v825_v1, %v374_v60 }
  0x50   : > { %v308_v8 = vadd.f32 %v870_v24, %v272_v0  ;;  %v309_v9 = vadd.f32 %v870_v24, %v273_v3  ;;  %v408_v10 = vadd.s32 %v825_v1, %v375_v4 }
  0x51   : > { %v470_v12 = vsel %vm438_vm13, %v339_v5, 0.0  ;;  %vm439_vm14 = vcmp.lt.s32.totalorder %v407_v7, 128 }
  0x52   : > { %v742_v13 = vpack.c.bf16 %v470_v12, %v469_v6  ;;  %v340_v14 = vmax.f32 %v308_v8, 0.0  ;;  %v341_v15 = vmax.f32 %v309_v9, 0.0  ;;  %vm440_vm15 = vcmp.lt.s32.totalorder %v408_v10, 128 }
  0x54   : > { %777 = vst [vmem:[%s892_s26 + $0x70] sm:$0xff] %v742_v13   ;;  %v471_v2 = vsel %vm439_vm14, %v340_v14, 0.0  ;;  %v472_v11 = vsel %vm440_vm15, %v341_v15, 0.0 }
  0x55   : > { %v747_v16 = vpack.c.bf16 %v472_v11, %v471_v2 }
  0x57   : > { %778 = vst [vmem:[%s892_s26 + $0x78] sm:$0xff] %v747_v16  }
  0x58 PF: > { %s13_s12 = sadd.s32 1, %s795_s12  }
  0x59   : > { %p10_p4 = scmp.ge.s32.totalorder %s13_s12, 4  }
  0x5b   :  { %12 = sbr.rel (!%p10_p4) target bundleno = 1 (0x1), region = 62 }

// kernel: bottleneck_forward.9
= control target key start
LH: loop header
LB: loop body
LE: loop exit
PB: predicated region body
PF: predicated region fallthrough
CT: control target
= control target key end

     0   :  { %s3971_s12 = smov 0   ;;  %s4721_s0 = inlined_call_operand.vmem [shape: bf16[512,1152], index: 0, kind: input, shape index: {}]   ;;  %s4722_s1 = inlined_call_operand.vmem [shape: bf16[1152,128], index: 1, kind: input, shape index: {}]   ;;  %s4723_s2 = inlined_call_operand.vmem [shape: bf16[512,128], index: 2, kind: output, shape index: {0}]   ;;  %s4724_s3 = inlined_call_operand.vmem [shape: f32[16,128], index: 3, kind: output, shape index: {1}]  }
   0x1 LB: > { %s3977_s13 = sadd.s32 4294967295, %s3948_s12   ;;  %p2725_p0 = scmp.ge.s32.totalorder %s3948_s12, 1  ;;  %s3948_s12 = sphi %s3971_s12, %s14_s12  }
   0x2   : > { %p142_p1 = scmp.lt.s32.totalorder %s3948_s12, 3 }
   0x4   : > { %p143_p2 = pnand %p2725_p0, %p142_p1 }
   0x5   : > { %s2726_s20 = sshll.u32 (!%p143_p2), %s3977_s13, 5  ;;  %p184_p4 = scmp.lt.s32.totalorder (!%p143_p2), %s3977_s13, 1 }
   0x6   : > { %146 = sbr.rel (%p143_p2) target bundleno = 766 (0x2fe), region = 28  ;;  %p172_p3 = scmp.lt.s32.totalorder (!%p143_p2), %s2726_s20, 63 }
   0xb   : > { %v3748_v0 = vld [vmem:[%s4722_s1 + $0x38] sm:$0xff]  ;;  %v3747_v1 = vld [vmem:[%s4722_s1 + $0x30] sm:$0xff]  ;;  %v3746_v2 = vld [vmem:[%s4722_s1 + $0x28] sm:$0xff]  ;;  %s4726_s20 = smov (!%p172_p3, %s2726_s20), 63  ;;  %s4728_s13 = smov (!%p184_p4, %s3977_s13), 1 }
   0xc   : > { %3908 = vmatpush.bf16.msra.mxu1 %v3748_v0  ;;  %3909 = vmatpush.bf16.msra.mxu2 %v3748_v0  ;;  %v3745_v3 = vld [vmem:[%s4722_s1 + $0x20] sm:$0xff]  ;;  %v3744_v4 = vld [vmem:[%s4722_s1 + $0x18] sm:$0xff]  ;;  %v3743_v5 = vld [vmem:[%s4722_s1 + $0x10] sm:$0xff]  ;;  %s3932_s27 = smul.u32 36, %s4726_s20  ;;  %s2729_s24 = sshll.u32 %s4726_s20, 2 }
   0xd   : > { %3910 = vmatpush.bf16.msra.mxu3 %v3748_v0  ;;  %1660 = vmatpush.bf16.msra.mxu0 %v3748_v0  ;;  %v3742_v6 = vld [vmem:[%s4722_s1 + $0x8] sm:$0xff]  ;;  %v3741_v7 = vld [vmem:[%s4722_s1] sm:$0xff]  ;;  %v3764_v16 = vld [vmem:[%s4722_s1 + $0xb8] sm:$0xff]  ;;  %s2730_s20 = sshll.u32 %s4728_s13, 3 }
   0xe   : > { %s4009_s5 = scalar_lea.vmem %s4721_s0, %s3932_s27  ;;  %v3772_v17 = vld [vmem:[%s4722_s1 + $0xf8] sm:$0xff]  ;;  %v3763_v24 = vld [vmem:[%s4722_s1 + $0xb0] sm:$0xff]  ;;  %v3762_v28 = vld [vmem:[%s4722_s1 + $0xa8] sm:$0xff]  ;;  %s4612_s27 = scalar_lea.vmem %s4723_s2, %s2729_s24 }
   0xf   : > { %v2877_v8 = vld [vmem:[%s4009_s5 + $0x120] sm:$0xf]  ;;  %v3637_v9 = vld [vmem:[%s4009_s5 + $0x140] sm:$0xf0]  ;;  %v3756_v22 = vld [vmem:[%s4722_s1 + $0x78] sm:$0xff]  ;;  %s4707_s29 = scalar_lea.vmem %s4724_s3, %s2730_s20 }
  0x10   : > { %3911 = vmatpush.bf16.msra.mxu1 %v3747_v1  ;;  %3912 = vmatpush.bf16.msra.mxu2 %v3747_v1  ;;  %v3021_v10 = vld [vmem:[%s4009_s5 + $0x240] sm:$0xf]  ;;  %v3673_v11 = vld [vmem:[%s4009_s5 + $0x260] sm:$0xf0]  ;;  %v2878_v18 = vor.u32 %v3637_v9, %v2877_v8  ;;  %v3780_v23 = vld [vmem:[%s4722_s1 + $0x138] sm:$0xff] }
  0x11   : > { %3913 = vmatpush.bf16.msra.mxu3 %v3747_v1  ;;  %1661 = vmatpush.bf16.msra.mxu0 %v3747_v1  ;;  %v3165_v12 = vld [vmem:[%s4009_s5 + $0x360] sm:$0xf]  ;;  %v3709_v13 = vld [vmem:[%s4009_s5 + $0x380] sm:$0xf0]  ;;  %v3022_v19 = vor.u32 %v3673_v11, %v3021_v10  ;;  %v3771_v25 = vld [vmem:[%s4722_s1 + $0xf0] sm:$0xff] }
  0x12   : > { %v2733_v14 = vld [vmem:[%s4009_s5] sm:$0xf]  ;;  %v3601_v15 = vld [vmem:[%s4009_s5 + $0x20] sm:$0xf0]  ;;  %v3166_v20 = vor.u32 %v3709_v13, %v3165_v12  ;;  %v3755_v26 = vld [vmem:[%s4722_s1 + $0x70] sm:$0xff] }
  0x13   : > { %v2734_v21 = vor.u32 %v3601_v15, %v2733_v14  ;;  %v3779_v27 = vld [vmem:[%s4722_s1 + $0x130] sm:$0xff]  ;;  %v3770_v29 = vld [vmem:[%s4722_s1 + $0xe8] sm:$0xff]  ;;  %v3761_v33 = vld [vmem:[%s4722_s1 + $0xa0] sm:$0xff] }
  0x14   : > { %3914 = vmatpush.bf16.msra.mxu1 %v3746_v2  ;;  %3915 = vmatpush.bf16.msra.mxu2 %v3746_v2  ;;  %v3754_v30 = vld [vmem:[%s4722_s1 + $0x68] sm:$0xff]  ;;  %v3769_v34 = vld [vmem:[%s4722_s1 + $0xe0] sm:$0xff]  ;;  %v3760_v44 = vld [vmem:[%s4722_s1 + $0x98] sm:$0xff] }
  0x15   : > { %3916 = vmatpush.bf16.msra.mxu3 %v3746_v2  ;;  %1662 = vmatpush.bf16.msra.mxu0 %v3746_v2  ;;  %v3778_v31 = vld [vmem:[%s4722_s1 + $0x128] sm:$0xff]  ;;  %v3753_v42 = vld [vmem:[%s4722_s1 + $0x60] sm:$0xff]  ;;  %v3768_v45 = vld [vmem:[%s4722_s1 + $0xd8] sm:$0xff] }
  0x16   : > { %v2913_v32 = vld [vmem:[%s4009_s5 + $0x168] sm:$0xf]  ;;  %v3646_v35 = vld [vmem:[%s4009_s5 + $0x188] sm:$0xf0]  ;;  %v3777_v43 = vld [vmem:[%s4722_s1 + $0x120] sm:$0xff] }
  0x17   : > { %v3057_v36 = vld [vmem:[%s4009_s5 + $0x288] sm:$0xf]  ;;  %v3682_v37 = vld [vmem:[%s4009_s5 + $0x2a8] sm:$0xf0]  ;;  %v2914_v46 = vor.u32 %v3646_v35, %v2913_v32  ;;  %v3752_v50 = vld [vmem:[%s4722_s1 + $0x58] sm:$0xff] }
  0x18   : > { %3917 = vmatpush.bf16.msra.mxu1 %v3745_v3  ;;  %3918 = vmatpush.bf16.msra.mxu2 %v3745_v3  ;;  %v3201_v38 = vld [vmem:[%s4009_s5 + $0x3a8] sm:$0xf]  ;;  %v3718_v39 = vld [vmem:[%s4009_s5 + $0x3c8] sm:$0xf0]  ;;  %v3058_v47 = vor.u32 %v3682_v37, %v3057_v36  ;;  %v3776_v51 = vld [vmem:[%s4722_s1 + $0x118] sm:$0xff] }
  0x19   : > { %3919 = vmatpush.bf16.msra.mxu3 %v3745_v3  ;;  %1663 = vmatpush.bf16.msra.mxu0 %v3745_v3  ;;  %v2769_v40 = vld [vmem:[%s4009_s5 + $0x48] sm:$0xf]  ;;  %v3610_v41 = vld [vmem:[%s4009_s5 + $0x68] sm:$0xf0]  ;;  %v3202_v48 = vor.u32 %v3718_v39, %v3201_v38  ;;  %v3759_v52 = vld [vmem:[%s4722_s1 + $0x90] sm:$0xff] }
  0x1a   : > { %v2770_v49 = vor.u32 %v3610_v41, %v2769_v40  ;;  %v3767_v53 = vld [vmem:[%s4722_s1 + $0xd0] sm:$0xff]  ;;  %v3758_v56 = vld [vmem:[%s4722_s1 + $0x88] sm:$0xff]  ;;  %v3757_v61 = vld [vmem:[%s4722_s1 + $0x80] sm:$0xff] }
  0x1b   : > { %v3751_v54 = vld [vmem:[%s4722_s1 + $0x50] sm:$0xff]  ;;  %v3766_v57 = vld [vmem:[%s4722_s1 + $0xc8] sm:$0xff]  ;;  %v3765_v62 = vld [vmem:[%s4722_s1 + $0xc0] sm:$0xff] }
  0x1c   : > { %3920 = vmatpush.bf16.msra.mxu1 %v3744_v4  ;;  %3921 = vmatpush.bf16.msra.mxu2 %v3744_v4  ;;  %v3775_v55 = vld [vmem:[%s4722_s1 + $0x110] sm:$0xff]  ;;  %v3750_v58 = vld [vmem:[%s4722_s1 + $0x48] sm:$0xff]  ;;  %v3796_v12 = vld [vmem:[%s4722_s1 + $0x1b8] sm:$0xff] }
  0x1d   : > { %3922 = vmatpush.bf16.msra.mxu3 %v3744_v4  ;;  %1664 = vmatpush.bf16.msra.mxu0 %v3744_v4  ;;  %v3774_v59 = vld [vmem:[%s4722_s1 + $0x108] sm:$0xff]  ;;  %v2949_v60 = vld [vmem:[%s4009_s5 + $0x1b0] sm:$0xf]  ;;  %v3655_v63 = vld [vmem:[%s4009_s5 + $0x1d0] sm:$0xf0] }
  0x1e   : > { %v3093_v0 = vld [vmem:[%s4009_s5 + $0x2d0] sm:$0xf]  ;;  %v3691_v1 = vld [vmem:[%s4009_s5 + $0x2f0] sm:$0xf0]  ;;  %v2950_v8 = vor.u32 %v3655_v63, %v2949_v60  ;;  %v3804_v13 = vld [vmem:[%s4722_s1 + $0x1f8] sm:$0xff] }
  0x1f   : > { %v3237_v2 = vld [vmem:[%s4009_s5 + $0x3f0] sm:$0xf]  ;;  %v3727_v3 = vld [vmem:[%s4009_s5 + $0x410] sm:$0xf0]  ;;  %v3094_v9 = vor.u32 %v3691_v1, %v3093_v0  ;;  %v3788_v14 = vld [vmem:[%s4722_s1 + $0x178] sm:$0xff] }
  0x20   : > { %3923 = vmatpush.bf16.msra.mxu1 %v3743_v5  ;;  %3924 = vmatpush.bf16.msra.mxu2 %v3743_v5  ;;  %v2805_v4 = vld [vmem:[%s4009_s5 + $0x90] sm:$0xf]  ;;  %v3238_v10 = vor.u32 %v3727_v3, %v3237_v2  ;;  %v3812_v15 = vld [vmem:[%s4722_s1 + $0x238] sm:$0xff]  ;;  %v3598_v32 = vld [vmem:[%s4009_s5 + $0xc] sm:$0xf] }
  0x21   : > { %3925 = vmatpush.bf16.msra.mxu3 %v3743_v5  ;;  %1665 = vmatpush.bf16.msra.mxu0 %v3743_v5  ;;  %v3619_v5 = vld [vmem:[%s4009_s5 + $0xb0] sm:$0xf0]  ;;  %v3616_v60 = vld [vmem:[%s4009_s5 + $0x9c] sm:$0xf]  ;;  %v3621_v63 = vld [vmem:[%s4009_s5 + $0xc0] sm:$0xf0] }
  0x22   : > { %v2806_v11 = vor.u32 %v3619_v5, %v2805_v4  ;;  %v3603_v35 = vld [vmem:[%s4009_s5 + $0x30] sm:$0xf0]  ;;  %v3794_v4 = vld [vmem:[%s4722_s1 + $0x1a8] sm:$0xff] }
  0x23   : > { %v3795_v40 = vld [vmem:[%s4722_s1 + $0x1b0] sm:$0xff]  ;;  %v3802_v5 = vld [vmem:[%s4722_s1 + $0x1e8] sm:$0xff] }
  0x24   : > { %3926 = vmatpush.bf16.msra.mxu1 %v3742_v6  ;;  %3927 = vmatpush.bf16.msra.mxu2 %v3742_v6  ;;  %v3803_v41 = vld [vmem:[%s4722_s1 + $0x1f0] sm:$0xff] }
  0x25   : > { %3928 = vmatpush.bf16.msra.mxu3 %v3742_v6  ;;  %1666 = vmatpush.bf16.msra.mxu0 %v3742_v6  ;;  %v3749_v6 = vld [vmem:[%s4722_s1 + $0x40] sm:$0xff] }
  0x28   : > { %3929 = vmatpush.bf16.msra.mxu1 %v3741_v7  ;;  %3930 = vmatpush.bf16.msra.mxu2 %v3741_v7 }
  0x29   : > { %3931 = vmatpush.bf16.msra.mxu3 %v3741_v7  ;;  %1667 = vmatpush.bf16.msra.mxu0 %v3741_v7  ;;  %v3773_v7 = vld [vmem:[%s4722_s1 + $0x100] sm:$0xff] }
  0x2b   : > { %1688 = vmatmul.bf16.vlgmr.msra.gmra.mxu1 %v2878_v18  ;;  %1708 = vmatmul.bf16.vlgmr.msra.gmra.mxu2 %v3022_v19  ;;  %v3129_v18 = vld [vmem:[%s4009_s5 + $0x318] sm:$0xf]  ;;  %v3700_v19 = vld [vmem:[%s4009_s5 + $0x338] sm:$0xf0] }
  0x2c   : > { %1838 = vmatpush.bf16.msrb.mxu2 %v3764_v16  ;;  %1728 = vmatmul.bf16.vlgmr.msra.gmra.mxu3 %v3166_v20  ;;  %v2985_v16 = vld [vmem:[%s4009_s5 + $0x1f8] sm:$0xf] }
  0x2d   : > { %1927 = vmatpush.bf16.msrb.mxu3 %v3772_v17  ;;  %1668 = vmatmul.bf16.vlgmr.msra.gmra.mxu0 %v2734_v21  ;;  %v3664_v17 = vld [vmem:[%s4009_s5 + $0x218] sm:$0xf0]  ;;  %v3273_v20 = vld [vmem:[%s4009_s5 + $0x438] sm:$0xf] }
  0x2e   : > { %1749 = vmatpush.bf16.msrb.mxu1 %v3756_v22  ;;  %2016 = vmatpush.bf16.msrb.mxu0 %v3780_v23  ;;  %v3736_v21 = vld [vmem:[%s4009_s5 + $0x458] sm:$0xf0]  ;;  %v2841_v22 = vld [vmem:[%s4009_s5 + $0xd8] sm:$0xf] }
  0x2f   : > { %v3628_v23 = vld [vmem:[%s4009_s5 + $0xf8] sm:$0xf0] }
  0x30   : > { %1839 = vmatpush.bf16.msrb.mxu2 %v3763_v24  ;;  %v2986_v24 = vor.u32 %v3664_v17, %v2985_v16 }
  0x31   : > { %1928 = vmatpush.bf16.msrb.mxu3 %v3771_v25  ;;  %v3130_v25 = vor.u32 %v3700_v19, %v3129_v18 }
  0x32   : > { %1750 = vmatpush.bf16.msrb.mxu1 %v3755_v26  ;;  %2017 = vmatpush.bf16.msrb.mxu0 %v3779_v27  ;;  %v3274_v26 = vor.u32 %v3736_v21, %v3273_v20  ;;  %v2842_v27 = vor.u32 %v3628_v23, %v2841_v22  ;;  %v3633_v20 = vld [vmem:[%s4009_s5 + $0x124] sm:$0xf]  ;;  %v2879_v21 = vld [vmem:[%s4009_s5 + $0x144] sm:$0xf0]  ;;  %v3638_v23 = vld [vmem:[%s4009_s5 + $0x148] sm:$0xf0] }
  0x33   : > { %v2885_v22 = vld [vmem:[%s4009_s5 + $0x128] sm:$0xf] }
  0x34   : > { %1840 = vmatpush.bf16.msrb.mxu2 %v3762_v28  ;;  %v3597_v28 = vld [vmem:[%s4009_s5 + $0x4] sm:$0xf] }
  0x35   : > { %1929 = vmatpush.bf16.msrb.mxu3 %v3770_v29  ;;  %v2735_v29 = vld [vmem:[%s4009_s5 + $0x24] sm:$0xf0] }
  0x36   : > { %1751 = vmatpush.bf16.msrb.mxu1 %v3754_v30  ;;  %2018 = vmatpush.bf16.msrb.mxu0 %v3778_v31  ;;  %v2741_v30 = vld [vmem:[%s4009_s5 + $0x8] sm:$0xf]  ;;  %v3602_v31 = vld [vmem:[%s4009_s5 + $0x28] sm:$0xf0]  ;;  %v2738_v36 = vor.u32 %v3597_v28, %v2735_v29  ;;  %v2882_v28 = vor.u32 %v3633_v20, %v2879_v21  ;;  %v2886_v29 = vor.u32 %v3638_v23, %v2885_v22  ;;  %v3784_v20 = vld [vmem:[%s4722_s1 + $0x158] sm:$0xff] }
  0x37   : > { %v2742_v37 = vor.u32 %v3602_v31, %v2741_v30  ;;  %v3808_v21 = vld [vmem:[%s4722_s1 + $0x218] sm:$0xff]  ;;  %v2987_v23 = vld [vmem:[%s4009_s5 + $0x21c] sm:$0xf0] }
  0x38   : > { %1841 = vmatpush.bf16.msrb.mxu2 %v3761_v33  ;;  %v2743_v33 = vld [vmem:[%s4009_s5 + $0x2c] sm:$0xf0]  ;;  %v3660_v22 = vld [vmem:[%s4009_s5 + $0x1fc] sm:$0xf] }
  0x39   : > { %1930 = vmatpush.bf16.msrb.mxu3 %v3769_v34  ;;  %v2749_v34 = vld [vmem:[%s4009_s5 + $0x10] sm:$0xf]  ;;  %v2746_v38 = vor.u32 %v3598_v32, %v2743_v33 }
  0x3a   : > { %1752 = vmatpush.bf16.msrb.mxu1 %v3753_v42  ;;  %2019 = vmatpush.bf16.msrb.mxu0 %v3777_v43  ;;  %v2750_v39 = vor.u32 %v3603_v35, %v2749_v34  ;;  %v3787_v42 = vld [vmem:[%s4722_s1 + $0x170] sm:$0xff]  ;;  %v3793_v34 = vld [vmem:[%s4722_s1 + $0x1a0] sm:$0xff] }
  0x3b   : > { %1693 = vmatmul.bf16.gmra.mxu1 %v2914_v46  ;;  %1713 = vmatmul.bf16.gmra.mxu2 %v3058_v47  ;;  %v3811_v43 = vld [vmem:[%s4722_s1 + $0x230] sm:$0xff]  ;;  %v3801_v35 = vld [vmem:[%s4722_s1 + $0x1e0] sm:$0xff] }
  0x3c   : > { %1842 = vmatpush.bf16.msrb.mxu2 %v3760_v44  ;;  %1733 = vmatmul.bf16.gmra.mxu3 %v3202_v48  ;;  %v3606_v44 = vld [vmem:[%s4009_s5 + $0x4c] sm:$0xf]  ;;  %v2777_v46 = vld [vmem:[%s4009_s5 + $0x50] sm:$0xf]  ;;  %v3611_v47 = vld [vmem:[%s4009_s5 + $0x70] sm:$0xf0] }
  0x3d   : > { %1931 = vmatpush.bf16.msrb.mxu3 %v3768_v45  ;;  %1673 = vmatmul.bf16.gmra.mxu0 %v2770_v49  ;;  %v2771_v45 = vld [vmem:[%s4009_s5 + $0x6c] sm:$0xf0]  ;;  %v3607_v48 = vld [vmem:[%s4009_s5 + $0x54] sm:$0xf]  ;;  %v2779_v49 = vld [vmem:[%s4009_s5 + $0x74] sm:$0xf0] }
  0x3e   : > { %1753 = vmatpush.bf16.msrb.mxu1 %v3752_v50  ;;  %2020 = vmatpush.bf16.msrb.mxu0 %v3776_v51  ;;  %v2785_v50 = vld [vmem:[%s4009_s5 + $0x58] sm:$0xf]  ;;  %v3612_v51 = vld [vmem:[%s4009_s5 + $0x78] sm:$0xf0] }
  0x40   : > { %1843 = vmatpush.bf16.msrb.mxu2 %v3759_v52  ;;  %v2774_v52 = vor.u32 %v3606_v44, %v2771_v45  ;;  %v2921_v44 = vld [vmem:[%s4009_s5 + $0x170] sm:$0xf]  ;;  %v3647_v45 = vld [vmem:[%s4009_s5 + $0x190] sm:$0xf0] }
  0x41   : > { %1932 = vmatpush.bf16.msrb.mxu3 %v3767_v53  ;;  %v2778_v53 = vor.u32 %v3611_v47, %v2777_v46  ;;  %v3643_v46 = vld [vmem:[%s4009_s5 + $0x174] sm:$0xf]  ;;  %v2923_v47 = vld [vmem:[%s4009_s5 + $0x194] sm:$0xf0] }
  0x42   : > { %1754 = vmatpush.bf16.msrb.mxu1 %v3751_v54  ;;  %2021 = vmatpush.bf16.msrb.mxu0 %v3775_v55  ;;  %v2782_v54 = vor.u32 %v3607_v48, %v2779_v49  ;;  %v2786_v55 = vor.u32 %v3612_v51, %v2785_v50  ;;  %v2929_v48 = vld [vmem:[%s4009_s5 + $0x178] sm:$0xf]  ;;  %v3648_v49 = vld [vmem:[%s4009_s5 + $0x198] sm:$0xf0] }
  0x44   : > { %1844 = vmatpush.bf16.msrb.mxu2 %v3758_v56  ;;  %v3615_v56 = vld [vmem:[%s4009_s5 + $0x94] sm:$0xf] }
  0x45   : > { %1933 = vmatpush.bf16.msrb.mxu3 %v3766_v57  ;;  %v2807_v57 = vld [vmem:[%s4009_s5 + $0xb4] sm:$0xf0] }
  0x46   : > { %1755 = vmatpush.bf16.msrb.mxu1 %v3750_v58  ;;  %2022 = vmatpush.bf16.msrb.mxu0 %v3774_v59  ;;  %v2813_v58 = vld [vmem:[%s4009_s5 + $0x98] sm:$0xf]  ;;  %v3620_v59 = vld [vmem:[%s4009_s5 + $0xb8] sm:$0xf0]  ;;  %v2810_v0 = vor.u32 %v3615_v56, %v2807_v57  ;;  %v2930_v56 = vor.u32 %v3648_v49, %v2929_v48  ;;  %v3669_v48 = vld [vmem:[%s4009_s5 + $0x244] sm:$0xf] }
  0x47   : > { %v2814_v1 = vor.u32 %v3620_v59, %v2813_v58  ;;  %v3023_v49 = vld [vmem:[%s4009_s5 + $0x264] sm:$0xf0] }
  0x48   : > { %1845 = vmatpush.bf16.msrb.mxu2 %v3757_v61  ;;  %v2815_v61 = vld [vmem:[%s4009_s5 + $0xbc] sm:$0xf0] }
  0x49   : > { %1934 = vmatpush.bf16.msrb.mxu3 %v3765_v62  ;;  %v2821_v62 = vld [vmem:[%s4009_s5 + $0xa0] sm:$0xf]  ;;  %v2818_v2 = vor.u32 %v3616_v60, %v2815_v61 }
  0x4a   : > { %1756 = vmatpush.bf16.msrb.mxu1 %v3749_v6  ;;  %2023 = vmatpush.bf16.msrb.mxu0 %v3773_v7  ;;  %v2822_v3 = vor.u32 %v3621_v63, %v2821_v62  ;;  %v3786_v6 = vld [vmem:[%s4722_s1 + $0x168] sm:$0xff]  ;;  %v3651_v62 = vld [vmem:[%s4009_s5 + $0x1b4] sm:$0xf]  ;;  %v2951_v63 = vld [vmem:[%s4009_s5 + $0x1d4] sm:$0xf0] }
  0x4b   : > { %1698 = vmatmul.bf16.gmra.mxu1 %v2950_v8  ;;  %1718 = vmatmul.bf16.gmra.mxu2 %v3094_v9  ;;  %v3810_v7 = vld [vmem:[%s4722_s1 + $0x228] sm:$0xff]  ;;  %v3624_v8 = vld [vmem:[%s4009_s5 + $0xdc] sm:$0xf]  ;;  %v2843_v9 = vld [vmem:[%s4009_s5 + $0xfc] sm:$0xf0] }
  0x4c   : > { %1738 = vmatmul.bf16.gmra.mxu3 %v3238_v10  ;;  %2194 = vmatpush.bf16.msra.mxu2 %v3796_v12  ;;  %v2849_v10 = vld [vmem:[%s4009_s5 + $0xe0] sm:$0xf]  ;;  %v3625_v12 = vld [vmem:[%s4009_s5 + $0xe4] sm:$0xf]  ;;  %v2846_v16 = vor.u32 %v3624_v8, %v2843_v9  ;;  %v2954_v8 = vor.u32 %v3651_v62, %v2951_v63  ;;  %v3037_v62 = vld [vmem:[%s4009_s5 + $0x250] sm:$0xf] }
  0x4d   : > { %1678 = vmatmul.bf16.gmra.mxu0 %v2806_v11  ;;  %2283 = vmatpush.bf16.msra.mxu3 %v3804_v13  ;;  %v3629_v11 = vld [vmem:[%s4009_s5 + $0x100] sm:$0xf0]  ;;  %v2851_v13 = vld [vmem:[%s4009_s5 + $0x104] sm:$0xf0]  ;;  %v3675_v63 = vld [vmem:[%s4009_s5 + $0x270] sm:$0xf0] }
  0x4e   : > { %2105 = vmatpush.bf16.msra.mxu1 %v3788_v14  ;;  %2372 = vmatpush.bf16.msra.mxu0 %v3812_v15  ;;  %v2857_v14 = vld [vmem:[%s4009_s5 + $0xe8] sm:$0xf]  ;;  %v3630_v15 = vld [vmem:[%s4009_s5 + $0x108] sm:$0xf0]  ;;  %v2850_v17 = vor.u32 %v3629_v11, %v2849_v10  ;;  %v2854_v18 = vor.u32 %v3625_v12, %v2851_v13 }
  0x4f   : > { %v2858_v19 = vor.u32 %v3630_v15, %v2857_v14  ;;  %v3792_v14 = vld [vmem:[%s4722_s1 + $0x198] sm:$0xff] }
  0x50   : > { %2195 = vmatpush.bf16.msra.mxu2 %v3795_v40  ;;  %v3800_v15 = vld [vmem:[%s4722_s1 + $0x1d8] sm:$0xff] }
  0x51   : > { %2284 = vmatpush.bf16.msra.mxu3 %v3803_v41  ;;  %v3809_v41 = vld [vmem:[%s4722_s1 + $0x220] sm:$0xff] }
  0x52   : > { %2106 = vmatpush.bf16.msra.mxu1 %v3787_v42  ;;  %2373 = vmatpush.bf16.msra.mxu0 %v3811_v43  ;;  %v3642_v42 = vld [vmem:[%s4009_s5 + $0x16c] sm:$0xf]  ;;  %v2915_v43 = vld [vmem:[%s4009_s5 + $0x18c] sm:$0xf0] }
  0x54   : > { %2196 = vmatpush.bf16.msra.mxu2 %v3794_v4  ;;  %v2965_v4 = vld [vmem:[%s4009_s5 + $0x1c0] sm:$0xf] }
  0x55   : > { %2285 = vmatpush.bf16.msra.mxu3 %v3802_v5  ;;  %v3657_v5 = vld [vmem:[%s4009_s5 + $0x1e0] sm:$0xf0] }
  0x56   : > { %2107 = vmatpush.bf16.msra.mxu1 %v3786_v6  ;;  %2374 = vmatpush.bf16.msra.mxu0 %v3810_v7  ;;  %v2966_v12 = vor.u32 %v3657_v5, %v2965_v4 }
  0x58   : > { %2197 = vmatpush.bf16.msra.mxu2 %v3793_v34  ;;  %v2990_v34 = vor.u32 %v3660_v22, %v2987_v23 }
  0x59   : > { %2286 = vmatpush.bf16.msra.mxu3 %v3801_v35 }
  0x5a   : > { %2375 = vmatpush.bf16.msra.mxu0 %v3809_v41 }
  0x5b   : > { %1703 = vmatmul.bf16.gmra.mxu1 %v2986_v24  ;;  %1723 = vmatmul.bf16.gmra.mxu2 %v3130_v25  ;;  %v3634_v24 = vld [vmem:[%s4009_s5 + $0x12c] sm:$0xf]  ;;  %v2887_v25 = vld [vmem:[%s4009_s5 + $0x14c] sm:$0xf0] }
  0x5c   : > { %1743 = vmatmul.bf16.gmra.mxu3 %v3274_v26  ;;  %v2893_v26 = vld [vmem:[%s4009_s5 + $0x130] sm:$0xf]  ;;  %v2890_v31 = vor.u32 %v3634_v24, %v2887_v25  ;;  %2198 = vmatpush.bf16.msra.mxu2 %v3792_v14  ;;  %v2993_v24 = vld [vmem:[%s4009_s5 + $0x200] sm:$0xf]  ;;  %v3665_v25 = vld [vmem:[%s4009_s5 + $0x220] sm:$0xf0] }
  0x5d   : > { %1683 = vmatmul.bf16.gmra.mxu0 %v2842_v27  ;;  %v3639_v27 = vld [vmem:[%s4009_s5 + $0x150] sm:$0xf0]  ;;  %2287 = vmatpush.bf16.msra.mxu3 %v3800_v15  ;;  %v2994_v35 = vor.u32 %v3665_v25, %v2993_v24 }
  0x5e   : > { %v2894_v32 = vor.u32 %v3639_v27, %v2893_v26  ;;  %2376 = vmatpush.bf16.msra.mxu0 %v3808_v21  ;;  %v3661_v26 = vld [vmem:[%s4009_s5 + $0x204] sm:$0xf]  ;;  %v2995_v27 = vld [vmem:[%s4009_s5 + $0x224] sm:$0xf0]  ;;  %v3799_v14 = vld [vmem:[%s4722_s1 + $0x1d0] sm:$0xff] }
  0x5f   : > { %v2998_v41 = vor.u32 %v3661_v26, %v2995_v27  ;;  %v3783_v25 = vld [vmem:[%s4722_s1 + $0x150] sm:$0xff]  ;;  %v3678_v27 = vld [vmem:[%s4009_s5 + $0x28c] sm:$0xf] }
  0x60   : > { %v3807_v26 = vld [vmem:[%s4722_s1 + $0x210] sm:$0xff] }
  0x61   : > { %2288 = vmatpush.bf16.msra.mxu3 %v3799_v14 }
  0x62   : > { %2377 = vmatpush.bf16.msra.mxu0 %v3807_v26  ;;  %v3103_v26 = vld [vmem:[%s4009_s5 + $0x2fc] sm:$0xf0] }
  0x6b   : > { %1757 = vmatmul.bf16.vlgmr.msrb.gmra.mxu1 %v2738_v36  ;;  %1846 = vmatmul.bf16.vlgmr.msrb.gmra.mxu2 %v2742_v37 }
  0x6c   : > { %1935 = vmatmul.bf16.vlgmr.msrb.gmra.mxu3 %v2746_v38  ;;  %v3785_v38 = vld [vmem:[%s4722_s1 + $0x160] sm:$0xff] }
  0x6d   : > { %2024 = vmatmul.bf16.vlgmr.msrb.gmra.mxu0 %v2750_v39  ;;  %2108 = vmatpush.bf16.msra.mxu1 %v3785_v38 }
  0x71   : > { %2109 = vmatpush.bf16.msra.mxu1 %v3784_v20 }
  0x75   : > { %2110 = vmatpush.bf16.msra.mxu1 %v3783_v25  ;;  %v3688_v25 = vld [vmem:[%s4009_s5 + $0x2dc] sm:$0xf] }
  0x7b   : > { %1762 = vmatmul.bf16.gmra.mxu1 %v2774_v52  ;;  %1851 = vmatmul.bf16.gmra.mxu2 %v2778_v53  ;;  %v2918_v52 = vor.u32 %v3642_v42, %v2915_v43  ;;  %v2922_v53 = vor.u32 %v3647_v45, %v2921_v44 }
  0x7c   : > { %1940 = vmatmul.bf16.gmra.mxu3 %v2782_v54 }
  0x7d   : > { %2029 = vmatmul.bf16.gmra.mxu0 %v2786_v55  ;;  %v2926_v55 = vor.u32 %v3643_v46, %v2923_v47 }
  0x8b   : > { %1767 = vmatmul.bf16.gmra.mxu1 %v2810_v0  ;;  %1856 = vmatmul.bf16.gmra.mxu2 %v2814_v1  ;;  %v2957_v0 = vld [vmem:[%s4009_s5 + $0x1b8] sm:$0xf]  ;;  %v3656_v1 = vld [vmem:[%s4009_s5 + $0x1d8] sm:$0xf0] }
  0x8c   : > { %1945 = vmatmul.bf16.gmra.mxu3 %v2818_v2  ;;  %v3652_v2 = vld [vmem:[%s4009_s5 + $0x1bc] sm:$0xf]  ;;  %v2958_v9 = vor.u32 %v3656_v1, %v2957_v0 }
  0x8d   : > { %2034 = vmatmul.bf16.gmra.mxu0 %v2822_v3  ;;  %v2959_v3 = vld [vmem:[%s4009_s5 + $0x1dc] sm:$0xf0] }
  0x8e   : > { %v2962_v11 = vor.u32 %v3652_v2, %v2959_v3  ;;  %v3026_v2 = vor.u32 %v3669_v48, %v3023_v49  ;;  %v3684_v48 = vld [vmem:[%s4009_s5 + $0x2b8] sm:$0xf0] }
  0x9b   : > { %1772 = vmatmul.bf16.gmra.mxu1 %v2846_v16  ;;  %1861 = vmatmul.bf16.gmra.mxu2 %v2850_v17 }
  0x9c   : > { %1950 = vmatmul.bf16.gmra.mxu3 %v2854_v18 }
  0x9d   : > { %2039 = vmatmul.bf16.gmra.mxu0 %v2858_v19 }
  0xa8   : > { %v4218_v30 = vpop.f32.mrf.mxu1 }
  0xaa   : > { %v4220_v33 = vpop.f32.mrf.mxu0 }
  0xab   : > { %1777 = vmatmul.bf16.gmra.mxu1 %v2882_v28  ;;  %1866 = vmatmul.bf16.gmra.mxu2 %v2886_v29  ;;  %v3001_v28 = vld [vmem:[%s4009_s5 + $0x208] sm:$0xf]  ;;  %v3666_v29 = vld [vmem:[%s4009_s5 + $0x228] sm:$0xf0] }
  0xac   : > { %1955 = vmatmul.bf16.gmra.mxu3 %v2890_v31  ;;  %v3002_v42 = vor.u32 %v3666_v29, %v3001_v28  ;;  %v3059_v28 = vld [vmem:[%s4009_s5 + $0x2ac] sm:$0xf0] }
  0xad   : > { %2044 = vmatmul.bf16.gmra.mxu0 %v2894_v32 }
  0xae   : > { %v4228_v36 = vpop.f32.mrf.mxu2 }
  0xaf   : > { %v4230_v37 = vpop.f32.mrf.mxu3 }
  0xb0   : > { %v4235_v39 = vpop.f32.mrf.mxu1 }
  0xb2   : > { %v4237_v40 = vpop.f32.mrf.mxu0 }
  0xb6   : > { %v4250_v50 = vpop.f32.mrf.mxu2 }
  0xb7   : > { %v4252_v51 = vpop.f32.mrf.mxu3 }
  0xb8   : > { %v4254_v54 = vpop.f32.mrf.mxu1 }
  0xba   : > { %v4256_v57 = vpop.f32.mrf.mxu0 }
  0xbb   : > { %1782 = vmatmul.bf16.gmra.mxu1 %v2918_v52  ;;  %1871 = vmatmul.bf16.gmra.mxu2 %v2922_v53  ;;  %v3029_v52 = vld [vmem:[%s4009_s5 + $0x248] sm:$0xf]  ;;  %v3674_v53 = vld [vmem:[%s4009_s5 + $0x268] sm:$0xf0] }
  0xbc   : > { %1960 = vmatmul.bf16.gmra.mxu3 %v2926_v55  ;;  %v3670_v55 = vld [vmem:[%s4009_s5 + $0x24c] sm:$0xf]  ;;  %v3030_v3 = vor.u32 %v3674_v53, %v3029_v52 }
  0xbd   : > { %2049 = vmatmul.bf16.gmra.mxu0 %v2930_v56  ;;  %v3031_v56 = vld [vmem:[%s4009_s5 + $0x26c] sm:$0xf0] }
  0xbe   : > { %v4258_v58 = vpop.f32.mrf.mxu2  ;;  %v3034_v5 = vor.u32 %v3670_v55, %v3031_v56  ;;  %v3062_v55 = vor.u32 %v3678_v27, %v3059_v28  ;;  %v3109_v27 = vld [vmem:[%s4009_s5 + $0x2e0] sm:$0xf]  ;;  %v3693_v28 = vld [vmem:[%s4009_s5 + $0x300] sm:$0xf0] }
  0xbf   : > { %v4260_v59 = vpop.f32.mrf.mxu3 }
  0xc0   : > { %v4262_v60 = vpop.f32.mrf.mxu1 }
  0xc2   : > { %v4264_v61 = vpop.f32.mrf.mxu0 }
  0xc6   : > { %v4274_v6 = vpop.f32.mrf.mxu2 }
  0xc7   : > { %v4276_v7 = vpop.f32.mrf.mxu3 }
  0xc8   : > { %v4278_v10 = vpop.f32.mrf.mxu1 }
  0xca   : > { %v4280_v13 = vpop.f32.mrf.mxu0 }
  0xcb   : > { %1787 = vmatmul.bf16.gmra.mxu1 %v2954_v8  ;;  %1876 = vmatmul.bf16.gmra.mxu2 %v2958_v9  ;;  %v3038_v8 = vor.u32 %v3675_v63, %v3037_v62 }
  0xcc   : > { %1965 = vmatmul.bf16.gmra.mxu3 %v2962_v11 }
  0xcd   : > { %2054 = vmatmul.bf16.gmra.mxu0 %v2966_v12  ;;  %v3791_v12 = vld [vmem:[%s4722_s1 + $0x190] sm:$0xff] }
  0xce   : > { %v4288_v16 = vpop.f32.mrf.mxu2  ;;  %2199 = vmatpush.bf16.msra.mxu2 %v3791_v12 }
  0xcf   : > { %v4290_v17 = vpop.f32.mrf.mxu3 }
  0xd0   : > { %v4292_v18 = vpop.f32.mrf.mxu1 }
  0xd2   : > { %v4294_v19 = vpop.f32.mrf.mxu0 }
  0xd6   : > { %v4310_v31 = vpop.f32.mrf.mxu2 }
  0xd7   : > { %v4312_v32 = vpop.f32.mrf.mxu3 }
  0xd8   : > { %v4314_v38 = vpop.f32.mrf.mxu1 }
  0xda   : > { %v4316_v43 = vpop.f32.mrf.mxu0 }
  0xdb   : > { %1792 = vmatmul.bf16.gmra.mxu1 %v2990_v34  ;;  %1881 = vmatmul.bf16.gmra.mxu2 %v2994_v35  ;;  %v3065_v34 = vld [vmem:[%s4009_s5 + $0x290] sm:$0xf]  ;;  %v3683_v35 = vld [vmem:[%s4009_s5 + $0x2b0] sm:$0xf0] }
  0xdc   : > { %1970 = vmatmul.bf16.gmra.mxu3 %v2998_v41  ;;  %v3679_v41 = vld [vmem:[%s4009_s5 + $0x294] sm:$0xf]  ;;  %v3066_v56 = vor.u32 %v3683_v35, %v3065_v34 }
  0xdd   : > { %2059 = vmatmul.bf16.gmra.mxu0 %v3002_v42  ;;  %v3067_v42 = vld [vmem:[%s4009_s5 + $0x2b4] sm:$0xf0] }
  0xde   : > { %v4318_v44 = vpop.f32.mrf.mxu2  ;;  %v3070_v63 = vor.u32 %v3679_v41, %v3067_v42 }
  0xdf   : > { %v4320_v45 = vpop.f32.mrf.mxu3 }
  0xe0   : > { %v4322_v46 = vpop.f32.mrf.mxu1 }
  0xe2   : > { %v4324_v47 = vpop.f32.mrf.mxu0 }
  0xe6   : > { %v4334_v0 = vpop.f32.mrf.mxu2 }
  0xe7   : > { %v4336_v1 = vpop.f32.mrf.mxu3 }
  0xe8   : > { %v1758_v4 = vpop.f32.mrf.mxu1 }
  0xe9   : > { %v1759_v9 = vadd.f32 %v1758_v4, %v4220_v33 }
  0xea   : > { %v2025_v11 = vpop.f32.mrf.mxu0 }
  0xeb   : > { %1797 = vmatmul.bf16.gmra.mxu1 %v3026_v2  ;;  %1886 = vmatmul.bf16.gmra.mxu2 %v3030_v3 }
  0xec   : > { %1975 = vmatmul.bf16.gmra.mxu3 %v3034_v5 }
  0xed   : > { %2064 = vmatmul.bf16.gmra.mxu0 %v3038_v8 }
  0xee   : > { %v1847_v15 = vpop.f32.mrf.mxu2 }
  0xef   : > { %v1848_v33 = vadd.f32 %v1847_v15, %v1759_v9  ;;  %v1936_v20 = vpop.f32.mrf.mxu3 }
  0xf0   : > { %v1760_v21 = vpop.f32.mrf.mxu1 }
  0xf1   : > { %v1937_v22 = vadd.f32 %v1936_v20, %v1848_v33  ;;  %v1761_v23 = vadd.f32 %v1760_v21, %v4237_v40  ;;  %v3073_v40 = vld [vmem:[%s4009_s5 + $0x298] sm:$0xf]  ;;  %v3687_v20 = vld [vmem:[%s4009_s5 + $0x2d4] sm:$0xf] }
  0xf2   : > { %v2027_v24 = vpop.f32.mrf.mxu0  ;;  %v3074_v2 = vor.u32 %v3684_v48, %v3073_v40  ;;  %v3095_v21 = vld [vmem:[%s4009_s5 + $0x2f4] sm:$0xf0] }
  0xf3   : > { %v4354_v29 = vadd.f32 %v2025_v11, %v1937_v22  ;;  %v3098_v42 = vor.u32 %v3687_v20, %v3095_v21  ;;  %v3137_v20 = vld [vmem:[%s4009_s5 + $0x320] sm:$0xf]  ;;  %v3701_v21 = vld [vmem:[%s4009_s5 + $0x340] sm:$0xf0] }
  0xf6   : > { %v1849_v49 = vpop.f32.mrf.mxu2 }
  0xf7   : > { %v1850_v52 = vadd.f32 %v1849_v49, %v1761_v23  ;;  %v1938_v53 = vpop.f32.mrf.mxu3  ;;  %v3101_v23 = vld [vmem:[%s4009_s5 + $0x2d8] sm:$0xf]  ;;  %v3106_v49 = vor.u32 %v3688_v25, %v3103_v26  ;;  %v3702_v25 = vld [vmem:[%s4009_s5 + $0x348] sm:$0xf0] }
  0xf8   : > { %v1763_v62 = vpop.f32.mrf.mxu1 }
  0xf9   : > { %v1939_v3 = vadd.f32 %v1938_v53, %v1850_v52  ;;  %v1764_v4 = vadd.f32 %v1763_v62, %v4256_v57  ;;  %v3110_v52 = vor.u32 %v3693_v28, %v3109_v27  ;;  %v3790_v62 = vld [vmem:[%s4722_s1 + $0x188] sm:$0xff] }
  0xfa   : > { %v2030_v5 = vpop.f32.mrf.mxu0  ;;  %2200 = vmatpush.bf16.msra.mxu2 %v3790_v62 }
  0xfb   : > { %1802 = vmatmul.bf16.gmra.mxu1 %v3062_v55  ;;  %1891 = vmatmul.bf16.gmra.mxu2 %v3066_v56  ;;  %v4363_v8 = vadd.f32 %v2027_v24, %v1939_v3  ;;  %v3692_v24 = vld [vmem:[%s4009_s5 + $0x2f8] sm:$0xf0] }
  0xfc   : > { %1980 = vmatmul.bf16.gmra.mxu3 %v3070_v63  ;;  %v3102_v40 = vor.u32 %v3692_v24, %v3101_v23  ;;  %v3798_v63 = vld [vmem:[%s4722_s1 + $0x1c8] sm:$0xff]  ;;  %v3697_v23 = vld [vmem:[%s4009_s5 + $0x324] sm:$0xf] }
  0xfd   : > { %2069 = vmatmul.bf16.gmra.mxu0 %v3074_v2  ;;  %2289 = vmatpush.bf16.msra.mxu3 %v3798_v63  ;;  %v3139_v24 = vld [vmem:[%s4009_s5 + $0x344] sm:$0xf0] }
  0xfe   : > { %v1852_v9 = vpop.f32.mrf.mxu2 }
  0xff   : > { %v1853_v11 = vadd.f32 %v1852_v9, %v1764_v4  ;;  %v1941_v12 = vpop.f32.mrf.mxu3 }
 0x100   : > { %v1765_v14 = vpop.f32.mrf.mxu1 }
 0x101   : > { %v1942_v15 = vadd.f32 %v1941_v12, %v1853_v11  ;;  %v1766_v57 = vadd.f32 %v1765_v14, %v4264_v61  ;;  %v3782_v12 = vld [vmem:[%s4722_s1 + $0x148] sm:$0xff] }
 0x102   : > { %v2032_v33 = vpop.f32.mrf.mxu0  ;;  %v3806_v14 = vld [vmem:[%s4722_s1 + $0x208] sm:$0xff]  ;;  %2111 = vmatpush.bf16.msra.mxu1 %v3782_v12 }
 0x103   : > { %v4368_v22 = vadd.f32 %v2030_v5, %v1942_v15  ;;  %v3696_v15 = vld [vmem:[%s4009_s5 + $0x31c] sm:$0xf]  ;;  %2378 = vmatpush.bf16.msra.mxu0 %v3806_v14  ;;  %v3706_v12 = vld [vmem:[%s4009_s5 + $0x36c] sm:$0xf]  ;;  %v3175_v14 = vld [vmem:[%s4009_s5 + $0x38c] sm:$0xf0] }
 0x106   : > { %v1854_v34 = vpop.f32.mrf.mxu2 }
 0x107   : > { %v1855_v35 = vadd.f32 %v1854_v34, %v1766_v57  ;;  %v1943_v41 = vpop.f32.mrf.mxu3  ;;  %v3131_v57 = vld [vmem:[%s4009_s5 + $0x33c] sm:$0xf0] }
 0x108   : > { %v1768_v48 = vpop.f32.mrf.mxu1  ;;  %v3134_v34 = vor.u32 %v3696_v15, %v3131_v57  ;;  %v3181_v15 = vld [vmem:[%s4009_s5 + $0x370] sm:$0xf]  ;;  %v3711_v57 = vld [vmem:[%s4009_s5 + $0x390] sm:$0xf0] }
 0x109   : > { %v1944_v61 = vadd.f32 %v1943_v41, %v1855_v35  ;;  %v1769_v53 = vadd.f32 %v1768_v48, %v4280_v13  ;;  %v3138_v35 = vor.u32 %v3701_v21, %v3137_v20 }
 0x10a   : > { %v2035_v55 = vpop.f32.mrf.mxu0 }
 0x10b   : > { %1807 = vmatmul.bf16.gmra.mxu1 %v3098_v42  ;;  %1896 = vmatmul.bf16.gmra.mxu2 %v3102_v40  ;;  %v4377_v56 = vadd.f32 %v2032_v33, %v1944_v61  ;;  %v3142_v42 = vor.u32 %v3697_v23, %v3139_v24 }
 0x10c   : > { %1985 = vmatmul.bf16.gmra.mxu3 %v3106_v49 }
 0x10d   : > { %2074 = vmatmul.bf16.gmra.mxu0 %v3110_v52 }
 0x10e   : > { %v1857_v2 = vpop.f32.mrf.mxu2 }
 0x10f   : > { %v1858_v13 = vadd.f32 %v1857_v2, %v1769_v53  ;;  %v1946_v3 = vpop.f32.mrf.mxu3 }
 0x110   : > { %v1770_v4 = vpop.f32.mrf.mxu1 }
 0x111   : > { %v1947_v5 = vadd.f32 %v1946_v3, %v1858_v13  ;;  %v1771_v9 = vadd.f32 %v1770_v4, %v4294_v19  ;;  %v3145_v19 = vld [vmem:[%s4009_s5 + $0x328] sm:$0xf]  ;;  %v3705_v3 = vld [vmem:[%s4009_s5 + $0x364] sm:$0xf] }
 0x112   : > { %v2037_v11 = vpop.f32.mrf.mxu0  ;;  %v3146_v40 = vor.u32 %v3702_v25, %v3145_v19  ;;  %v3167_v4 = vld [vmem:[%s4009_s5 + $0x384] sm:$0xf0] }
 0x113   : > { %v4394_v33 = vadd.f32 %v2035_v55, %v1947_v5  ;;  %v3170_v24 = vor.u32 %v3705_v3, %v3167_v4  ;;  %v3719_v3 = vld [vmem:[%s4009_s5 + $0x3d0] sm:$0xf0] }
 0x114   : > { %v3715_v4 = vld [vmem:[%s4009_s5 + $0x3b4] sm:$0xf] }
 0x116   : > { %v1859_v26 = vpop.f32.mrf.mxu2 }
 0x117   : > { %v1860_v27 = vadd.f32 %v1859_v26, %v1771_v9  ;;  %v1948_v28 = vpop.f32.mrf.mxu3  ;;  %v3173_v9 = vld [vmem:[%s4009_s5 + $0x368] sm:$0xf]  ;;  %v3178_v26 = vor.u32 %v3706_v12, %v3175_v14  ;;  %v3217_v12 = vld [vmem:[%s4009_s5 + $0x3b8] sm:$0xf]  ;;  %v3720_v14 = vld [vmem:[%s4009_s5 + $0x3d8] sm:$0xf0] }
 0x118   : > { %v1773_v41 = vpop.f32.mrf.mxu1 }
 0x119   : > { %v1949_v48 = vadd.f32 %v1948_v28, %v1860_v27  ;;  %v1774_v49 = vadd.f32 %v1773_v41, %v4316_v43  ;;  %v3182_v27 = vor.u32 %v3711_v57, %v3181_v15  ;;  %v3797_v41 = vld [vmem:[%s4722_s1 + $0x1c0] sm:$0xff] }
 0x11a   : > { %v2040_v52 = vpop.f32.mrf.mxu0  ;;  %2290 = vmatpush.bf16.msra.mxu3 %v3797_v41 }
 0x11b   : > { %1812 = vmatmul.bf16.gmra.mxu1 %v3134_v34  ;;  %1901 = vmatmul.bf16.gmra.mxu2 %v3138_v35  ;;  %v4403_v61 = vadd.f32 %v2037_v11, %v1949_v48  ;;  %v3710_v11 = vld [vmem:[%s4009_s5 + $0x388] sm:$0xf0]  ;;  %v3789_v35 = vld [vmem:[%s4722_s1 + $0x180] sm:$0xff] }
 0x11c   : > { %1990 = vmatmul.bf16.gmra.mxu3 %v3142_v42  ;;  %v3174_v19 = vor.u32 %v3710_v11, %v3173_v9  ;;  %2201 = vmatpush.bf16.msra.mxu2 %v3789_v35  ;;  %v3211_v11 = vld [vmem:[%s4009_s5 + $0x3d4] sm:$0xf0] }
 0x11d   : > { %2079 = vmatmul.bf16.gmra.mxu0 %v3146_v40 }
 0x11e   : > { %v1862_v53 = vpop.f32.mrf.mxu2 }
 0x11f   : > { %v1863_v55 = vadd.f32 %v1862_v53, %v1774_v49  ;;  %v1951_v62 = vpop.f32.mrf.mxu3 }
 0x120   : > { %v1775_v63 = vpop.f32.mrf.mxu1 }
 0x121   : > { %v1952_v2 = vadd.f32 %v1951_v62, %v1863_v55  ;;  %v1776_v43 = vadd.f32 %v1775_v63, %v4324_v47  ;;  %v3781_v62 = vld [vmem:[%s4722_s1 + $0x140] sm:$0xff]  ;;  %v3714_v63 = vld [vmem:[%s4009_s5 + $0x3ac] sm:$0xf] }
 0x122   : > { %v2042_v13 = vpop.f32.mrf.mxu0  ;;  %2112 = vmatpush.bf16.msra.mxu1 %v3781_v62  ;;  %v3245_v62 = vld [vmem:[%s4009_s5 + $0x3f8] sm:$0xf] }
 0x123   : > { %v4408_v5 = vadd.f32 %v2040_v52, %v1952_v2  ;;  %v3203_v2 = vld [vmem:[%s4009_s5 + $0x3cc] sm:$0xf0] }
 0x126   : > { %v1864_v20 = vpop.f32.mrf.mxu2 }
 0x127   : > { %v1865_v21 = vadd.f32 %v1864_v20, %v1776_v43  ;;  %v1953_v23 = vpop.f32.mrf.mxu3 }
 0x128   : > { %v1778_v25 = vpop.f32.mrf.mxu1 }
 0x129   : > { %v1954_v47 = vadd.f32 %v1953_v23, %v1865_v21  ;;  %v1779_v42 = vadd.f32 %v1778_v25, %v4218_v30  ;;  %v3805_v30 = vld [vmem:[%s4722_s1 + $0x200] sm:$0xff]  ;;  %v3206_v21 = vor.u32 %v3714_v63, %v3203_v2  ;;  %v3218_v25 = vor.u32 %v3720_v14, %v3217_v12 }
 0x12a   : > { %v2045_v28 = vpop.f32.mrf.mxu0  ;;  %2379 = vmatpush.bf16.msra.mxu0 %v3805_v30  ;;  %v3724_v30 = vld [vmem:[%s4009_s5 + $0x3fc] sm:$0xf]  ;;  %v3247_v2 = vld [vmem:[%s4009_s5 + $0x41c] sm:$0xf0] }
 0x12b   : > { %1817 = vmatmul.bf16.gmra.mxu1 %v3170_v24  ;;  %1906 = vmatmul.bf16.gmra.mxu2 %v3174_v19  ;;  %v4416_v34 = vadd.f32 %v2042_v13, %v1954_v47  ;;  %v3209_v13 = vld [vmem:[%s4009_s5 + $0x3b0] sm:$0xf]  ;;  %v3214_v19 = vor.u32 %v3715_v4, %v3211_v11 }
 0x12c   : > { %1995 = vmatmul.bf16.gmra.mxu3 %v3178_v26  ;;  %v3210_v23 = vor.u32 %v3719_v3, %v3209_v13  ;;  %v3253_v13 = vld [vmem:[%s4009_s5 + $0x400] sm:$0xf]  ;;  %v3729_v3 = vld [vmem:[%s4009_s5 + $0x420] sm:$0xf0] }
 0x12d   : > { %2084 = vmatmul.bf16.gmra.mxu0 %v3182_v27 }
 0x12e   : > { %v1867_v40 = vpop.f32.mrf.mxu2 }
 0x12f   : > { %v1868_v48 = vadd.f32 %v1867_v40, %v1779_v42  ;;  %v1956_v49 = vpop.f32.mrf.mxu3 }
 0x130   : > { %v1780_v52 = vpop.f32.mrf.mxu1 }
 0x131   : > { %v1957_v53 = vadd.f32 %v1956_v49, %v1868_v48  ;;  %v1781_v9 = vadd.f32 %v1780_v52, %v4235_v39  ;;  %v3723_v49 = vld [vmem:[%s4009_s5 + $0x3f4] sm:$0xf]  ;;  %v3239_v52 = vld [vmem:[%s4009_s5 + $0x414] sm:$0xf0] }
 0x132   : > { %v2047_v55 = vpop.f32.mrf.mxu0  ;;  %v3242_v11 = vor.u32 %v3723_v49, %v3239_v52  ;;  %v3283_v52 = vld [vmem:[%s4009_s5 + $0x464] sm:$0xf0] }
 0x133   : > { %v4433_v43 = vadd.f32 %v2045_v28, %v1957_v53 }
 0x136   : > { %v1869_v15 = vpop.f32.mrf.mxu2 }
 0x137   : > { %v1870_v57 = vadd.f32 %v1869_v15, %v1781_v9  ;;  %v1958_v20 = vpop.f32.mrf.mxu3  ;;  %v3250_v15 = vor.u32 %v3724_v30, %v3247_v2 }
 0x138   : > { %v1783_v24 = vpop.f32.mrf.mxu1 }
 0x139   : > { %v1959_v26 = vadd.f32 %v1958_v20, %v1870_v57  ;;  %v1784_v47 = vadd.f32 %v1783_v24, %v4254_v54  ;;  %v3254_v57 = vor.u32 %v3729_v3, %v3253_v13 }
 0x13a   : > { %v2050_v27 = vpop.f32.mrf.mxu0 }
 0x13b   : > { %1822 = vmatmul.bf16.gmra.mxu1 %v3206_v21  ;;  %1911 = vmatmul.bf16.gmra.mxu2 %v3210_v23  ;;  %v4442_v39 = vadd.f32 %v2047_v55, %v1959_v26  ;;  %v3728_v55 = vld [vmem:[%s4009_s5 + $0x418] sm:$0xf0] }
 0x13c   : > { %2000 = vmatmul.bf16.gmra.mxu3 %v3214_v19  ;;  %v3246_v12 = vor.u32 %v3728_v55, %v3245_v62  ;;  %v3289_v62 = vld [vmem:[%s4009_s5 + $0x448] sm:$0xf]  ;;  %v3738_v55 = vld [vmem:[%s4009_s5 + $0x468] sm:$0xf0] }
 0x13d   : > { %2089 = vmatmul.bf16.gmra.mxu0 %v3218_v25 }
 0x13e   : > { %v1872_v28 = vpop.f32.mrf.mxu2 }
 0x13f   : > { %v1873_v35 = vadd.f32 %v1872_v28, %v1784_v47  ;;  %v1961_v41 = vpop.f32.mrf.mxu3  ;;  %v3732_v28 = vld [vmem:[%s4009_s5 + $0x43c] sm:$0xf] }
 0x140   : > { %v1785_v42 = vpop.f32.mrf.mxu1 }
 0x141   : > { %v1962_v40 = vadd.f32 %v1961_v41, %v1873_v35  ;;  %v1786_v63 = vadd.f32 %v1785_v42, %v4262_v60  ;;  %v3275_v35 = vld [vmem:[%s4009_s5 + $0x45c] sm:$0xf0] }
 0x142   : > { %v2052_v48 = vpop.f32.mrf.mxu0  ;;  %v3281_v42 = vld [vmem:[%s4009_s5 + $0x440] sm:$0xf]  ;;  %v3278_v2 = vor.u32 %v3732_v28, %v3275_v35 }
 0x143   : > { %v4447_v53 = vadd.f32 %v2050_v27, %v1962_v40  ;;  %v3737_v40 = vld [vmem:[%s4009_s5 + $0x460] sm:$0xf0]  ;;  %v2759_v35 = vld [vmem:[%s4009_s5 + $0x3c] sm:$0xf0] }
 0x144   : > { %v3282_v13 = vor.u32 %v3737_v40, %v3281_v42  ;;  %v2765_v42 = vld [vmem:[%s4009_s5 + $0x20] sm:$0xf]  ;;  %v3605_v40 = vld [vmem:[%s4009_s5 + $0x40] sm:$0xf0] }
 0x146   : > { %v1874_v54 = vpop.f32.mrf.mxu2 }
 0x147   : > { %v1875_v4 = vadd.f32 %v1874_v54, %v1786_v63  ;;  %v1963_v9 = vpop.f32.mrf.mxu3 }
 0x148   : > { %v1788_v14 = vpop.f32.mrf.mxu1 }
 0x149   : > { %v1964_v20 = vadd.f32 %v1963_v9, %v1875_v4  ;;  %v1789_v23 = vadd.f32 %v1788_v14, %v4278_v10  ;;  %v3290_v4 = vor.u32 %v3738_v55, %v3289_v62 }
 0x14a   : > { %v2055_v21 = vpop.f32.mrf.mxu0 }
 0x14b   : > { %1827 = vmatmul.bf16.gmra.mxu1 %v3242_v11  ;;  %1916 = vmatmul.bf16.gmra.mxu2 %v3246_v12  ;;  %v4456_v60 = vadd.f32 %v2052_v48, %v1964_v20  ;;  %v3733_v48 = vld [vmem:[%s4009_s5 + $0x444] sm:$0xf] }
 0x14c   : > { %2005 = vmatmul.bf16.gmra.mxu3 %v3250_v15  ;;  %v3286_v54 = vor.u32 %v3733_v48, %v3283_v52 }
 0x14d   : > { %2094 = vmatmul.bf16.gmra.mxu0 %v3254_v57 }
 0x14e   : > { %v1877_v24 = vpop.f32.mrf.mxu2 }
 0x14f   : > { %v1878_v19 = vadd.f32 %v1877_v24, %v1789_v23  ;;  %v1966_v25 = vpop.f32.mrf.mxu3  ;;  %v3599_v24 = vld [vmem:[%s4009_s5 + $0x14] sm:$0xf] }
 0x150   : > { %v1790_v26 = vpop.f32.mrf.mxu1 }
 0x151   : > { %v1967_v27 = vadd.f32 %v1966_v25, %v1878_v19  ;;  %v1791_v49 = vadd.f32 %v1790_v26, %v4292_v18  ;;  %v2751_v19 = vld [vmem:[%s4009_s5 + $0x34] sm:$0xf0] }
 0x152   : > { %v2057_v47 = vpop.f32.mrf.mxu0  ;;  %v2757_v26 = vld [vmem:[%s4009_s5 + $0x18] sm:$0xf]  ;;  %v2754_v52 = vor.u32 %v3599_v24, %v2751_v19  ;;  %v2795_v19 = vld [vmem:[%s4009_s5 + $0x84] sm:$0xf0] }
 0x153   : > { %v4461_v41 = vadd.f32 %v2055_v21, %v1967_v27  ;;  %v3604_v27 = vld [vmem:[%s4009_s5 + $0x38] sm:$0xf0] }
 0x154   : > { %v2758_v62 = vor.u32 %v3604_v27, %v2757_v26  ;;  %v2801_v26 = vld [vmem:[%s4009_s5 + $0x68] sm:$0xf]  ;;  %v3614_v27 = vld [vmem:[%s4009_s5 + $0x88] sm:$0xf0] }
 0x156   : > { %v1879_v10 = vpop.f32.mrf.mxu2 }
 0x157   : > { %v1880_v30 = vadd.f32 %v1879_v10, %v1791_v49  ;;  %v1968_v63 = vpop.f32.mrf.mxu3 }
 0x158   : > { %v1793_v3 = vpop.f32.mrf.mxu1 }
 0x159   : > { %v1969_v9 = vadd.f32 %v1968_v63, %v1880_v30  ;;  %v1794_v12 = vadd.f32 %v1793_v3, %v4314_v38  ;;  %v2766_v30 = vor.u32 %v3605_v40, %v2765_v42 }
 0x15a   : > { %v2060_v11 = vpop.f32.mrf.mxu0 }
 0x15b   : > { %1832 = vmatmul.bf16.gmra.mxu1 %v3278_v2  ;;  %1921 = vmatmul.bf16.gmra.mxu2 %v3282_v13  ;;  %v4470_v18 = vadd.f32 %v2057_v47, %v1969_v9  ;;  %v3600_v47 = vld [vmem:[%s4009_s5 + $0x1c] sm:$0xf] }
 0x15c   : > { %2010 = vmatmul.bf16.gmra.mxu3 %v3286_v54  ;;  %v2762_v10 = vor.u32 %v3600_v47, %v2759_v35 }
 0x15d   : > { %2099 = vmatmul.bf16.gmra.mxu0 %v3290_v4 }
 0x15e   : > { %v1882_v14 = vpop.f32.mrf.mxu2 }
 0x15f   : > { %v1883_v15 = vadd.f32 %v1882_v14, %v1794_v12  ;;  %v1971_v57 = vpop.f32.mrf.mxu3  ;;  %v3608_v14 = vld [vmem:[%s4009_s5 + $0x5c] sm:$0xf] }
 0x160   : > { %v1795_v20 = vpop.f32.mrf.mxu1 }
 0x161   : > { %v1972_v21 = vadd.f32 %v1971_v57, %v1883_v15  ;;  %v1796_v28 = vadd.f32 %v1795_v20, %v4322_v46  ;;  %v2787_v15 = vld [vmem:[%s4009_s5 + $0x7c] sm:$0xf0] }
 0x162   : > { %v2062_v23 = vpop.f32.mrf.mxu0  ;;  %v2793_v20 = vld [vmem:[%s4009_s5 + $0x60] sm:$0xf]  ;;  %v2790_v35 = vor.u32 %v3608_v14, %v2787_v15  ;;  %v2831_v15 = vld [vmem:[%s4009_s5 + $0xcc] sm:$0xf0] }
 0x163   : > { %v4475_v25 = vadd.f32 %v2060_v11, %v1972_v21  ;;  %v3613_v21 = vld [vmem:[%s4009_s5 + $0x80] sm:$0xf0] }
 0x164   : > { %v2794_v42 = vor.u32 %v3613_v21, %v2793_v20  ;;  %v2837_v20 = vld [vmem:[%s4009_s5 + $0xb0] sm:$0xf]  ;;  %v3623_v21 = vld [vmem:[%s4009_s5 + $0xd0] sm:$0xf0] }
 0x166   : > { %v1884_v38 = vpop.f32.mrf.mxu2 }
 0x167   : > { %v1885_v48 = vadd.f32 %v1884_v38, %v1796_v28  ;;  %v1973_v49 = vpop.f32.mrf.mxu3 }
 0x168   : > { %v1798_v55 = vpop.f32.mrf.mxu1 }
 0x169   : > { %v1974_v63 = vadd.f32 %v1973_v49, %v1885_v48  ;;  %v1799_v13 = vadd.f32 %v1798_v55, %v4228_v36  ;;  %v2802_v48 = vor.u32 %v3614_v27, %v2801_v26 }
 0x16a   : > { %v2065_v2 = vpop.f32.mrf.mxu0 }
 0x16b   : > { %2113 = vmatmul.bf16.vlgmr.msra.gmra.mxu1 %v2754_v52  ;;  %2202 = vmatmul.bf16.vlgmr.msra.gmra.mxu2 %v2758_v62  ;;  %v4484_v46 = vadd.f32 %v2062_v23, %v1974_v63  ;;  %v3609_v23 = vld [vmem:[%s4009_s5 + $0x64] sm:$0xf] }
 0x16c   : > { %2291 = vmatmul.bf16.vlgmr.msra.gmra.mxu3 %v2762_v10  ;;  %v2798_v38 = vor.u32 %v3609_v23, %v2795_v19 }
 0x16d   : > { %2380 = vmatmul.bf16.vlgmr.msra.gmra.mxu0 %v2766_v30 }
 0x16e   : > { %v1887_v3 = vpop.f32.mrf.mxu2 }
 0x16f   : > { %v1888_v54 = vadd.f32 %v1887_v3, %v1799_v13  ;;  %v1976_v4 = vpop.f32.mrf.mxu3  ;;  %v3617_v3 = vld [vmem:[%s4009_s5 + $0xa4] sm:$0xf] }
 0x170   : > { %v1800_v9 = vpop.f32.mrf.mxu1 }
 0x171   : > { %v1977_v11 = vadd.f32 %v1976_v4, %v1888_v54  ;;  %v1801_v24 = vadd.f32 %v1800_v9, %v4250_v50  ;;  %v2823_v54 = vld [vmem:[%s4009_s5 + $0xc4] sm:$0xf0] }
 0x172   : > { %v2067_v12 = vpop.f32.mrf.mxu0  ;;  %v2829_v9 = vld [vmem:[%s4009_s5 + $0xa8] sm:$0xf]  ;;  %v2826_v19 = vor.u32 %v3617_v3, %v2823_v54  ;;  %v2867_v54 = vld [vmem:[%s4009_s5 + $0x114] sm:$0xf0] }
 0x173   : > { %v4489_v57 = vadd.f32 %v2065_v2, %v1977_v11  ;;  %v3622_v11 = vld [vmem:[%s4009_s5 + $0xc8] sm:$0xf0] }
 0x174   : > { %v2830_v26 = vor.u32 %v3622_v11, %v2829_v9  ;;  %v2873_v9 = vld [vmem:[%s4009_s5 + $0xf8] sm:$0xf]  ;;  %v3632_v11 = vld [vmem:[%s4009_s5 + $0x118] sm:$0xf0] }
 0x176   : > { %v1889_v36 = vpop.f32.mrf.mxu2 }
 0x177   : > { %v1890_v47 = vadd.f32 %v1889_v36, %v1801_v24  ;;  %v1978_v28 = vpop.f32.mrf.mxu3 }
 0x178   : > { %v1803_v40 = vpop.f32.mrf.mxu1 }
 0x179   : > { %v1979_v49 = vadd.f32 %v1978_v28, %v1890_v47  ;;  %v1804_v62 = vadd.f32 %v1803_v40, %v4258_v58  ;;  %v2838_v47 = vor.u32 %v3623_v21, %v2837_v20 }
 0x17a   : > { %v2070_v52 = vpop.f32.mrf.mxu0 }
 0x17b   : > { %2118 = vmatmul.bf16.gmra.mxu1 %v2790_v35  ;;  %2207 = vmatmul.bf16.gmra.mxu2 %v2794_v42  ;;  %v4498_v50 = vadd.f32 %v2067_v12, %v1979_v49  ;;  %v3618_v12 = vld [vmem:[%s4009_s5 + $0xac] sm:$0xf] }
 0x17c   : > { %2296 = vmatmul.bf16.gmra.mxu3 %v2798_v38  ;;  %v2834_v36 = vor.u32 %v3618_v12, %v2831_v15 }
 0x17d   : > { %2385 = vmatmul.bf16.gmra.mxu0 %v2802_v48 }
 0x17e   : > { %v1892_v55 = vpop.f32.mrf.mxu2 }
 0x17f   : > { %v1893_v10 = vadd.f32 %v1892_v55, %v1804_v62  ;;  %v1981_v30 = vpop.f32.mrf.mxu3  ;;  %v3626_v55 = vld [vmem:[%s4009_s5 + $0xec] sm:$0xf] }
 0x180   : > { %v1805_v63 = vpop.f32.mrf.mxu1 }
 0x181   : > { %v1982_v2 = vadd.f32 %v1981_v30, %v1893_v10  ;;  %v1806_v14 = vadd.f32 %v1805_v63, %v4274_v6  ;;  %v2859_v10 = vld [vmem:[%s4009_s5 + $0x10c] sm:$0xf0] }
 0x182   : > { %v2072_v13 = vpop.f32.mrf.mxu0  ;;  %v2865_v63 = vld [vmem:[%s4009_s5 + $0xf0] sm:$0xf]  ;;  %v2862_v15 = vor.u32 %v3626_v55, %v2859_v10  ;;  %v2903_v10 = vld [vmem:[%s4009_s5 + $0x15c] sm:$0xf0] }
 0x183   : > { %v4503_v4 = vadd.f32 %v2070_v52, %v1982_v2  ;;  %v3631_v2 = vld [vmem:[%s4009_s5 + $0x110] sm:$0xf0] }
 0x184   : > { %v2866_v20 = vor.u32 %v3631_v2, %v2865_v63  ;;  %v2909_v63 = vld [vmem:[%s4009_s5 + $0x140] sm:$0xf]  ;;  %v3641_v2 = vld [vmem:[%s4009_s5 + $0x160] sm:$0xf0] }
 0x186   : > { %v1894_v58 = vpop.f32.mrf.mxu2 }
 0x187   : > { %v1895_v23 = vadd.f32 %v1894_v58, %v1806_v14  ;;  %v1983_v24 = vpop.f32.mrf.mxu3 }
 0x188   : > { %v1808_v27 = vpop.f32.mrf.mxu1 }
 0x189   : > { %v1984_v28 = vadd.f32 %v1983_v24, %v1895_v23  ;;  %v1809_v42 = vadd.f32 %v1808_v27, %v4288_v16  ;;  %v2874_v23 = vor.u32 %v3632_v11, %v2873_v9 }
 0x18a   : > { %v2075_v35 = vpop.f32.mrf.mxu0 }
 0x18b   : > { %2123 = vmatmul.bf16.gmra.mxu1 %v2826_v19  ;;  %2212 = vmatmul.bf16.gmra.mxu2 %v2830_v26  ;;  %v4512_v6 = vadd.f32 %v2072_v13, %v1984_v28  ;;  %v3627_v13 = vld [vmem:[%s4009_s5 + $0xf4] sm:$0xf] }
 0x18c   : > { %2301 = vmatmul.bf16.gmra.mxu3 %v2834_v36  ;;  %v2870_v58 = vor.u32 %v3627_v13, %v2867_v54 }
 0x18d   : > { %2390 = vmatmul.bf16.gmra.mxu0 %v2838_v47 }
 0x18e   : > { %v1897_v40 = vpop.f32.mrf.mxu2 }
 0x18f   : > { %v1898_v38 = vadd.f32 %v1897_v40, %v1809_v42  ;;  %v1986_v48 = vpop.f32.mrf.mxu3  ;;  %v3635_v40 = vld [vmem:[%s4009_s5 + $0x134] sm:$0xf] }
 0x190   : > { %v1810_v49 = vpop.f32.mrf.mxu1 }
 0x191   : > { %v1987_v52 = vadd.f32 %v1986_v48, %v1898_v38  ;;  %v1811_v3 = vadd.f32 %v1810_v49, %v4310_v31  ;;  %v2895_v38 = vld [vmem:[%s4009_s5 + $0x154] sm:$0xf0] }
 0x192   : > { %v2077_v62 = vpop.f32.mrf.mxu0  ;;  %v2901_v49 = vld [vmem:[%s4009_s5 + $0x138] sm:$0xf]  ;;  %v2898_v54 = vor.u32 %v3635_v40, %v2895_v38  ;;  %v2939_v38 = vld [vmem:[%s4009_s5 + $0x1a4] sm:$0xf0] }
 0x193   : > { %v4517_v30 = vadd.f32 %v2075_v35, %v1987_v52  ;;  %v3640_v52 = vld [vmem:[%s4009_s5 + $0x158] sm:$0xf0] }
 0x194   : > { %v2902_v9 = vor.u32 %v3640_v52, %v2901_v49  ;;  %v2945_v49 = vld [vmem:[%s4009_s5 + $0x188] sm:$0xf]  ;;  %v3650_v52 = vld [vmem:[%s4009_s5 + $0x1a8] sm:$0xf0] }
 0x196   : > { %v1899_v16 = vpop.f32.mrf.mxu2 }
 0x197   : > { %v1900_v12 = vadd.f32 %v1899_v16, %v1811_v3  ;;  %v1988_v14 = vpop.f32.mrf.mxu3 }
 0x198   : > { %v1813_v21 = vpop.f32.mrf.mxu1 }
 0x199   : > { %v1989_v24 = vadd.f32 %v1988_v14, %v1900_v12  ;;  %v1814_v26 = vadd.f32 %v1813_v21, %v4318_v44  ;;  %v2910_v12 = vor.u32 %v3641_v2, %v2909_v63 }
 0x19a   : > { %v2080_v19 = vpop.f32.mrf.mxu0 }
 0x19b   : > { %2128 = vmatmul.bf16.gmra.mxu1 %v2862_v15  ;;  %2217 = vmatmul.bf16.gmra.mxu2 %v2866_v20  ;;  %v4526_v31 = vadd.f32 %v2077_v62, %v1989_v24  ;;  %v3636_v62 = vld [vmem:[%s4009_s5 + $0x13c] sm:$0xf] }
 0x19c   : > { %2306 = vmatmul.bf16.gmra.mxu3 %v2870_v58  ;;  %v2906_v16 = vor.u32 %v3636_v62, %v2903_v10 }
 0x19d   : > { %2395 = vmatmul.bf16.gmra.mxu0 %v2874_v23 }
 0x19e   : > { %v1902_v27 = vpop.f32.mrf.mxu2 }
 0x19f   : > { %v1903_v36 = vadd.f32 %v1902_v27, %v1814_v26  ;;  %v1991_v47 = vpop.f32.mrf.mxu3  ;;  %v3644_v27 = vld [vmem:[%s4009_s5 + $0x17c] sm:$0xf] }
 0x1a0   : > { %v1815_v28 = vpop.f32.mrf.mxu1 }
 0x1a1   : > { %v1992_v35 = vadd.f32 %v1991_v47, %v1903_v36  ;;  %v1816_v55 = vadd.f32 %v1815_v28, %v4334_v0  ;;  %v2931_v36 = vld [vmem:[%s4009_s5 + $0x19c] sm:$0xf0] }
 0x1a2   : > { %v2082_v42 = vpop.f32.mrf.mxu0  ;;  %v2937_v28 = vld [vmem:[%s4009_s5 + $0x180] sm:$0xf]  ;;  %v2934_v10 = vor.u32 %v3644_v27, %v2931_v36  ;;  %v2975_v36 = vld [vmem:[%s4009_s5 + $0x1ec] sm:$0xf0] }
 0x1a3   : > { %v4531_v48 = vadd.f32 %v2080_v19, %v1992_v35  ;;  %v3649_v35 = vld [vmem:[%s4009_s5 + $0x1a0] sm:$0xf0] }
 0x1a4   : > { %v2938_v63 = vor.u32 %v3649_v35, %v2937_v28  ;;  %v2981_v28 = vld [vmem:[%s4009_s5 + $0x1d0] sm:$0xf]  ;;  %v3659_v35 = vld [vmem:[%s4009_s5 + $0x1f0] sm:$0xf0] }
 0x1a6   : > { %v1904_v44 = vpop.f32.mrf.mxu2 }
 0x1a7   : > { %v1905_v13 = vadd.f32 %v1904_v44, %v1816_v55  ;;  %v1993_v3 = vpop.f32.mrf.mxu3 }
 0x1a8   : > { %v1818_v11 = vpop.f32.mrf.mxu1 }
 0x1a9   : > { %v1994_v14 = vadd.f32 %v1993_v3, %v1905_v13  ;;  %v1819_v20 = vadd.f32 %v1818_v11, %v4230_v37  ;;  %v2946_v13 = vor.u32 %v3650_v52, %v2945_v49 }
 0x1aa   : > { %v2085_v15 = vpop.f32.mrf.mxu0 }
 0x1ab   : > { %2133 = vmatmul.bf16.gmra.mxu1 %v2898_v54  ;;  %2222 = vmatmul.bf16.gmra.mxu2 %v2902_v9  ;;  %v4540_v0 = vadd.f32 %v2082_v42, %v1994_v14  ;;  %v3645_v42 = vld [vmem:[%s4009_s5 + $0x184] sm:$0xf] }
 0x1ac   : > { %2311 = vmatmul.bf16.gmra.mxu3 %v2906_v16  ;;  %v2942_v44 = vor.u32 %v3645_v42, %v2939_v38 }
 0x1ad   : > { %2400 = vmatmul.bf16.gmra.mxu0 %v2910_v12 }
 0x1ae   : > { %v1907_v21 = vpop.f32.mrf.mxu2 }
 0x1af   : > { %v1908_v58 = vadd.f32 %v1907_v21, %v1819_v20  ;;  %v1996_v23 = vpop.f32.mrf.mxu3  ;;  %v3653_v21 = vld [vmem:[%s4009_s5 + $0x1c4] sm:$0xf] }
 0x1b0   : > { %v1820_v24 = vpop.f32.mrf.mxu1 }
 0x1b1   : > { %v1997_v19 = vadd.f32 %v1996_v23, %v1908_v58  ;;  %v1821_v40 = vadd.f32 %v1820_v24, %v4252_v51  ;;  %v2967_v58 = vld [vmem:[%s4009_s5 + $0x1e4] sm:$0xf0] }
 0x1b2   : > { %v2087_v26 = vpop.f32.mrf.mxu0  ;;  %v2973_v24 = vld [vmem:[%s4009_s5 + $0x1c8] sm:$0xf]  ;;  %v2970_v38 = vor.u32 %v3653_v21, %v2967_v58  ;;  %v3011_v58 = vld [vmem:[%s4009_s5 + $0x234] sm:$0xf0] }
 0x1b3   : > { %v4545_v47 = vadd.f32 %v2085_v15, %v1997_v19  ;;  %v3658_v19 = vld [vmem:[%s4009_s5 + $0x1e8] sm:$0xf0] }
 0x1b4   : > { %v2974_v49 = vor.u32 %v3658_v19, %v2973_v24  ;;  %v3017_v24 = vld [vmem:[%s4009_s5 + $0x218] sm:$0xf]  ;;  %v3668_v19 = vld [vmem:[%s4009_s5 + $0x238] sm:$0xf0] }
 0x1b6   : > { %v1909_v37 = vpop.f32.mrf.mxu2 }
 0x1b7   : > { %v1910_v62 = vadd.f32 %v1909_v37, %v1821_v40  ;;  %v1998_v55 = vpop.f32.mrf.mxu3 }
 0x1b8   : > { %v1823_v2 = vpop.f32.mrf.mxu1 }
 0x1b9   : > { %v1999_v3 = vadd.f32 %v1998_v55, %v1910_v62  ;;  %v1824_v9 = vadd.f32 %v1823_v2, %v4260_v59  ;;  %v2982_v62 = vor.u32 %v3659_v35, %v2981_v28 }
 0x1ba   : > { %v2090_v54 = vpop.f32.mrf.mxu0 }
 0x1bb   : > { %2138 = vmatmul.bf16.gmra.mxu1 %v2934_v10  ;;  %2227 = vmatmul.bf16.gmra.mxu2 %v2938_v63  ;;  %v4554_v51 = vadd.f32 %v2087_v26, %v1999_v3  ;;  %v3654_v26 = vld [vmem:[%s4009_s5 + $0x1cc] sm:$0xf] }
 0x1bc   : > { %2316 = vmatmul.bf16.gmra.mxu3 %v2942_v44  ;;  %v2978_v37 = vor.u32 %v3654_v26, %v2975_v36 }
 0x1bd   : > { %2405 = vmatmul.bf16.gmra.mxu0 %v2946_v13 }
 0x1be   : > { %v1912_v11 = vpop.f32.mrf.mxu2 }
 0x1bf   : > { %v1913_v16 = vadd.f32 %v1912_v11, %v1824_v9  ;;  %v2001_v12 = vpop.f32.mrf.mxu3  ;;  %v3662_v11 = vld [vmem:[%s4009_s5 + $0x20c] sm:$0xf] }
 0x1c0   : > { %v1825_v14 = vpop.f32.mrf.mxu1 }
 0x1c1   : > { %v2002_v15 = vadd.f32 %v2001_v12, %v1913_v16  ;;  %v1826_v27 = vadd.f32 %v1825_v14, %v4276_v7  ;;  %v3003_v16 = vld [vmem:[%s4009_s5 + $0x22c] sm:$0xf0] }
 0x1c2   : > { %v2092_v20 = vpop.f32.mrf.mxu0  ;;  %v3009_v14 = vld [vmem:[%s4009_s5 + $0x210] sm:$0xf]  ;;  %v3006_v36 = vor.u32 %v3662_v11, %v3003_v16  ;;  %v3047_v16 = vld [vmem:[%s4009_s5 + $0x27c] sm:$0xf0] }
 0x1c3   : > { %v4559_v23 = vadd.f32 %v2090_v54, %v2002_v15  ;;  %v3667_v15 = vld [vmem:[%s4009_s5 + $0x230] sm:$0xf0] }
 0x1c4   : > { %v3010_v28 = vor.u32 %v3667_v15, %v3009_v14  ;;  %v3053_v14 = vld [vmem:[%s4009_s5 + $0x260] sm:$0xf]  ;;  %v3677_v15 = vld [vmem:[%s4009_s5 + $0x280] sm:$0xf0] }
 0x1c6   : > { %v1914_v59 = vpop.f32.mrf.mxu2 }
 0x1c7   : > { %v1915_v42 = vadd.f32 %v1914_v59, %v1826_v27  ;;  %v2003_v40 = vpop.f32.mrf.mxu3 }
 0x1c8   : > { %v1828_v52 = vpop.f32.mrf.mxu1 }
 0x1c9   : > { %v2004_v55 = vadd.f32 %v2003_v40, %v1915_v42  ;;  %v1829_v63 = vadd.f32 %v1828_v52, %v4290_v17  ;;  %v3018_v42 = vor.u32 %v3668_v19, %v3017_v24 }
 0x1ca   : > { %v2095_v10 = vpop.f32.mrf.mxu0 }
 0x1cb   : > { %2143 = vmatmul.bf16.gmra.mxu1 %v2970_v38  ;;  %2232 = vmatmul.bf16.gmra.mxu2 %v2974_v49  ;;  %v4568_v7 = vadd.f32 %v2092_v20, %v2004_v55  ;;  %v3663_v20 = vld [vmem:[%s4009_s5 + $0x214] sm:$0xf] }
 0x1cc   : > { %2321 = vmatmul.bf16.gmra.mxu3 %v2978_v37  ;;  %v3014_v59 = vor.u32 %v3663_v20, %v3011_v58 }
 0x1cd   : > { %2410 = vmatmul.bf16.gmra.mxu0 %v2982_v62 }
 0x1ce   : > { %v1917_v2 = vpop.f32.mrf.mxu2 }
 0x1cf   : > { %v1918_v44 = vadd.f32 %v1917_v2, %v1829_v63  ;;  %v2006_v13 = vpop.f32.mrf.mxu3  ;;  %v3671_v2 = vld [vmem:[%s4009_s5 + $0x254] sm:$0xf] }
 0x1d0   : > { %v1830_v3 = vpop.f32.mrf.mxu1 }
 0x1d1   : > { %v2007_v54 = vadd.f32 %v2006_v13, %v1918_v44  ;;  %v1831_v21 = vadd.f32 %v1830_v3, %v4312_v32  ;;  %v3039_v44 = vld [vmem:[%s4009_s5 + $0x274] sm:$0xf0] }
 0x1d2   : > { %v2097_v9 = vpop.f32.mrf.mxu0  ;;  %v3045_v3 = vld [vmem:[%s4009_s5 + $0x258] sm:$0xf]  ;;  %v3042_v58 = vor.u32 %v3671_v2, %v3039_v44  ;;  %v3083_v2 = vld [vmem:[%s4009_s5 + $0x2c4] sm:$0xf0] }
 0x1d3   : > { %v4573_v12 = vadd.f32 %v2095_v10, %v2007_v54  ;;  %v3676_v54 = vld [vmem:[%s4009_s5 + $0x278] sm:$0xf0]  ;;  %v3089_v44 = vld [vmem:[%s4009_s5 + $0x2a8] sm:$0xf] }
 0x1d4   : > { %v3046_v24 = vor.u32 %v3676_v54, %v3045_v3  ;;  %v3686_v3 = vld [vmem:[%s4009_s5 + $0x2c8] sm:$0xf0] }
 0x1d6   : > { %v1919_v17 = vpop.f32.mrf.mxu2 }
 0x1d7   : > { %v1920_v26 = vadd.f32 %v1919_v17, %v1831_v21  ;;  %v2008_v27 = vpop.f32.mrf.mxu3 }
 0x1d8   : > { %v1833_v35 = vpop.f32.mrf.mxu1 }
 0x1d9   : > { %v2009_v40 = vadd.f32 %v2008_v27, %v1920_v26  ;;  %v1834_v49 = vadd.f32 %v1833_v35, %v4320_v45  ;;  %v3054_v26 = vor.u32 %v3677_v15, %v3053_v14 }
 0x1da   : > { %v2100_v38 = vpop.f32.mrf.mxu0 }
 0x1db   : > { %2148 = vmatmul.bf16.gmra.mxu1 %v3006_v36  ;;  %2237 = vmatmul.bf16.gmra.mxu2 %v3010_v28  ;;  %v4582_v32 = vadd.f32 %v2097_v9, %v2009_v40  ;;  %v3672_v9 = vld [vmem:[%s4009_s5 + $0x25c] sm:$0xf] }
 0x1dc   : > { %2326 = vmatmul.bf16.gmra.mxu3 %v3014_v59  ;;  %v3050_v17 = vor.u32 %v3672_v9, %v3047_v16 }
 0x1dd   : > { %2415 = vmatmul.bf16.gmra.mxu0 %v3018_v42 }
 0x1de   : > { %v1922_v52 = vpop.f32.mrf.mxu2 }
 0x1df   : > { %v1923_v37 = vadd.f32 %v1922_v52, %v1834_v49  ;;  %v2011_v62 = vpop.f32.mrf.mxu3  ;;  %v3680_v49 = vld [vmem:[%s4009_s5 + $0x29c] sm:$0xf]  ;;  %v3075_v52 = vld [vmem:[%s4009_s5 + $0x2bc] sm:$0xf0] }
 0x1e0   : > { %v1835_v55 = vpop.f32.mrf.mxu1 }
 0x1e1   : > { %v2012_v10 = vadd.f32 %v2011_v62, %v1923_v37  ;;  %v1836_v11 = vadd.f32 %v1835_v55, %v4336_v1  ;;  %v3081_v62 = vld [vmem:[%s4009_s5 + $0x2a0] sm:$0xf]  ;;  %v3685_v55 = vld [vmem:[%s4009_s5 + $0x2c0] sm:$0xf0] }
 0x1e2   : > { %v2102_v63 = vpop.f32.mrf.mxu0  ;;  %v3082_v16 = vor.u32 %v3685_v55, %v3081_v62  ;;  %v3117_v62 = vld [vmem:[%s4009_s5 + $0x2e8] sm:$0xf]  ;;  %v3694_v55 = vld [vmem:[%s4009_s5 + $0x308] sm:$0xf0] }
 0x1e3   : > { %v4587_v13 = vadd.f32 %v2100_v38, %v2012_v10  ;;  %v3681_v10 = vld [vmem:[%s4009_s5 + $0x2a4] sm:$0xf] }
 0x1e6   : > { %v1924_v45 = vpop.f32.mrf.mxu2 }
 0x1e7   : > { %v1925_v20 = vadd.f32 %v1924_v45, %v1836_v11  ;;  %v2013_v21 = vpop.f32.mrf.mxu3  ;;  %v3078_v11 = vor.u32 %v3680_v49, %v3075_v52  ;;  %v3086_v45 = vor.u32 %v3681_v10, %v3083_v2  ;;  %v3689_v52 = vld [vmem:[%s4009_s5 + $0x2e4] sm:$0xf]  ;;  %v3690_v10 = vld [vmem:[%s4009_s5 + $0x2ec] sm:$0xf] }
 0x1e8   : > { %v2114_v19 = vpop.f32.mrf.mxu1 }
 0x1e9   : > { %v2014_v27 = vadd.f32 %v2013_v21, %v1925_v20  ;;  %v2115_v28 = vadd.f32 %v2114_v19, %v4354_v29  ;;  %v3090_v20 = vor.u32 %v3686_v3, %v3089_v44  ;;  %v3119_v44 = vld [vmem:[%s4009_s5 + $0x30c] sm:$0xf0] }
 0x1ea   : > { %v2381_v36 = vpop.f32.mrf.mxu0  ;;  %v3125_v3 = vld [vmem:[%s4009_s5 + $0x2f0] sm:$0xf] }
 0x1eb   : > { %2153 = vmatmul.bf16.gmra.mxu1 %v3042_v58  ;;  %2242 = vmatmul.bf16.gmra.mxu2 %v3046_v24  ;;  %v4596_v1 = vadd.f32 %v2102_v63, %v2014_v27 }
 0x1ec   : > { %2331 = vmatmul.bf16.gmra.mxu3 %v3050_v17 }
 0x1ed   : > { %2420 = vmatmul.bf16.gmra.mxu0 %v3054_v26 }
 0x1ee   : > { %v2203_v35 = vpop.f32.mrf.mxu2 }
 0x1ef   : > { %v2292_v59 = vpop.f32.mrf.mxu3  ;;  %v2204_v42 = vadd.f32 %v2203_v35, %v2115_v28 }
 0x1f0   : > { %v2116_v40 = vpop.f32.mrf.mxu1 }
 0x1f1   : > { %v2293_v37 = vadd.f32 %v2292_v59, %v2204_v42  ;;  %v2117_v63 = vadd.f32 %v2116_v40, %v4363_v8 }
 0x1f2   : > { %v2383_v38 = vpop.f32.mrf.mxu0 }
 0x1f3   : > { %v2382_v14 = vadd.f32 %v2381_v36, %v2293_v37  ;;  %v3111_v37 = vld [vmem:[%s4009_s5 + $0x304] sm:$0xf0] }
 0x1f5   : > { %v2564_v19 = vmul.f32 %v2382_v14, %v2382_v14 }
 0x1f6   : > { %v2205_v54 = vpop.f32.mrf.mxu2 }
 0x1f7   : > { %v2206_v9 = vadd.f32 %v2205_v54, %v2117_v63  ;;  %v2294_v29 = vpop.f32.mrf.mxu3  ;;  %v3695_v54 = vld [vmem:[%s4009_s5 + $0x310] sm:$0xf0] }
 0x1f8   : > { %v2119_v15 = vpop.f32.mrf.mxu1 }
 0x1f9   : > { %v2295_v21 = vadd.f32 %v2294_v29, %v2206_v9  ;;  %v2120_v27 = vadd.f32 %v2119_v15, %v4368_v22  ;;  %v3118_v15 = vor.u32 %v3694_v55, %v3117_v62  ;;  %v3703_v62 = vld [vmem:[%s4009_s5 + $0x350] sm:$0xf0] }
 0x1fa   : > { %v2386_v58 = vpop.f32.mrf.mxu0  ;;  %v3699_v55 = vld [vmem:[%s4009_s5 + $0x334] sm:$0xf] }
 0x1fb   : > { %v2384_v24 = vadd.f32 %v2383_v38, %v2295_v21  ;;  %2158 = vmatmul.bf16.gmra.mxu1 %v3078_v11  ;;  %2247 = vmatmul.bf16.gmra.mxu2 %v3082_v16  ;;  %v3126_v21 = vor.u32 %v3695_v54, %v3125_v3 }
 0x1fc   : > { %2336 = vmatmul.bf16.gmra.mxu3 %v3086_v45 }
 0x1fd   : > { %2425 = vmatmul.bf16.gmra.mxu0 %v3090_v20  ;;  %v3816_v8 = vpack.c.bf16 %v2384_v24, %v2382_v14  ;;  %v2526_v17 = vadd.f32 %v2384_v24, %v2382_v14  ;;  %v2565_v26 = vmul.f32 %v2384_v24, %v2384_v24  ;;  %v3114_v14 = vor.u32 %v3689_v52, %v3111_v37  ;;  %v3698_v52 = vld [vmem:[%s4009_s5 + $0x32c] sm:$0xf]  ;;  %v3153_v37 = vld [vmem:[%s4009_s5 + $0x330] sm:$0xf] }
 0x1fe   : > { %v2208_v36 = vpop.f32.mrf.mxu2  ;;  %v3122_v20 = vor.u32 %v3690_v10, %v3119_v44  ;;  %v3704_v44 = vld [vmem:[%s4009_s5 + $0x358] sm:$0xf0] }
 0x1ff   : > { %3817 = vst [vmem:[%s4612_s27] sm:$0xff] %v3816_v8   ;;  %v2596_v28 = vadd.f32 %v2565_v26, %v2564_v19  ;;  %v2209_v35 = vadd.f32 %v2208_v36, %v2120_v27  ;;  %v2297_v59 = vpop.f32.mrf.mxu3 }
 0x200   : > { %v2121_v42 = vpop.f32.mrf.mxu1 }
 0x201   : > { %v2298_v40 = vadd.f32 %v2297_v59, %v2209_v35  ;;  %v2122_v22 = vadd.f32 %v2121_v42, %v4377_v56 }
 0x202   : > { %v2388_v38 = vpop.f32.mrf.mxu0 }
 0x203   : > { %v2387_v49 = vadd.f32 %v2386_v58, %v2298_v40 }
 0x205   : > { %v2527_v63 = vadd.f32 %v2526_v17, %v2387_v49  ;;  %v2566_v2 = vmul.f32 %v2387_v49, %v2387_v49 }
 0x206   : > { %v2210_v9 = vpop.f32.mrf.mxu2 }
 0x207   : > { %v2597_v29 = vadd.f32 %v2596_v28, %v2566_v2  ;;  %v2211_v11 = vadd.f32 %v2210_v9, %v2122_v22  ;;  %v2299_v16 = vpop.f32.mrf.mxu3  ;;  %v3155_v2 = vld [vmem:[%s4009_s5 + $0x354] sm:$0xf0] }
 0x208   : > { %v2124_v45 = vpop.f32.mrf.mxu1  ;;  %v3161_v22 = vld [vmem:[%s4009_s5 + $0x338] sm:$0xf] }
 0x209   : > { %v2300_v58 = vadd.f32 %v2299_v16, %v2211_v11  ;;  %v2125_v26 = vadd.f32 %v2124_v45, %v4394_v33  ;;  %v3154_v16 = vor.u32 %v3703_v62, %v3153_v37  ;;  %v3162_v45 = vor.u32 %v3704_v44, %v3161_v22 }
 0x20a   : > { %v2391_v24 = vpop.f32.mrf.mxu0 }
 0x20b   : > { %v2389_v19 = vadd.f32 %v2388_v38, %v2300_v58  ;;  %2163 = vmatmul.bf16.gmra.mxu1 %v3114_v14  ;;  %2252 = vmatmul.bf16.gmra.mxu2 %v3118_v15  ;;  %v3158_v15 = vor.u32 %v3699_v55, %v3155_v2  ;;  %v3191_v55 = vld [vmem:[%s4009_s5 + $0x39c] sm:$0xf0] }
 0x20c   : > { %2341 = vmatmul.bf16.gmra.mxu3 %v3122_v20 }
 0x20d   : > { %2430 = vmatmul.bf16.gmra.mxu0 %v3126_v21  ;;  %v3821_v56 = vpack.c.bf16 %v2389_v19, %v2387_v49  ;;  %v2528_v8 = vadd.f32 %v2527_v63, %v2389_v19  ;;  %v2567_v17 = vmul.f32 %v2389_v19, %v2389_v19  ;;  %v3147_v49 = vld [vmem:[%s4009_s5 + $0x34c] sm:$0xf0] }
 0x20e   : > { %v2213_v27 = vpop.f32.mrf.mxu2  ;;  %v3150_v11 = vor.u32 %v3698_v52, %v3147_v49  ;;  %v3712_v52 = vld [vmem:[%s4009_s5 + $0x398] sm:$0xf0] }
 0x20f   : > { %3893 = vst [vmem:[%s4612_s27 + $0x8] sm:$0xff] %v3821_v56   ;;  %v2598_v36 = vadd.f32 %v2597_v29, %v2567_v17  ;;  %v2214_v28 = vadd.f32 %v2213_v27, %v2125_v26  ;;  %v2302_v35 = vpop.f32.mrf.mxu3  ;;  %v3708_v49 = vld [vmem:[%s4009_s5 + $0x37c] sm:$0xf] }
 0x210   : > { %v2126_v59 = vpop.f32.mrf.mxu1 }
 0x211   : > { %v2303_v42 = vadd.f32 %v2302_v35, %v2214_v28  ;;  %v2127_v33 = vadd.f32 %v2126_v59, %v4403_v61 }
 0x212   : > { %v2393_v40 = vpop.f32.mrf.mxu0 }
 0x213   : > { %v2392_v38 = vadd.f32 %v2391_v24, %v2303_v42  ;;  %v3707_v42 = vld [vmem:[%s4009_s5 + $0x374] sm:$0xf] }
 0x215   : > { %v2529_v10 = vadd.f32 %v2528_v8, %v2392_v38  ;;  %v2568_v63 = vmul.f32 %v2392_v38, %v2392_v38 }
 0x216   : > { %v2215_v3 = vpop.f32.mrf.mxu2 }
 0x217   : > { %v2599_v54 = vadd.f32 %v2598_v36, %v2568_v63  ;;  %v2216_v9 = vadd.f32 %v2215_v3, %v2127_v33  ;;  %v2304_v29 = vpop.f32.mrf.mxu3  ;;  %v3713_v63 = vld [vmem:[%s4009_s5 + $0x3a0] sm:$0xf0] }
 0x218   : > { %v2129_v14 = vpop.f32.mrf.mxu1 }
 0x219   : > { %v2305_v20 = vadd.f32 %v2304_v29, %v2216_v9  ;;  %v2130_v56 = vadd.f32 %v2129_v14, %v4408_v5  ;;  %v3194_v29 = vor.u32 %v3708_v49, %v3191_v55  ;;  %v3722_v49 = vld [vmem:[%s4009_s5 + $0x3e8] sm:$0xf0] }
 0x21a   : > { %v2396_v21 = vpop.f32.mrf.mxu0 }
 0x21b   : > { %v2394_v58 = vadd.f32 %v2393_v40, %v2305_v20  ;;  %2168 = vmatmul.bf16.gmra.mxu1 %v3150_v11  ;;  %2257 = vmatmul.bf16.gmra.mxu2 %v3154_v16  ;;  %v3183_v40 = vld [vmem:[%s4009_s5 + $0x394] sm:$0xf0] }
 0x21c   : > { %2346 = vmatmul.bf16.gmra.mxu3 %v3158_v15  ;;  %v3186_v3 = vor.u32 %v3707_v42, %v3183_v40 }
 0x21d   : > { %2435 = vmatmul.bf16.gmra.mxu0 %v3162_v45  ;;  %v3826_v61 = vpack.c.bf16 %v2394_v58, %v2392_v38  ;;  %v2530_v24 = vadd.f32 %v2529_v10, %v2394_v58  ;;  %v2569_v19 = vmul.f32 %v2394_v58, %v2394_v58  ;;  %v3189_v38 = vld [vmem:[%s4009_s5 + $0x378] sm:$0xf]  ;;  %v3197_v10 = vld [vmem:[%s4009_s5 + $0x380] sm:$0xf] }
 0x21e   : > { %v2218_v8 = vpop.f32.mrf.mxu2  ;;  %v3198_v11 = vor.u32 %v3713_v63, %v3197_v10 }
 0x21f   : > { %3894 = vst [vmem:[%s4612_s27 + $0x10] sm:$0xff] %v3826_v61   ;;  %v2600_v17 = vadd.f32 %v2599_v54, %v2569_v19  ;;  %v2219_v26 = vadd.f32 %v2218_v8, %v2130_v56  ;;  %v2307_v27 = vpop.f32.mrf.mxu3  ;;  %v3190_v54 = vor.u32 %v3712_v52, %v3189_v38  ;;  %v3227_v38 = vld [vmem:[%s4009_s5 + $0x3e4] sm:$0xf0] }
 0x220   : > { %v2131_v36 = vpop.f32.mrf.mxu1  ;;  %v3233_v52 = vld [vmem:[%s4009_s5 + $0x3c8] sm:$0xf] }
 0x221   : > { %v2308_v28 = vadd.f32 %v2307_v27, %v2219_v26  ;;  %v2132_v5 = vadd.f32 %v2131_v36, %v4416_v34  ;;  %v3716_v27 = vld [vmem:[%s4009_s5 + $0x3bc] sm:$0xf]  ;;  %v3219_v36 = vld [vmem:[%s4009_s5 + $0x3dc] sm:$0xf0] }
 0x222   : > { %v2398_v35 = vpop.f32.mrf.mxu0  ;;  %v3222_v10 = vor.u32 %v3716_v27, %v3219_v36  ;;  %v3263_v27 = vld [vmem:[%s4009_s5 + $0x42c] sm:$0xf0] }
 0x223   : > { %v2397_v59 = vadd.f32 %v2396_v21, %v2308_v28  ;;  %v3225_v28 = vld [vmem:[%s4009_s5 + $0x3c0] sm:$0xf]  ;;  %v3269_v36 = vld [vmem:[%s4009_s5 + $0x410] sm:$0xf] }
 0x225   : > { %v2531_v37 = vadd.f32 %v2530_v24, %v2397_v59  ;;  %v2570_v62 = vmul.f32 %v2397_v59, %v2397_v59 }
 0x226   : > { %v2220_v33 = vpop.f32.mrf.mxu2 }
 0x227   : > { %v2601_v2 = vadd.f32 %v2600_v17, %v2570_v62  ;;  %v2221_v22 = vadd.f32 %v2220_v33, %v2132_v5  ;;  %v2309_v44 = vpop.f32.mrf.mxu3 }
 0x228   : > { %v2134_v9 = vpop.f32.mrf.mxu1 }
 0x229   : > { %v2310_v16 = vadd.f32 %v2309_v44, %v2221_v22  ;;  %v2135_v21 = vadd.f32 %v2134_v9, %v4433_v43  ;;  %v3234_v22 = vor.u32 %v3722_v49, %v3233_v52 }
 0x22a   : > { %v2401_v14 = vpop.f32.mrf.mxu0 }
 0x22b   : > { %v2399_v15 = vadd.f32 %v2398_v35, %v2310_v16  ;;  %2173 = vmatmul.bf16.gmra.mxu1 %v3186_v3  ;;  %2262 = vmatmul.bf16.gmra.mxu2 %v3190_v54  ;;  %v3721_v35 = vld [vmem:[%s4009_s5 + $0x3e0] sm:$0xf0] }
 0x22c   : > { %2351 = vmatmul.bf16.gmra.mxu3 %v3194_v29  ;;  %v3226_v63 = vor.u32 %v3721_v35, %v3225_v28  ;;  %v3731_v28 = vld [vmem:[%s4009_s5 + $0x430] sm:$0xf0] }
 0x22d   : > { %2440 = vmatmul.bf16.gmra.mxu0 %v3198_v11  ;;  %v3831_v34 = vpack.c.bf16 %v2399_v15, %v2397_v59  ;;  %v2532_v45 = vadd.f32 %v2531_v37, %v2399_v15  ;;  %v2571_v20 = vmul.f32 %v2399_v15, %v2399_v15  ;;  %v3717_v59 = vld [vmem:[%s4009_s5 + $0x3c4] sm:$0xf] }
 0x22e   : > { %v2223_v58 = vpop.f32.mrf.mxu2 }
 0x22f   : > { %3895 = vst [vmem:[%s4612_s27 + $0x18] sm:$0xff] %v3831_v34   ;;  %v2602_v61 = vadd.f32 %v2601_v2, %v2571_v20  ;;  %v2224_v24 = vadd.f32 %v2223_v58, %v2135_v21  ;;  %v2312_v19 = vpop.f32.mrf.mxu3  ;;  %v3230_v2 = vor.u32 %v3717_v59, %v3227_v38 }
 0x230   : > { %v2136_v56 = vpop.f32.mrf.mxu1 }
 0x231   : > { %v2313_v8 = vadd.f32 %v2312_v19, %v2224_v24  ;;  %v2137_v43 = vadd.f32 %v2136_v56, %v4442_v39  ;;  %v3255_v24 = vld [vmem:[%s4009_s5 + $0x424] sm:$0xf0]  ;;  %v3730_v56 = vld [vmem:[%s4009_s5 + $0x428] sm:$0xf0] }
 0x232   : > { %v2403_v17 = vpop.f32.mrf.mxu0  ;;  %v3261_v19 = vld [vmem:[%s4009_s5 + $0x408] sm:$0xf] }
 0x233   : > { %v2402_v26 = vadd.f32 %v2401_v14, %v2313_v8  ;;  %v3726_v8 = vld [vmem:[%s4009_s5 + $0x40c] sm:$0xf]  ;;  %v3262_v38 = vor.u32 %v3730_v56, %v3261_v19 }
 0x234   : > { %v3266_v49 = vor.u32 %v3726_v8, %v3263_v27 }
 0x235   : > { %v2533_v42 = vadd.f32 %v2532_v45, %v2402_v26  ;;  %v2572_v40 = vmul.f32 %v2402_v26, %v2402_v26 }
 0x236   : > { %v2225_v37 = vpop.f32.mrf.mxu2 }
 0x237   : > { %v2603_v62 = vadd.f32 %v2602_v61, %v2572_v40  ;;  %v2226_v5 = vadd.f32 %v2225_v37, %v2137_v43  ;;  %v2314_v55 = vpop.f32.mrf.mxu3  ;;  %v3725_v61 = vld [vmem:[%s4009_s5 + $0x404] sm:$0xf]  ;;  %v3270_v37 = vor.u32 %v3731_v28, %v3269_v36 }
 0x238   : > { %v2139_v33 = vpop.f32.mrf.mxu1  ;;  %v3258_v43 = vor.u32 %v3725_v61, %v3255_v24  ;;  %v3740_v61 = vld [vmem:[%s4009_s5 + $0x478] sm:$0xf0] }
 0x239   : > { %v2315_v44 = vadd.f32 %v2314_v55, %v2226_v5  ;;  %v2140_v11 = vadd.f32 %v2139_v33, %v4447_v53 }
 0x23a   : > { %v2406_v3 = vpop.f32.mrf.mxu0 }
 0x23b   : > { %v2404_v54 = vadd.f32 %v2403_v17, %v2315_v44  ;;  %2178 = vmatmul.bf16.gmra.mxu1 %v3222_v10  ;;  %2267 = vmatmul.bf16.gmra.mxu2 %v3226_v63 }
 0x23c   : > { %2356 = vmatmul.bf16.gmra.mxu3 %v3230_v2 }
 0x23d   : > { %2445 = vmatmul.bf16.gmra.mxu0 %v3234_v22  ;;  %v3836_v39 = vpack.c.bf16 %v2404_v54, %v2402_v26  ;;  %v2534_v9 = vadd.f32 %v2533_v42, %v2404_v54  ;;  %v2573_v29 = vmul.f32 %v2404_v54, %v2404_v54 }
 0x23e   : > { %v2228_v16 = vpop.f32.mrf.mxu2 }
 0x23f   : > { %3896 = vst [vmem:[%s4612_s27 + $0x20] sm:$0xff] %v3836_v39   ;;  %v2604_v14 = vadd.f32 %v2603_v62, %v2573_v29  ;;  %v2229_v15 = vadd.f32 %v2228_v16, %v2140_v11  ;;  %v2317_v34 = vpop.f32.mrf.mxu3  ;;  %v3734_v11 = vld [vmem:[%s4009_s5 + $0x44c] sm:$0xf]  ;;  %v3291_v16 = vld [vmem:[%s4009_s5 + $0x46c] sm:$0xf0] }
 0x240   : > { %v2141_v45 = vpop.f32.mrf.mxu1 }
 0x241   : > { %v2318_v20 = vadd.f32 %v2317_v34, %v2229_v15  ;;  %v2142_v53 = vadd.f32 %v2141_v45, %v4456_v60  ;;  %v3739_v15 = vld [vmem:[%s4009_s5 + $0x470] sm:$0xf0] }
 0x242   : > { %v2408_v21 = vpop.f32.mrf.mxu0  ;;  %v3735_v34 = vld [vmem:[%s4009_s5 + $0x454] sm:$0xf] }
 0x243   : > { %v2407_v58 = vadd.f32 %v2406_v3, %v2318_v20 }
 0x245   : > { %v2535_v17 = vadd.f32 %v2534_v9, %v2407_v58  ;;  %v2574_v26 = vmul.f32 %v2407_v58, %v2407_v58 }
 0x246   : > { %v2230_v35 = vpop.f32.mrf.mxu2 }
 0x247   : > { %v2605_v59 = vadd.f32 %v2604_v14, %v2574_v26  ;;  %v2231_v42 = vadd.f32 %v2230_v35, %v2142_v53  ;;  %v2319_v40 = vpop.f32.mrf.mxu3  ;;  %v3297_v14 = vld [vmem:[%s4009_s5 + $0x450] sm:$0xf] }
 0x248   : > { %v2144_v52 = vpop.f32.mrf.mxu1  ;;  %v3298_v26 = vor.u32 %v3739_v15, %v3297_v14 }
 0x249   : > { %v2320_v62 = vadd.f32 %v2319_v40, %v2231_v42  ;;  %v2145_v33 = vadd.f32 %v2144_v52, %v4461_v41 }
 0x24a   : > { %v2411_v5 = vpop.f32.mrf.mxu0 }
 0x24b   : > { %v2409_v55 = vadd.f32 %v2408_v21, %v2320_v62  ;;  %2183 = vmatmul.bf16.gmra.mxu1 %v3258_v43  ;;  %2272 = vmatmul.bf16.gmra.mxu2 %v3262_v38  ;;  %v3299_v21 = vld [vmem:[%s4009_s5 + $0x474] sm:$0xf0] }
 0x24c   : > { %2361 = vmatmul.bf16.gmra.mxu3 %v3266_v49  ;;  %v3302_v27 = vor.u32 %v3735_v34, %v3299_v21 }
 0x24d   : > { %2450 = vmatmul.bf16.gmra.mxu0 %v3270_v37  ;;  %v3841_v60 = vpack.c.bf16 %v2409_v55, %v2407_v58  ;;  %v2536_v10 = vadd.f32 %v2535_v17, %v2409_v55  ;;  %v2575_v63 = vmul.f32 %v2409_v55, %v2409_v55  ;;  %v3305_v58 = vld [vmem:[%s4009_s5 + $0x458] sm:$0xf]  ;;  %v3294_v17 = vor.u32 %v3734_v11, %v3291_v16 }
 0x24e   : > { %v2233_v2 = vpop.f32.mrf.mxu2  ;;  %v3306_v36 = vor.u32 %v3740_v61, %v3305_v58 }
 0x24f   : > { %3897 = vst [vmem:[%s4612_s27 + $0x28] sm:$0xff] %v3841_v60   ;;  %v2606_v22 = vadd.f32 %v2605_v59, %v2575_v63  ;;  %v2234_v44 = vadd.f32 %v2233_v2, %v2145_v33  ;;  %v2322_v3 = vpop.f32.mrf.mxu3 }
 0x250   : > { %v2146_v54 = vpop.f32.mrf.mxu1 }
 0x251   : > { %v2323_v39 = vadd.f32 %v2322_v3, %v2234_v44  ;;  %v2147_v41 = vadd.f32 %v2146_v54, %v4470_v18 }
 0x252   : > { %v2413_v9 = vpop.f32.mrf.mxu0 }
 0x253   : > { %v2412_v29 = vadd.f32 %v2411_v5, %v2323_v39 }
 0x255   : > { %v2537_v45 = vadd.f32 %v2536_v10, %v2412_v29  ;;  %v2576_v20 = vmul.f32 %v2412_v29, %v2412_v29 }
 0x256   : > { %v2235_v24 = vpop.f32.mrf.mxu2 }
 0x257   : > { %v2607_v19 = vadd.f32 %v2606_v22, %v2576_v20  ;;  %v2236_v56 = vadd.f32 %v2235_v24, %v2147_v41  ;;  %v2324_v8 = vpop.f32.mrf.mxu3 }
 0x258   : > { %v2149_v53 = vpop.f32.mrf.mxu1 }
 0x259   : > { %v2325_v28 = vadd.f32 %v2324_v8, %v2236_v56  ;;  %v2150_v43 = vadd.f32 %v2149_v53, %v4475_v25 }
 0x25a   : > { %v2416_v35 = vpop.f32.mrf.mxu0 }
 0x25b   : > { %v2414_v59 = vadd.f32 %v2413_v9, %v2325_v28  ;;  %2188 = vmatmul.bf16.gmra.mxu1 %v3294_v17  ;;  %2277 = vmatmul.bf16.gmra.mxu2 %v3298_v26 }
 0x25c   : > { %2366 = vmatmul.bf16.gmra.mxu3 %v3302_v27 }
 0x25d   : > { %2455 = vmatmul.bf16.gmra.mxu0 %v3306_v36  ;;  %v3846_v18 = vpack.c.bf16 %v2414_v59, %v2412_v29  ;;  %v2538_v42 = vadd.f32 %v2537_v45, %v2414_v59  ;;  %v2577_v40 = vmul.f32 %v2414_v59, %v2414_v59 }
 0x25e   : > { %v2238_v38 = vpop.f32.mrf.mxu2 }
 0x25f   : > { %3898 = vst [vmem:[%s4612_s27 + $0x30] sm:$0xff] %v3846_v18   ;;  %v2608_v52 = vadd.f32 %v2607_v19, %v2577_v40  ;;  %v2239_v49 = vadd.f32 %v2238_v38, %v2150_v43  ;;  %v2327_v37 = vpop.f32.mrf.mxu3 }
 0x260   : > { %v2151_v62 = vpop.f32.mrf.mxu1 }
 0x261   : > { %v2328_v5 = vadd.f32 %v2327_v37, %v2239_v49  ;;  %v2152_v33 = vadd.f32 %v2151_v62, %v4484_v46 }
 0x262   : > { %v2418_v55 = vpop.f32.mrf.mxu0 }
 0x263   : > { %v2417_v60 = vadd.f32 %v2416_v35, %v2328_v5 }
 0x265   : > { %v2539_v10 = vadd.f32 %v2538_v42, %v2417_v60  ;;  %v2578_v63 = vmul.f32 %v2417_v60, %v2417_v60 }
 0x266   : > { %v2240_v2 = vpop.f32.mrf.mxu2 }
 0x267   : > { %v2609_v22 = vadd.f32 %v2608_v52, %v2578_v63  ;;  %v2241_v44 = vadd.f32 %v2240_v2, %v2152_v33  ;;  %v2329_v3 = vpop.f32.mrf.mxu3 }
 0x268   : > { %v2154_v54 = vpop.f32.mrf.mxu1 }
 0x269   : > { %v2330_v25 = vadd.f32 %v2329_v3, %v2241_v44  ;;  %v2155_v14 = vadd.f32 %v2154_v54, %v4489_v57 }
 0x26a   : > { %v2421_v39 = vpop.f32.mrf.mxu0 }
 0x26b   : > { %v2419_v9 = vadd.f32 %v2418_v55, %v2330_v25 }
 0x26d   : > { %v3851_v29 = vpack.c.bf16 %v2419_v9, %v2417_v60  ;;  %v2540_v11 = vadd.f32 %v2539_v10, %v2419_v9  ;;  %v2579_v16 = vmul.f32 %v2419_v9, %v2419_v9 }
 0x26e   : > { %v2243_v15 = vpop.f32.mrf.mxu2 }
 0x26f   : > { %3899 = vst [vmem:[%s4612_s27 + $0x38] sm:$0xff] %v3851_v29   ;;  %v2610_v34 = vadd.f32 %v2609_v22, %v2579_v16  ;;  %v2244_v45 = vadd.f32 %v2243_v15, %v2155_v14  ;;  %v2332_v20 = vpop.f32.mrf.mxu3 }
 0x270   : > { %v2156_v41 = vpop.f32.mrf.mxu1 }
 0x271   : > { %v2333_v46 = vadd.f32 %v2332_v20, %v2244_v45  ;;  %v2157_v19 = vadd.f32 %v2156_v41, %v4498_v50 }
 0x272   : > { %v2423_v21 = vpop.f32.mrf.mxu0 }
 0x273   : > { %v2422_v58 = vadd.f32 %v2421_v39, %v2333_v46 }
 0x275   : > { %v2541_v61 = vadd.f32 %v2540_v11, %v2422_v58  ;;  %v2580_v24 = vmul.f32 %v2422_v58, %v2422_v58 }
 0x276   : > { %v2245_v56 = vpop.f32.mrf.mxu2 }
 0x277   : > { %v2611_v8 = vadd.f32 %v2610_v34, %v2580_v24  ;;  %v2246_v17 = vadd.f32 %v2245_v56, %v2157_v19  ;;  %v2334_v26 = vpop.f32.mrf.mxu3 }
 0x278   : > { %v2159_v53 = vpop.f32.mrf.mxu1 }
 0x279   : > { %v2335_v57 = vadd.f32 %v2334_v26, %v2246_v17  ;;  %v2160_v18 = vadd.f32 %v2159_v53, %v4503_v4 }
 0x27a   : > { %v2426_v27 = vpop.f32.mrf.mxu0 }
 0x27b   : > { %v2424_v36 = vadd.f32 %v2423_v21, %v2335_v57 }
 0x27d   : > { %v3856_v28 = vpack.c.bf16 %v2424_v36, %v2422_v58  ;;  %v2542_v35 = vadd.f32 %v2541_v61, %v2424_v36  ;;  %v2581_v59 = vmul.f32 %v2424_v36, %v2424_v36 }
 0x27e   : > { %v2248_v42 = vpop.f32.mrf.mxu2 }
 0x27f   : > { %3900 = vst [vmem:[%s4612_s27 + $0x40] sm:$0xff] %v3856_v28   ;;  %v2612_v40 = vadd.f32 %v2611_v8, %v2581_v59  ;;  %v2249_v43 = vadd.f32 %v2248_v42, %v2160_v18  ;;  %v2337_v38 = vpop.f32.mrf.mxu3 }
 0x280   : > { %v2161_v52 = vpop.f32.mrf.mxu1 }
 0x281   : > { %v2338_v50 = vadd.f32 %v2337_v38, %v2249_v43  ;;  %v2162_v55 = vadd.f32 %v2161_v52, %v4512_v6 }
 0x282   : > { %v2428_v49 = vpop.f32.mrf.mxu0 }
 0x283   : > { %v2427_v37 = vadd.f32 %v2426_v27, %v2338_v50 }
 0x285   : > { %v2543_v62 = vadd.f32 %v2542_v35, %v2427_v37  ;;  %v2582_v5 = vmul.f32 %v2427_v37, %v2427_v37 }
 0x286   : > { %v2250_v60 = vpop.f32.mrf.mxu2 }
 0x287   : > { %v2613_v10 = vadd.f32 %v2612_v40, %v2582_v5  ;;  %v2251_v63 = vadd.f32 %v2250_v60, %v2162_v55  ;;  %v2339_v33 = vpop.f32.mrf.mxu3 }
 0x288   : > { %v2164_v2 = vpop.f32.mrf.mxu1 }
 0x289   : > { %v2340_v4 = vadd.f32 %v2339_v33, %v2251_v63  ;;  %v2165_v39 = vadd.f32 %v2164_v2, %v4517_v30 }
 0x28a   : > { %v2431_v22 = vpop.f32.mrf.mxu0 }
 0x28b   : > { %v2429_v44 = vadd.f32 %v2428_v49, %v2340_v4 }
 0x28d   : > { %v3861_v3 = vpack.c.bf16 %v2429_v44, %v2427_v37  ;;  %v2544_v54 = vadd.f32 %v2543_v62, %v2429_v44  ;;  %v2583_v25 = vmul.f32 %v2429_v44, %v2429_v44 }
 0x28e   : > { %v2253_v9 = vpop.f32.mrf.mxu2 }
 0x28f   : > { %3901 = vst [vmem:[%s4612_s27 + $0x48] sm:$0xff] %v3861_v3   ;;  %v2614_v29 = vadd.f32 %v2613_v10, %v2583_v25  ;;  %v2254_v11 = vadd.f32 %v2253_v9, %v2165_v39  ;;  %v2342_v16 = vpop.f32.mrf.mxu3 }
 0x290   : > { %v2166_v14 = vpop.f32.mrf.mxu1 }
 0x291   : > { %v2343_v6 = vadd.f32 %v2342_v16, %v2254_v11  ;;  %v2167_v41 = vadd.f32 %v2166_v14, %v4526_v31 }
 0x292   : > { %v2433_v15 = vpop.f32.mrf.mxu0 }
 0x293   : > { %v2432_v34 = vadd.f32 %v2431_v22, %v2343_v6 }
 0x295   : > { %v2545_v45 = vadd.f32 %v2544_v54, %v2432_v34  ;;  %v2584_v20 = vmul.f32 %v2432_v34, %v2432_v34 }
 0x296   : > { %v2255_v46 = vpop.f32.mrf.mxu2 }
 0x297   : > { %v2615_v21 = vadd.f32 %v2614_v29, %v2584_v20  ;;  %v2256_v58 = vadd.f32 %v2255_v46, %v2167_v41  ;;  %v2344_v61 = vpop.f32.mrf.mxu3 }
 0x298   : > { %v2169_v24 = vpop.f32.mrf.mxu1 }
 0x299   : > { %v2345_v30 = vadd.f32 %v2344_v61, %v2256_v58  ;;  %v2170_v53 = vadd.f32 %v2169_v24, %v4531_v48 }
 0x29a   : > { %v2436_v19 = vpop.f32.mrf.mxu0 }
 0x29b   : > { %v2434_v56 = vadd.f32 %v2433_v15, %v2345_v30 }
 0x29d   : > { %v3866_v8 = vpack.c.bf16 %v2434_v56, %v2432_v34  ;;  %v2546_v17 = vadd.f32 %v2545_v45, %v2434_v56  ;;  %v2585_v26 = vmul.f32 %v2434_v56, %v2434_v56 }
 0x29e   : > { %v2258_v57 = vpop.f32.mrf.mxu2 }
 0x29f   : > { %3902 = vst [vmem:[%s4612_s27 + $0x50] sm:$0xff] %v3866_v8   ;;  %v2616_v27 = vadd.f32 %v2615_v21, %v2585_v26  ;;  %v2259_v36 = vadd.f32 %v2258_v57, %v2170_v53  ;;  %v2347_v28 = vpop.f32.mrf.mxu3 }
 0x2a0   : > { %v2171_v35 = vpop.f32.mrf.mxu1 }
 0x2a1   : > { %v2348_v31 = vadd.f32 %v2347_v28, %v2259_v36  ;;  %v2172_v43 = vadd.f32 %v2171_v35, %v4540_v0 }
 0x2a2   : > { %v2438_v59 = vpop.f32.mrf.mxu0 }
 0x2a3   : > { %v2437_v18 = vadd.f32 %v2436_v19, %v2348_v31 }
 0x2a5   : > { %v2547_v42 = vadd.f32 %v2546_v17, %v2437_v18  ;;  %v2586_v40 = vmul.f32 %v2437_v18, %v2437_v18 }
 0x2a6   : > { %v2260_v38 = vpop.f32.mrf.mxu2 }
 0x2a7   : > { %v2617_v52 = vadd.f32 %v2616_v27, %v2586_v40  ;;  %v2261_v50 = vadd.f32 %v2260_v38, %v2172_v43  ;;  %v2349_v49 = vpop.f32.mrf.mxu3 }
 0x2a8   : > { %v2174_v37 = vpop.f32.mrf.mxu1 }
 0x2a9   : > { %v2350_v48 = vadd.f32 %v2349_v49, %v2261_v50  ;;  %v2175_v63 = vadd.f32 %v2174_v37, %v4545_v47  ;;  %v3950_v49 = vmov 0.0  }
 0x2aa   : > { %v2441_v62 = vpop.f32.mrf.mxu0  ;;  %2525 = vst [vmem:[%s4707_s29] sm:$0xff] %v3950_v49 }
 0x2ab   : > { %v2439_v5 = vadd.f32 %v2438_v59, %v2350_v48 }
 0x2ad   : > { %v3871_v55 = vpack.c.bf16 %v2439_v5, %v2437_v18  ;;  %v2548_v60 = vadd.f32 %v2547_v42, %v2439_v5  ;;  %v2587_v10 = vmul.f32 %v2439_v5, %v2439_v5 }
 0x2ae   : > { %v2263_v33 = vpop.f32.mrf.mxu2 }
 0x2af   : > { %3903 = vst [vmem:[%s4612_s27 + $0x58] sm:$0xff] %v3871_v55   ;;  %v2618_v2 = vadd.f32 %v2617_v52, %v2587_v10  ;;  %v2264_v4 = vadd.f32 %v2263_v33, %v2175_v63  ;;  %v2352_v22 = vpop.f32.mrf.mxu3 }
 0x2b0   : > { %v2176_v44 = vpop.f32.mrf.mxu1 }
 0x2b1   : > { %v2353_v0 = vadd.f32 %v2352_v22, %v2264_v4  ;;  %v2177_v9 = vadd.f32 %v2176_v44, %v4554_v51 }
 0x2b2   : > { %v2443_v3 = vpop.f32.mrf.mxu0 }
 0x2b3   : > { %v2442_v54 = vadd.f32 %v2441_v62, %v2353_v0 }
 0x2b5   : > { %v2549_v25 = vadd.f32 %v2548_v60, %v2442_v54  ;;  %v2588_v39 = vmul.f32 %v2442_v54, %v2442_v54 }
 0x2b6   : > { %v2265_v29 = vpop.f32.mrf.mxu2 }
 0x2b7   : > { %v2619_v11 = vadd.f32 %v2618_v2, %v2588_v39  ;;  %v2266_v16 = vadd.f32 %v2265_v29, %v2177_v9  ;;  %v2354_v14 = vpop.f32.mrf.mxu3 }
 0x2b8   : > { %v2179_v6 = vpop.f32.mrf.mxu1 }
 0x2b9   : > { %v2355_v47 = vadd.f32 %v2354_v14, %v2266_v16  ;;  %v2180_v46 = vadd.f32 %v2179_v6, %v4559_v23 }
 0x2ba   : > { %v2446_v15 = vpop.f32.mrf.mxu0 }
 0x2bb   : > { %v2444_v34 = vadd.f32 %v2443_v3, %v2355_v47 }
 0x2bd   : > { %v3876_v45 = vpack.c.bf16 %v2444_v34, %v2442_v54  ;;  %v2550_v20 = vadd.f32 %v2549_v25, %v2444_v34  ;;  %v2589_v41 = vmul.f32 %v2444_v34, %v2444_v34 }
 0x2be   : > { %v2268_v21 = vpop.f32.mrf.mxu2 }
 0x2bf   : > { %3904 = vst [vmem:[%s4612_s27 + $0x60] sm:$0xff] %v3876_v45   ;;  %v2620_v58 = vadd.f32 %v2619_v11, %v2589_v41  ;;  %v2269_v61 = vadd.f32 %v2268_v21, %v2180_v46  ;;  %v2357_v51 = vpop.f32.mrf.mxu3 }
 0x2c0   : > { %v2181_v24 = vpop.f32.mrf.mxu1 }
 0x2c1   : > { %v2358_v30 = vadd.f32 %v2357_v51, %v2269_v61  ;;  %v2182_v26 = vadd.f32 %v2181_v24, %v4568_v7 }
 0x2c2   : > { %v2448_v19 = vpop.f32.mrf.mxu0 }
 0x2c3   : > { %v2447_v56 = vadd.f32 %v2446_v15, %v2358_v30 }
 0x2c5   : > { %v2551_v8 = vadd.f32 %v2550_v20, %v2447_v56  ;;  %v2590_v17 = vmul.f32 %v2447_v56, %v2447_v56 }
 0x2c6   : > { %v2270_v53 = vpop.f32.mrf.mxu2 }
 0x2c7   : > { %v2621_v57 = vadd.f32 %v2620_v58, %v2590_v17  ;;  %v2271_v27 = vadd.f32 %v2270_v53, %v2182_v26  ;;  %v2359_v23 = vpop.f32.mrf.mxu3 }
 0x2c8   : > { %v2184_v36 = vpop.f32.mrf.mxu1 }
 0x2c9   : > { %v2360_v28 = vadd.f32 %v2359_v23, %v2271_v27  ;;  %v2185_v40 = vadd.f32 %v2184_v36, %v4573_v12 }
 0x2ca   : > { %v2451_v31 = vpop.f32.mrf.mxu0 }
 0x2cb   : > { %v2449_v35 = vadd.f32 %v2448_v19, %v2360_v28 }
 0x2cd   : > { %v3881_v59 = vpack.c.bf16 %v2449_v35, %v2447_v56  ;;  %v2552_v18 = vadd.f32 %v2551_v8, %v2449_v35  ;;  %v2591_v42 = vmul.f32 %v2449_v35, %v2449_v35 }
 0x2ce   : > { %v2273_v7 = vpop.f32.mrf.mxu2 }
 0x2cf   : > { %3905 = vst [vmem:[%s4612_s27 + $0x68] sm:$0xff] %v3881_v59   ;;  %v2622_v43 = vadd.f32 %v2621_v57, %v2591_v42  ;;  %v2274_v38 = vadd.f32 %v2273_v7, %v2185_v40  ;;  %v2362_v52 = vpop.f32.mrf.mxu3 }
 0x2d0   : > { %v2186_v50 = vpop.f32.mrf.mxu1 }
 0x2d1   : > { %v2363_v37 = vadd.f32 %v2362_v52, %v2274_v38  ;;  %v2187_v12 = vadd.f32 %v2186_v50, %v4582_v32 }
 0x2d2   : > { %v2453_v55 = vpop.f32.mrf.mxu0 }
 0x2d3   : > { %v2452_v48 = vadd.f32 %v2451_v31, %v2363_v37 }
 0x2d5   : > { %v2553_v62 = vadd.f32 %v2552_v18, %v2452_v48  ;;  %v2592_v5 = vmul.f32 %v2452_v48, %v2452_v48 }
 0x2d6   : > { %v2275_v60 = vpop.f32.mrf.mxu2 }
 0x2d7   : > { %v2623_v10 = vadd.f32 %v2622_v43, %v2592_v5  ;;  %v2276_v63 = vadd.f32 %v2275_v60, %v2187_v12  ;;  %v2364_v33 = vpop.f32.mrf.mxu3 }
 0x2d8   : > { %v2189_v2 = vpop.f32.mrf.mxu1 }
 0x2d9   : > { %v2365_v4 = vadd.f32 %v2364_v33, %v2276_v63  ;;  %v2190_v54 = vadd.f32 %v2189_v2, %v4587_v13 }
 0x2da   : > { %v2456_v11 = vpop.f32.mrf.mxu0 }
 0x2db   : > { %v2454_v22 = vadd.f32 %v2453_v55, %v2365_v4 }
 0x2dd   : > { %v3886_v44 = vpack.c.bf16 %v2454_v22, %v2452_v48  ;;  %v2554_v0 = vadd.f32 %v2553_v62, %v2454_v22  ;;  %v2593_v3 = vmul.f32 %v2454_v22, %v2454_v22 }
 0x2de   : > { %v2278_v25 = vpop.f32.mrf.mxu2 }
 0x2df   : > { %3906 = vst [vmem:[%s4612_s27 + $0x70] sm:$0xff] %v3886_v44   ;;  %v2624_v39 = vadd.f32 %v2623_v10, %v2593_v3  ;;  %v2279_v9 = vadd.f32 %v2278_v25, %v2190_v54  ;;  %v2367_v29 = vpop.f32.mrf.mxu3 }
 0x2e0   : > { %v2191_v16 = vpop.f32.mrf.mxu1 }
 0x2e1   : > { %v2368_v32 = vadd.f32 %v2367_v29, %v2279_v9  ;;  %v2192_v15 = vadd.f32 %v2191_v16, %v4596_v1 }
 0x2e2   : > { %v2458_v13 = vpop.f32.mrf.mxu0 }
 0x2e3   : > { %v2457_v14 = vadd.f32 %v2456_v11, %v2368_v32 }
 0x2e5   : > { %v2555_v6 = vadd.f32 %v2554_v0, %v2457_v14  ;;  %v2594_v47 = vmul.f32 %v2457_v14, %v2457_v14 }
 0x2e6   : > { %v2280_v34 = vpop.f32.mrf.mxu2 }
 0x2e7   : > { %v2625_v45 = vadd.f32 %v2624_v39, %v2594_v47  ;;  %v2281_v20 = vadd.f32 %v2280_v34, %v2192_v15  ;;  %v2369_v41 = vpop.f32.mrf.mxu3 }
 0x2e9   : > { %v2370_v46 = vadd.f32 %v2369_v41, %v2281_v20 }
 0x2eb   : > { %v2459_v21 = vadd.f32 %v2458_v13, %v2370_v46 }
 0x2ed   : > { %v3891_v58 = vpack.c.bf16 %v2459_v21, %v2457_v14  ;;  %v2556_v61 = vadd.f32 %v2555_v6, %v2459_v21  ;;  %v2595_v51 = vmul.f32 %v2459_v21, %v2459_v21 }
 0x2ef   : > { %3907 = vst [vmem:[%s4612_s27 + $0x78] sm:$0xff] %v3891_v58   ;;  %v2557_v24 = vrot.slane %v2556_v61, 4  ;;  %v2626_v30 = vadd.f32 %v2625_v45, %v2595_v51 }
 0x2f1   : > { %v2558_v19 = vadd.f32 %v2557_v24, %v2556_v61  ;;  %v2627_v56 = vrot.slane %v2626_v30, 4 }
 0x2f3   : > { %v2559_v8 = vrot.slane %v2558_v19, 2  ;;  %v2628_v17 = vadd.f32 %v2627_v56, %v2626_v30 }
 0x2f5   : > { %v2560_v1 = vadd.f32 %v2559_v8, %v2558_v19  ;;  %v2629_v26 = vrot.slane %v2628_v17, 2 }
 0x2f7   : > { %v2561_v53 = vrot.slane %v2560_v1, 1  ;;  %v2630_v57 = vadd.f32 %v2629_v26, %v2628_v17 }
 0x2f9   : > { %v2562_v27 = vadd.f32 %v2561_v53, %v2560_v1  ;;  %v2631_v23 = vrot.slane %v2630_v57, 1 }
 0x2fb   : > { %2563 = vst [vmem:[%s4707_s29] sm:$0x1] %v2562_v27  ;;  %v2632_v36 = vadd.f32 %v2631_v23, %v2630_v57 }
 0x2fd   : > { %2633 = vst [vmem:[%s4707_s29 + $0x1] sm:$0x1] %v2632_v36 }
 0x2fe PF: > { %s14_s12 = sadd.s32 1, %s3948_s12  }
 0x2ff   : > { %p11_p5 = scmp.ge.s32.totalorder %s14_s12, 4  }
 0x301   :  { %13 = sbr.rel (!%p11_p5) target bundleno = 1 (0x1), region = 70 }

// kernel: bottleneck_forward.13
= control target key start
LH: loop header
LB: loop body
LE: loop exit
PB: predicated region body
PF: predicated region fallthrough
CT: control target
= control target key end

     0   :  { %s1071_s21 = smov 0   ;;  %s1427_s0 = inlined_call_operand.vmem [shape: bf16[512,128], index: 0, kind: input, shape index: {}]   ;;  %s1428_s1 = inlined_call_operand.vmem [shape: f32[1,128], index: 1, kind: input, shape index: {}]   ;;  %s1429_s2 = inlined_call_operand.vmem [shape: f32[1,128], index: 2, kind: input, shape index: {}]   ;;  %s1430_s3 = inlined_call_operand.vmem [shape: bf16[512,128], index: 3, kind: input, shape index: {}]   ;;  %s1431_s4 = inlined_call_operand.vmem [shape: f32[1,128], index: 4, kind: input, shape index: {}]   ;;  %s1432_s5 = inlined_call_operand.vmem [shape: f32[1,128], index: 5, kind: input, shape index: {}]   ;;  %s1433_s6 = inlined_call_operand.vmem [shape: f32[512,128], index: 6, kind: output, shape index: {}]  }
   0x1 LB: > { %s844_s22 = sadd.s32 4294967295, %s1034_s21   ;;  %p848_p0 = scmp.ge.s32.totalorder %s1034_s21, 1  ;;  %s1034_s21 = sphi %s1071_s21, %s16_s21  }
   0x2   : > { %p224_p1 = scmp.lt.s32.totalorder %s1034_s21, 3 }
   0x4   : > { %p225_p2 = pnand %p848_p0, %p224_p1 }
   0x5   : > { %s849_s23 = sshll.u32 (!%p225_p2), %s844_s22, 5  ;;  %s855_s24 = sshll.u32 (!%p225_p2), %s844_s22, 8 }
   0x6   : > { %228 = sbr.rel (%p225_p2) target bundleno = 117 (0x75), region = 44  ;;  %p260_p3 = scmp.lt.s32.totalorder (!%p225_p2), %s849_s23, 63 }
   0xb   : > { %v614_v0 = vlaneseq  ;;  %v1079_v1 = vstv %s855_s24  ;;  %s1435_s23 = smov (!%p260_p3, %s849_s23), 63  ;;  %v1089_v3 = vld [vmem:[%s1428_s1] ss:$0 sm:$0xff] }
   0xc   : > { %s850_s25 = sshll.u32 %s1435_s23, 2  ;;  %v1111_v8 = vld [vmem:[%s1431_s4] ss:$0 sm:$0xff]  ;;  %s854_s16 = sshll.u32 %s1435_s23, 3 }
   0xd   : > { %v1083_v2 = vshrl.u32 %v614_v0, 7  ;;  %s1101_s30 = scalar_lea.vmem %s1427_s0, %s850_s25  ;;  %s1106_s9 = scalar_lea.vmem %s1430_s3, %s850_s25  ;;  %v1135_v20 = vld [vmem:[%s1429_s2] ss:$0 sm:$0xff] }
   0xe   : > { %v859_v13 = vld [vmem:[%s1101_s30] sm:$0xff]   ;;  %v986_v16 = vld [vmem:[%s1101_s30 + $0x8] sm:$0xff]   ;;  %v987_v36 = vld [vmem:[%s1101_s30 + $0x10] sm:$0xff]   ;;  %s1166_s19 = scalar_lea.vmem %s1433_s6, %s854_s16 }
   0xf   : > { %v1093_v4 = vadd.s32 %v1079_v1, %v1083_v2  ;;  %v616_v5 = vadd.s32 8, %v1083_v2  ;;  %v617_v6 = vadd.s32 16, %v1083_v2  ;;  %v618_v7 = vadd.s32 24, %v1083_v2  ;;  %v923_v14 = vld [vmem:[%s1106_s9] sm:$0xff]   ;;  %v1001_v25 = vld [vmem:[%s1106_s9 + $0x8] sm:$0xff]   ;;  %v1002_v41 = vld [vmem:[%s1106_s9 + $0x10] sm:$0xff]  }
  0x10   : > { %v619_v9 = vadd.s32 32, %v1083_v2  ;;  %v1115_v10 = vadd.s32 40, %v1083_v2  ;;  %v1118_v11 = vadd.s32 48, %v1083_v2  ;;  %v1121_v12 = vadd.s32 56, %v1083_v2  ;;  %v1140_v22 = vld [vmem:[%s1432_s5] ss:$0 sm:$0xff] }
  0x11   : > { %vm680_vm0 = vcmp.lt.s32.totalorder %v1093_v4, 128  ;;  %v649_v15 = vadd.s32 %v1079_v1, %v616_v5  ;;  %v650_v17 = vadd.s32 %v1079_v1, %v617_v6  ;;  %v1130_v18 = vadd.s32 %v1079_v1, %v618_v7  ;;  %v988_v61 = vld [vmem:[%s1101_s30 + $0x18] sm:$0xff]  }
  0x12   : > { %v860_v19 = vunpack.c.l.bf16 %v859_v13  ;;  %v924_v21 = vunpack.c.l.bf16 %v923_v14  ;;  %v861_v23 = vunpack.c.h.bf16 %v859_v13  ;;  %v925_v24 = vunpack.c.h.bf16 %v923_v14  ;;  %v1003_v62 = vld [vmem:[%s1106_s9 + $0x18] sm:$0xff]  }
  0x13   : > { %vm681_vm1 = vcmp.lt.s32.totalorder %v649_v15, 128  ;;  %v864_v26 = vunpack.c.l.bf16 %v986_v16  ;;  %v928_v27 = vunpack.c.l.bf16 %v1001_v25  ;;  %vm682_vm2 = vcmp.lt.s32.totalorder %v650_v17, 128 }
  0x14   : > { %v345_v28 = vmul.f32 %v1089_v3, %v860_v19  ;;  %v481_v29 = vmul.f32 %v1111_v8, %v924_v21  ;;  %v346_v30 = vmul.f32 %v1089_v3, %v861_v23  ;;  %v482_v31 = vmul.f32 %v1111_v8, %v925_v24 }
  0x15   : > { %v347_v32 = vmul.f32 %v1089_v3, %v864_v26  ;;  %v483_v33 = vmul.f32 %v1111_v8, %v928_v27  ;;  %v865_v34 = vunpack.c.h.bf16 %v986_v16  ;;  %v929_v35 = vunpack.c.h.bf16 %v1001_v25  ;;  %v989_v26 = vld [vmem:[%s1101_s30 + $0x20] sm:$0xff]  }
  0x16   : > { %v381_v37 = vadd.f32 %v1135_v20, %v345_v28  ;;  %v517_v38 = vadd.f32 %v1140_v22, %v481_v29  ;;  %v382_v39 = vadd.f32 %v1135_v20, %v346_v30  ;;  %v518_v40 = vadd.f32 %v1140_v22, %v482_v31  ;;  %v1004_v29 = vld [vmem:[%s1106_s9 + $0x20] sm:$0xff]  }
  0x17   : > { %v383_v42 = vadd.f32 %v1135_v20, %v347_v32  ;;  %v519_v43 = vadd.f32 %v1140_v22, %v483_v33  ;;  %v348_v44 = vmul.f32 %v1089_v3, %v865_v34  ;;  %v484_v45 = vmul.f32 %v1111_v8, %v929_v35 }
  0x18   : > { %v549_v46 = vadd.f32 %v517_v38, %v381_v37  ;;  %v550_v47 = vadd.f32 %v518_v40, %v382_v39  ;;  %vm683_vm3 = vcmp.lt.s32.totalorder %v1130_v18, 128  ;;  %v868_v48 = vunpack.c.l.bf16 %v987_v36 }
  0x19   : > { %v551_v49 = vadd.f32 %v519_v43, %v383_v42  ;;  %v384_v50 = vadd.f32 %v1135_v20, %v348_v44  ;;  %v520_v51 = vadd.f32 %v1140_v22, %v484_v45  ;;  %v932_v52 = vunpack.c.l.bf16 %v1002_v41 }
  0x1a   : > { %v581_v53 = vmax.f32 %v549_v46, 0.0  ;;  %v582_v54 = vmax.f32 %v550_v47, 0.0  ;;  %v349_v55 = vmul.f32 %v1089_v3, %v868_v48  ;;  %v652_v56 = vadd.s32 %v1079_v1, %v619_v9 }
  0x1b   : > { %v583_v57 = vmax.f32 %v551_v49, 0.0  ;;  %v552_v58 = vadd.f32 %v520_v51, %v384_v50  ;;  %v485_v59 = vmul.f32 %v1111_v8, %v932_v52  ;;  %v869_v60 = vunpack.c.h.bf16 %v987_v36  ;;  %v990_v51 = vld [vmem:[%s1101_s30 + $0x28] sm:$0xff]  }
  0x1c   : > { %v712_v63 = vsel %vm680_vm0, %v581_v53, 0.0  ;;  %v713_v0 = vsel %vm681_vm1, %v582_v54, 0.0  ;;  %v385_v5 = vadd.f32 %v1135_v20, %v349_v55  ;;  %vm684_vm4 = vcmp.lt.s32.totalorder %v652_v56, 128  ;;  %v1005_v52 = vld [vmem:[%s1106_s9 + $0x28] sm:$0xff]  }
  0x1d   : > { %744 = vst [vmem:[%s1166_s19] sm:$0xff] %v712_v63  ;;  %v714_v6 = vsel %vm682_vm2, %v583_v57, 0.0  ;;  %v584_v7 = vmax.f32 %v552_v58, 0.0  ;;  %v521_v9 = vadd.f32 %v1140_v22, %v485_v59  ;;  %v350_v13 = vmul.f32 %v1089_v3, %v869_v60 }
  0x1e   : > { %745 = vst [vmem:[%s1166_s19 + $0x8] sm:$0xff] %v713_v0  ;;  %v933_v14 = vunpack.c.h.bf16 %v1002_v41  ;;  %v653_v4 = vadd.s32 %v1079_v1, %v1115_v10  ;;  %v872_v15 = vunpack.c.l.bf16 %v988_v61  ;;  %v936_v16 = vunpack.c.l.bf16 %v1003_v62 }
  0x1f   : > { %746 = vst [vmem:[%s1166_s19 + $0x10] sm:$0xff] %v714_v6  ;;  %v715_v19 = vsel %vm683_vm3, %v584_v7, 0.0  ;;  %v553_v17 = vadd.f32 %v521_v9, %v385_v5  ;;  %v386_v21 = vadd.f32 %v1135_v20, %v350_v13  ;;  %v654_v23 = vadd.s32 %v1079_v1, %v1118_v11 }
  0x20   : > { %747 = vst [vmem:[%s1166_s19 + $0x18] sm:$0xff] %v715_v19  ;;  %v486_v24 = vmul.f32 %v1111_v8, %v933_v14  ;;  %vm685_vm5 = vcmp.lt.s32.totalorder %v653_v4, 128  ;;  %v351_v25 = vmul.f32 %v1089_v3, %v872_v15  ;;  %v487_v10 = vmul.f32 %v1111_v8, %v936_v16 }
  0x21   : > { %v585_v27 = vmax.f32 %v553_v17, 0.0  ;;  %vm686_vm6 = vcmp.lt.s32.totalorder %v654_v23, 128  ;;  %v873_v18 = vunpack.c.h.bf16 %v988_v61  ;;  %v937_v28 = vunpack.c.h.bf16 %v1003_v62  ;;  %v991_v17 = vld [vmem:[%s1101_s30 + $0x30] sm:$0xff]  }
  0x22   : > { %v522_v30 = vadd.f32 %v1140_v22, %v486_v24  ;;  %v387_v31 = vadd.f32 %v1135_v20, %v351_v25  ;;  %v523_v11 = vadd.f32 %v1140_v22, %v487_v10  ;;  %v655_v32 = vadd.s32 %v1079_v1, %v1121_v12 }
  0x23   : > { %v716_v33 = vsel %vm684_vm4, %v585_v27, 0.0  ;;  %v352_v34 = vmul.f32 %v1089_v3, %v873_v18  ;;  %v488_v35 = vmul.f32 %v1111_v8, %v937_v28  ;;  %v876_v36 = vunpack.c.l.bf16 %v989_v26 }
  0x24   : > { %748 = vst [vmem:[%s1166_s19 + $0x20] sm:$0xff] %v716_v33  ;;  %v554_v37 = vadd.f32 %v522_v30, %v386_v21  ;;  %v555_v38 = vadd.f32 %v523_v11, %v387_v31  ;;  %vm687_vm7 = vcmp.lt.s32.totalorder %v655_v32, 128  ;;  %v940_v39 = vunpack.c.l.bf16 %v1004_v29  ;;  %v1006_v21 = vld [vmem:[%s1106_s9 + $0x30] sm:$0xff]  }
  0x25   : > { %v388_v40 = vadd.f32 %v1135_v20, %v352_v34  ;;  %v524_v41 = vadd.f32 %v1140_v22, %v488_v35  ;;  %v353_v12 = vmul.f32 %v1089_v3, %v876_v36  ;;  %v623_v42 = vadd.s32 64, %v1083_v2 }
  0x26   : > { %v586_v43 = vmax.f32 %v554_v37, 0.0  ;;  %v587_v44 = vmax.f32 %v555_v38, 0.0  ;;  %v489_v45 = vmul.f32 %v1111_v8, %v940_v39  ;;  %v877_v46 = vunpack.c.h.bf16 %v989_v26 }
  0x27   : > { %v556_v47 = vadd.f32 %v524_v41, %v388_v40  ;;  %v389_v48 = vadd.f32 %v1135_v20, %v353_v12  ;;  %v656_v49 = vadd.s32 %v1079_v1, %v623_v42  ;;  %v941_v50 = vunpack.c.h.bf16 %v1004_v29  ;;  %v992_v12 = vld [vmem:[%s1101_s30 + $0x38] sm:$0xff]  }
  0x28   : > { %v717_v53 = vsel %vm685_vm5, %v586_v43, 0.0  ;;  %v718_v54 = vsel %vm686_vm6, %v587_v44, 0.0  ;;  %v525_v55 = vadd.f32 %v1140_v22, %v489_v45  ;;  %v354_v56 = vmul.f32 %v1089_v3, %v877_v46  ;;  %v1007_v42 = vld [vmem:[%s1106_s9 + $0x38] sm:$0xff]  }
  0x29   : > { %749 = vst [vmem:[%s1166_s19 + $0x28] sm:$0xff] %v717_v53  ;;  %v588_v57 = vmax.f32 %v556_v47, 0.0  ;;  %vm688_vm8 = vcmp.lt.s32.totalorder %v656_v49, 128  ;;  %v490_v58 = vmul.f32 %v1111_v8, %v941_v50  ;;  %v624_v59 = vadd.s32 72, %v1083_v2 }
  0x2a   : > { %750 = vst [vmem:[%s1166_s19 + $0x30] sm:$0xff] %v718_v54  ;;  %v557_v60 = vadd.f32 %v525_v55, %v389_v48  ;;  %v390_v61 = vadd.f32 %v1135_v20, %v354_v56  ;;  %v880_v62 = vunpack.c.l.bf16 %v990_v51  ;;  %v944_v63 = vunpack.c.l.bf16 %v1005_v52 }
  0x2b   : > { %v719_v0 = vsel %vm687_vm7, %v588_v57, 0.0  ;;  %v526_v5 = vadd.f32 %v1140_v22, %v490_v58  ;;  %v657_v6 = vadd.s32 %v1079_v1, %v624_v59  ;;  %v625_v7 = vadd.s32 80, %v1083_v2 }
  0x2c   : > { %751 = vst [vmem:[%s1166_s19 + $0x38] sm:$0xff] %v719_v0  ;;  %v589_v9 = vmax.f32 %v557_v60, 0.0  ;;  %v355_v13 = vmul.f32 %v1089_v3, %v880_v62  ;;  %v491_v14 = vmul.f32 %v1111_v8, %v944_v63  ;;  %v881_v4 = vunpack.c.h.bf16 %v990_v51 }
  0x2d   : > { %v558_v15 = vadd.f32 %v526_v5, %v390_v61  ;;  %vm689_vm9 = vcmp.lt.s32.totalorder %v657_v6, 128  ;;  %v658_v16 = vadd.s32 %v1079_v1, %v625_v7  ;;  %v945_v19 = vunpack.c.h.bf16 %v1005_v52  ;;  %v993_v5 = vld [vmem:[%s1101_s30 + $0x40] sm:$0xff]  }
  0x2e   : > { %v720_v23 = vsel %vm688_vm8, %v589_v9, 0.0  ;;  %v391_v24 = vadd.f32 %v1135_v20, %v355_v13  ;;  %v527_v25 = vadd.f32 %v1140_v22, %v491_v14  ;;  %v356_v10 = vmul.f32 %v1089_v3, %v881_v4  ;;  %v1008_v6 = vld [vmem:[%s1106_s9 + $0x40] sm:$0xff]  }
  0x2f   : > { %752 = vst [vmem:[%s1166_s19 + $0x40] sm:$0xff] %v720_v23  ;;  %v590_v26 = vmax.f32 %v558_v15, 0.0  ;;  %vm690_vm10 = vcmp.lt.s32.totalorder %v658_v16, 128  ;;  %v492_v27 = vmul.f32 %v1111_v8, %v945_v19  ;;  %v626_v18 = vadd.s32 88, %v1083_v2 }
  0x30   : > { %v559_v28 = vadd.f32 %v527_v25, %v391_v24  ;;  %v392_v29 = vadd.f32 %v1135_v20, %v356_v10  ;;  %v884_v30 = vunpack.c.l.bf16 %v991_v17  ;;  %v948_v31 = vunpack.c.l.bf16 %v1006_v21 }
  0x31   : > { %v721_v11 = vsel %vm689_vm9, %v590_v26, 0.0  ;;  %v528_v32 = vadd.f32 %v1140_v22, %v492_v27  ;;  %v659_v33 = vadd.s32 %v1079_v1, %v626_v18  ;;  %v627_v34 = vadd.s32 96, %v1083_v2 }
  0x32   : > { %753 = vst [vmem:[%s1166_s19 + $0x48] sm:$0xff] %v721_v11  ;;  %v591_v35 = vmax.f32 %v559_v28, 0.0  ;;  %v357_v36 = vmul.f32 %v1089_v3, %v884_v30  ;;  %v493_v37 = vmul.f32 %v1111_v8, %v948_v31  ;;  %v885_v38 = vunpack.c.h.bf16 %v991_v17 }
  0x33   : > { %v560_v39 = vadd.f32 %v528_v32, %v392_v29  ;;  %vm691_vm11 = vcmp.lt.s32.totalorder %v659_v33, 128  ;;  %v660_v40 = vadd.s32 %v1079_v1, %v627_v34  ;;  %v949_v41 = vunpack.c.h.bf16 %v1006_v21  ;;  %v994_v32 = vld [vmem:[%s1101_s30 + $0x48] sm:$0xff]  }
  0x34   : > { %v722_v43 = vsel %vm690_vm10, %v591_v35, 0.0  ;;  %v393_v44 = vadd.f32 %v1135_v20, %v357_v36  ;;  %v529_v45 = vadd.f32 %v1140_v22, %v493_v37  ;;  %v358_v46 = vmul.f32 %v1089_v3, %v885_v38  ;;  %v1009_v33 = vld [vmem:[%s1106_s9 + $0x48] sm:$0xff]  }
  0x35   : > { %754 = vst [vmem:[%s1166_s19 + $0x50] sm:$0xff] %v722_v43  ;;  %v592_v47 = vmax.f32 %v560_v39, 0.0  ;;  %vm692_vm12 = vcmp.lt.s32.totalorder %v660_v40, 128  ;;  %v494_v48 = vmul.f32 %v1111_v8, %v949_v41  ;;  %v628_v49 = vadd.s32 104, %v1083_v2 }
  0x36   : > { %v561_v50 = vadd.f32 %v529_v45, %v393_v44  ;;  %v394_v51 = vadd.f32 %v1135_v20, %v358_v46  ;;  %v888_v52 = vunpack.c.l.bf16 %v992_v12  ;;  %v952_v53 = vunpack.c.l.bf16 %v1007_v42 }
  0x37   : > { %v723_v54 = vsel %vm691_vm11, %v592_v47, 0.0  ;;  %v530_v55 = vadd.f32 %v1140_v22, %v494_v48  ;;  %v661_v56 = vadd.s32 %v1079_v1, %v628_v49  ;;  %v629_v57 = vadd.s32 112, %v1083_v2 }
  0x38   : > { %755 = vst [vmem:[%s1166_s19 + $0x58] sm:$0xff] %v723_v54  ;;  %v593_v58 = vmax.f32 %v561_v50, 0.0  ;;  %v359_v59 = vmul.f32 %v1089_v3, %v888_v52  ;;  %v495_v60 = vmul.f32 %v1111_v8, %v952_v53  ;;  %v889_v61 = vunpack.c.h.bf16 %v992_v12 }
  0x39   : > { %v562_v62 = vadd.f32 %v530_v55, %v394_v51  ;;  %vm693_vm13 = vcmp.lt.s32.totalorder %v661_v56, 128  ;;  %v662_v63 = vadd.s32 %v1079_v1, %v629_v57  ;;  %v953_v0 = vunpack.c.h.bf16 %v1007_v42  ;;  %v995_v55 = vld [vmem:[%s1101_s30 + $0x50] sm:$0xff]  }
  0x3a   : > { %v724_v7 = vsel %vm692_vm12, %v593_v58, 0.0  ;;  %v395_v9 = vadd.f32 %v1135_v20, %v359_v59  ;;  %v531_v13 = vadd.f32 %v1140_v22, %v495_v60  ;;  %v360_v14 = vmul.f32 %v1089_v3, %v889_v61  ;;  %v1010_v56 = vld [vmem:[%s1106_s9 + $0x50] sm:$0xff]  }
  0x3b   : > { %756 = vst [vmem:[%s1166_s19 + $0x60] sm:$0xff] %v724_v7  ;;  %v594_v4 = vmax.f32 %v562_v62, 0.0  ;;  %vm694_vm14 = vcmp.lt.s32.totalorder %v662_v63, 128  ;;  %v496_v15 = vmul.f32 %v1111_v8, %v953_v0  ;;  %v630_v16 = vadd.s32 120, %v1083_v2 }
  0x3c   : > { %v563_v19 = vadd.f32 %v531_v13, %v395_v9  ;;  %v396_v17 = vadd.f32 %v1135_v20, %v360_v14  ;;  %v892_v21 = vunpack.c.l.bf16 %v993_v5  ;;  %v956_v23 = vunpack.c.l.bf16 %v1008_v6 }
  0x3d   : > { %v725_v24 = vsel %vm693_vm13, %v594_v4, 0.0  ;;  %v532_v25 = vadd.f32 %v1140_v22, %v496_v15  ;;  %v663_v10 = vadd.s32 %v1079_v1, %v630_v16  ;;  %v631_v26 = vadd.s32 128, %v1083_v2 }
  0x3e   : > { %757 = vst [vmem:[%s1166_s19 + $0x68] sm:$0xff] %v725_v24  ;;  %v595_v27 = vmax.f32 %v563_v19, 0.0  ;;  %v361_v18 = vmul.f32 %v1089_v3, %v892_v21  ;;  %v497_v28 = vmul.f32 %v1111_v8, %v956_v23  ;;  %v893_v29 = vunpack.c.h.bf16 %v993_v5 }
  0x3f   : > { %v564_v30 = vadd.f32 %v532_v25, %v396_v17  ;;  %vm695_vm15 = vcmp.lt.s32.totalorder %v663_v10, 128  ;;  %v664_v31 = vadd.s32 %v1079_v1, %v631_v26  ;;  %v957_v11 = vunpack.c.h.bf16 %v1008_v6  ;;  %v996_v25 = vld [vmem:[%s1101_s30 + $0x58] sm:$0xff]  }
  0x40   : > { %v726_v34 = vsel %vm694_vm14, %v595_v27, 0.0  ;;  %v397_v35 = vadd.f32 %v1135_v20, %v361_v18  ;;  %v533_v36 = vadd.f32 %v1140_v22, %v497_v28  ;;  %v362_v37 = vmul.f32 %v1089_v3, %v893_v29  ;;  %v1011_v10 = vld [vmem:[%s1106_s9 + $0x58] sm:$0xff]  }
  0x41   : > { %758 = vst [vmem:[%s1166_s19 + $0x70] sm:$0xff] %v726_v34  ;;  %v596_v38 = vmax.f32 %v564_v30, 0.0  ;;  %vm696_vm0 = vcmp.lt.s32.totalorder %v664_v31, 128  ;;  %v498_v39 = vmul.f32 %v1111_v8, %v957_v11  ;;  %v632_v40 = vadd.s32 136, %v1083_v2 }
  0x42   : > { %v565_v41 = vadd.f32 %v533_v36, %v397_v35  ;;  %v398_v12 = vadd.f32 %v1135_v20, %v362_v37  ;;  %v896_v42 = vunpack.c.l.bf16 %v994_v32  ;;  %v960_v43 = vunpack.c.l.bf16 %v1009_v33 }
  0x43   : > { %v727_v44 = vsel %vm695_vm15, %v596_v38, 0.0  ;;  %v534_v45 = vadd.f32 %v1140_v22, %v498_v39  ;;  %v665_v46 = vadd.s32 %v1079_v1, %v632_v40  ;;  %v633_v47 = vadd.s32 144, %v1083_v2 }
  0x44   : > { %759 = vst [vmem:[%s1166_s19 + $0x78] sm:$0xff] %v727_v44  ;;  %v597_v48 = vmax.f32 %v565_v41, 0.0  ;;  %v363_v49 = vmul.f32 %v1089_v3, %v896_v42  ;;  %v499_v50 = vmul.f32 %v1111_v8, %v960_v43  ;;  %v897_v51 = vunpack.c.h.bf16 %v994_v32 }
  0x45   : > { %v566_v52 = vadd.f32 %v534_v45, %v398_v12  ;;  %vm697_vm1 = vcmp.lt.s32.totalorder %v665_v46, 128  ;;  %v666_v53 = vadd.s32 %v1079_v1, %v633_v47  ;;  %v961_v54 = vunpack.c.h.bf16 %v1009_v33  ;;  %v997_v45 = vld [vmem:[%s1101_s30 + $0x60] sm:$0xff]  }
  0x46   : > { %v728_v57 = vsel %vm696_vm0, %v597_v48, 0.0  ;;  %v399_v58 = vadd.f32 %v1135_v20, %v363_v49  ;;  %v535_v59 = vadd.f32 %v1140_v22, %v499_v50  ;;  %v364_v60 = vmul.f32 %v1089_v3, %v897_v51  ;;  %v1012_v46 = vld [vmem:[%s1106_s9 + $0x60] sm:$0xff]  }
  0x47   : > { %760 = vst [vmem:[%s1166_s19 + $0x80] sm:$0xff] %v728_v57  ;;  %v598_v61 = vmax.f32 %v566_v52, 0.0  ;;  %vm698_vm2 = vcmp.lt.s32.totalorder %v666_v53, 128  ;;  %v500_v62 = vmul.f32 %v1111_v8, %v961_v54  ;;  %v634_v63 = vadd.s32 152, %v1083_v2 }
  0x48   : > { %v567_v0 = vadd.f32 %v535_v59, %v399_v58  ;;  %v400_v5 = vadd.f32 %v1135_v20, %v364_v60  ;;  %v900_v6 = vunpack.c.l.bf16 %v995_v55  ;;  %v964_v7 = vunpack.c.l.bf16 %v1010_v56 }
  0x49   : > { %v729_v9 = vsel %vm697_vm1, %v598_v61, 0.0  ;;  %v536_v13 = vadd.f32 %v1140_v22, %v500_v62  ;;  %v667_v14 = vadd.s32 %v1079_v1, %v634_v63  ;;  %v635_v4 = vadd.s32 160, %v1083_v2 }
  0x4a   : > { %761 = vst [vmem:[%s1166_s19 + $0x88] sm:$0xff] %v729_v9  ;;  %v599_v15 = vmax.f32 %v567_v0, 0.0  ;;  %v365_v16 = vmul.f32 %v1089_v3, %v900_v6  ;;  %v501_v19 = vmul.f32 %v1111_v8, %v964_v7  ;;  %v901_v17 = vunpack.c.h.bf16 %v995_v55 }
  0x4b   : > { %v568_v21 = vadd.f32 %v536_v13, %v400_v5  ;;  %vm699_vm3 = vcmp.lt.s32.totalorder %v667_v14, 128  ;;  %v668_v23 = vadd.s32 %v1079_v1, %v635_v4  ;;  %v965_v24 = vunpack.c.h.bf16 %v1010_v56  ;;  %v998_v13 = vld [vmem:[%s1101_s30 + $0x68] sm:$0xff]  }
  0x4c   : > { %v730_v26 = vsel %vm698_vm2, %v599_v15, 0.0  ;;  %v401_v27 = vadd.f32 %v1135_v20, %v365_v16  ;;  %v537_v18 = vadd.f32 %v1140_v22, %v501_v19  ;;  %v366_v28 = vmul.f32 %v1089_v3, %v901_v17  ;;  %v1013_v14 = vld [vmem:[%s1106_s9 + $0x68] sm:$0xff]  }
  0x4d   : > { %762 = vst [vmem:[%s1166_s19 + $0x90] sm:$0xff] %v730_v26  ;;  %v600_v29 = vmax.f32 %v568_v21, 0.0  ;;  %vm700_vm4 = vcmp.lt.s32.totalorder %v668_v23, 128  ;;  %v502_v30 = vmul.f32 %v1111_v8, %v965_v24  ;;  %v636_v31 = vadd.s32 168, %v1083_v2 }
  0x4e   : > { %v569_v11 = vadd.f32 %v537_v18, %v401_v27  ;;  %v402_v32 = vadd.f32 %v1135_v20, %v366_v28  ;;  %v904_v33 = vunpack.c.l.bf16 %v996_v25  ;;  %v968_v34 = vunpack.c.l.bf16 %v1011_v10 }
  0x4f   : > { %v731_v35 = vsel %vm699_vm3, %v600_v29, 0.0  ;;  %v538_v36 = vadd.f32 %v1140_v22, %v502_v30  ;;  %v669_v37 = vadd.s32 %v1079_v1, %v636_v31  ;;  %v637_v38 = vadd.s32 176, %v1083_v2 }
  0x50   : > { %763 = vst [vmem:[%s1166_s19 + $0x98] sm:$0xff] %v731_v35  ;;  %v601_v39 = vmax.f32 %v569_v11, 0.0  ;;  %v367_v40 = vmul.f32 %v1089_v3, %v904_v33  ;;  %v503_v41 = vmul.f32 %v1111_v8, %v968_v34  ;;  %v905_v12 = vunpack.c.h.bf16 %v996_v25 }
  0x51   : > { %v570_v42 = vadd.f32 %v538_v36, %v402_v32  ;;  %vm701_vm5 = vcmp.lt.s32.totalorder %v669_v37, 128  ;;  %v670_v43 = vadd.s32 %v1079_v1, %v637_v38  ;;  %v969_v44 = vunpack.c.h.bf16 %v1011_v10  ;;  %v999_v36 = vld [vmem:[%s1101_s30 + $0x70] sm:$0xff]  }
  0x52   : > { %v732_v47 = vsel %vm700_vm4, %v601_v39, 0.0  ;;  %v403_v48 = vadd.f32 %v1135_v20, %v367_v40  ;;  %v539_v49 = vadd.f32 %v1140_v22, %v503_v41  ;;  %v368_v50 = vmul.f32 %v1089_v3, %v905_v12  ;;  %v1014_v37 = vld [vmem:[%s1106_s9 + $0x70] sm:$0xff]  }
  0x53   : > { %764 = vst [vmem:[%s1166_s19 + $0xa0] sm:$0xff] %v732_v47  ;;  %v602_v51 = vmax.f32 %v570_v42, 0.0  ;;  %vm702_vm6 = vcmp.lt.s32.totalorder %v670_v43, 128  ;;  %v504_v52 = vmul.f32 %v1111_v8, %v969_v44  ;;  %v638_v53 = vadd.s32 184, %v1083_v2 }
  0x54   : > { %v571_v54 = vadd.f32 %v539_v49, %v403_v48  ;;  %v404_v55 = vadd.f32 %v1135_v20, %v368_v50  ;;  %v908_v56 = vunpack.c.l.bf16 %v997_v45  ;;  %v972_v57 = vunpack.c.l.bf16 %v1012_v46 }
  0x55   : > { %v733_v58 = vsel %vm701_vm5, %v602_v51, 0.0  ;;  %v540_v59 = vadd.f32 %v1140_v22, %v504_v52  ;;  %v671_v60 = vadd.s32 %v1079_v1, %v638_v53  ;;  %v639_v61 = vadd.s32 192, %v1083_v2 }
  0x56   : > { %765 = vst [vmem:[%s1166_s19 + $0xa8] sm:$0xff] %v733_v58  ;;  %v603_v62 = vmax.f32 %v571_v54, 0.0  ;;  %v369_v63 = vmul.f32 %v1089_v3, %v908_v56  ;;  %v505_v0 = vmul.f32 %v1111_v8, %v972_v57  ;;  %v909_v5 = vunpack.c.h.bf16 %v997_v45 }
  0x57   : > { %v572_v6 = vadd.f32 %v540_v59, %v404_v55  ;;  %vm703_vm7 = vcmp.lt.s32.totalorder %v671_v60, 128  ;;  %v672_v7 = vadd.s32 %v1079_v1, %v639_v61  ;;  %v973_v9 = vunpack.c.h.bf16 %v1012_v46  ;;  %v1000_v59 = vld [vmem:[%s1101_s30 + $0x78] sm:$0xff]  }
  0x58   : > { %v734_v4 = vsel %vm702_vm6, %v603_v62, 0.0  ;;  %v405_v15 = vadd.f32 %v1135_v20, %v369_v63  ;;  %v541_v16 = vadd.f32 %v1140_v22, %v505_v0  ;;  %v370_v19 = vmul.f32 %v1089_v3, %v909_v5  ;;  %v1015_v60 = vld [vmem:[%s1106_s9 + $0x78] sm:$0xff]  }
  0x59   : > { %766 = vst [vmem:[%s1166_s19 + $0xb0] sm:$0xff] %v734_v4  ;;  %v604_v17 = vmax.f32 %v572_v6, 0.0  ;;  %vm704_vm8 = vcmp.lt.s32.totalorder %v672_v7, 128  ;;  %v506_v21 = vmul.f32 %v1111_v8, %v973_v9  ;;  %v640_v23 = vadd.s32 200, %v1083_v2 }
  0x5a   : > { %v573_v24 = vadd.f32 %v541_v16, %v405_v15  ;;  %v406_v25 = vadd.f32 %v1135_v20, %v370_v19  ;;  %v912_v10 = vunpack.c.l.bf16 %v998_v13  ;;  %v976_v26 = vunpack.c.l.bf16 %v1013_v14 }
  0x5b   : > { %v735_v27 = vsel %vm703_vm7, %v604_v17, 0.0  ;;  %v542_v18 = vadd.f32 %v1140_v22, %v506_v21  ;;  %v673_v28 = vadd.s32 %v1079_v1, %v640_v23  ;;  %v641_v29 = vadd.s32 208, %v1083_v2 }
  0x5c   : > { %767 = vst [vmem:[%s1166_s19 + $0xb8] sm:$0xff] %v735_v27  ;;  %v605_v30 = vmax.f32 %v573_v24, 0.0  ;;  %v371_v31 = vmul.f32 %v1089_v3, %v912_v10  ;;  %v507_v11 = vmul.f32 %v1111_v8, %v976_v26  ;;  %v913_v32 = vunpack.c.h.bf16 %v998_v13 }
  0x5d   : > { %v574_v33 = vadd.f32 %v542_v18, %v406_v25  ;;  %vm705_vm9 = vcmp.lt.s32.totalorder %v673_v28, 128  ;;  %v674_v34 = vadd.s32 %v1079_v1, %v641_v29  ;;  %v977_v35 = vunpack.c.h.bf16 %v1013_v14 }
  0x5e   : > { %v736_v38 = vsel %vm704_vm8, %v605_v30, 0.0  ;;  %v407_v39 = vadd.f32 %v1135_v20, %v371_v31  ;;  %v543_v40 = vadd.f32 %v1140_v22, %v507_v11  ;;  %v372_v41 = vmul.f32 %v1089_v3, %v913_v32 }
  0x5f   : > { %768 = vst [vmem:[%s1166_s19 + $0xc0] sm:$0xff] %v736_v38  ;;  %v606_v12 = vmax.f32 %v574_v33, 0.0  ;;  %vm706_vm10 = vcmp.lt.s32.totalorder %v674_v34, 128  ;;  %v508_v42 = vmul.f32 %v1111_v8, %v977_v35  ;;  %v642_v43 = vadd.s32 216, %v1083_v2 }
  0x60   : > { %v575_v44 = vadd.f32 %v543_v40, %v407_v39  ;;  %v408_v45 = vadd.f32 %v1135_v20, %v372_v41  ;;  %v916_v46 = vunpack.c.l.bf16 %v999_v36  ;;  %v980_v47 = vunpack.c.l.bf16 %v1014_v37 }
  0x61   : > { %v737_v48 = vsel %vm705_vm9, %v606_v12, 0.0  ;;  %v544_v49 = vadd.f32 %v1140_v22, %v508_v42  ;;  %v675_v50 = vadd.s32 %v1079_v1, %v642_v43  ;;  %v643_v51 = vadd.s32 224, %v1083_v2 }
  0x62   : > { %769 = vst [vmem:[%s1166_s19 + $0xc8] sm:$0xff] %v737_v48  ;;  %v607_v52 = vmax.f32 %v575_v44, 0.0  ;;  %v373_v53 = vmul.f32 %v1089_v3, %v916_v46  ;;  %v509_v54 = vmul.f32 %v1111_v8, %v980_v47  ;;  %v917_v55 = vunpack.c.h.bf16 %v999_v36 }
  0x63   : > { %v576_v56 = vadd.f32 %v544_v49, %v408_v45  ;;  %vm707_vm11 = vcmp.lt.s32.totalorder %v675_v50, 128  ;;  %v676_v57 = vadd.s32 %v1079_v1, %v643_v51  ;;  %v981_v58 = vunpack.c.h.bf16 %v1014_v37 }
  0x64   : > { %v738_v61 = vsel %vm706_vm10, %v607_v52, 0.0  ;;  %v409_v62 = vadd.f32 %v1135_v20, %v373_v53  ;;  %v545_v63 = vadd.f32 %v1140_v22, %v509_v54  ;;  %v374_v0 = vmul.f32 %v1089_v3, %v917_v55 }
  0x65   : > { %770 = vst [vmem:[%s1166_s19 + $0xd0] sm:$0xff] %v738_v61  ;;  %v608_v5 = vmax.f32 %v576_v56, 0.0  ;;  %vm708_vm12 = vcmp.lt.s32.totalorder %v676_v57, 128  ;;  %v510_v6 = vmul.f32 %v1111_v8, %v981_v58  ;;  %v644_v7 = vadd.s32 232, %v1083_v2 }
  0x66   : > { %v577_v9 = vadd.f32 %v545_v63, %v409_v62  ;;  %v410_v13 = vadd.f32 %v1135_v20, %v374_v0  ;;  %v920_v14 = vunpack.c.l.bf16 %v1000_v59  ;;  %v984_v4 = vunpack.c.l.bf16 %v1015_v60 }
  0x67   : > { %v739_v15 = vsel %vm707_vm11, %v608_v5, 0.0  ;;  %v546_v16 = vadd.f32 %v1140_v22, %v510_v6  ;;  %v677_v19 = vadd.s32 %v1079_v1, %v644_v7  ;;  %v645_v17 = vadd.s32 240, %v1083_v2 }
  0x68   : > { %771 = vst [vmem:[%s1166_s19 + $0xd8] sm:$0xff] %v739_v15  ;;  %v609_v21 = vmax.f32 %v577_v9, 0.0  ;;  %v375_v23 = vmul.f32 %v1089_v3, %v920_v14  ;;  %v511_v24 = vmul.f32 %v1111_v8, %v984_v4  ;;  %v921_v25 = vunpack.c.h.bf16 %v1000_v59 }
  0x69   : > { %v578_v10 = vadd.f32 %v546_v16, %v410_v13  ;;  %vm709_vm13 = vcmp.lt.s32.totalorder %v677_v19, 128  ;;  %v678_v26 = vadd.s32 %v1079_v1, %v645_v17  ;;  %v985_v27 = vunpack.c.h.bf16 %v1015_v60 }
  0x6a   : > { %v740_v18 = vsel %vm708_vm12, %v609_v21, 0.0  ;;  %v411_v28 = vadd.f32 %v1135_v20, %v375_v23  ;;  %v547_v29 = vadd.f32 %v1140_v22, %v511_v24  ;;  %v376_v30 = vmul.f32 %v1089_v3, %v921_v25 }
  0x6b   : > { %772 = vst [vmem:[%s1166_s19 + $0xe0] sm:$0xff] %v740_v18  ;;  %v610_v31 = vmax.f32 %v578_v10, 0.0  ;;  %v512_v11 = vmul.f32 %v1111_v8, %v985_v27  ;;  %v646_v32 = vadd.s32 248, %v1083_v2  ;;  %vm710_vm14 = vcmp.lt.s32.totalorder %v678_v26, 128 }
  0x6c   : > { %v579_v33 = vadd.f32 %v547_v29, %v411_v28  ;;  %v412_v34 = vadd.f32 %v1135_v20, %v376_v30 }
  0x6d   : > { %v741_v35 = vsel %vm709_vm13, %v610_v31, 0.0  ;;  %v548_v36 = vadd.f32 %v1140_v22, %v512_v11  ;;  %v679_v37 = vadd.s32 %v1079_v1, %v646_v32 }
  0x6e   : > { %773 = vst [vmem:[%s1166_s19 + $0xe8] sm:$0xff] %v741_v35  ;;  %v611_v38 = vmax.f32 %v579_v33, 0.0 }
  0x6f   : > { %v580_v3 = vadd.f32 %v548_v36, %v412_v34  ;;  %vm711_vm15 = vcmp.lt.s32.totalorder %v679_v37, 128 }
  0x70   : > { %v742_v39 = vsel %vm710_vm14, %v611_v38, 0.0 }
  0x71   : > { %774 = vst [vmem:[%s1166_s19 + $0xf0] sm:$0xff] %v742_v39  ;;  %v612_v40 = vmax.f32 %v580_v3, 0.0 }
  0x73   : > { %v743_v8 = vsel %vm711_vm15, %v612_v40, 0.0 }
  0x74   : > { %775 = vst [vmem:[%s1166_s19 + $0xf8] sm:$0xff] %v743_v8 }
  0x75 PF: > { %s16_s21 = sadd.s32 1, %s1034_s21  }
  0x76   : > { %p13_p4 = scmp.ge.s32.totalorder %s16_s21, 4  }
  0x78   :  { %15 = sbr.rel (!%p13_p4) target bundleno = 1 (0x1), region = 77 }

</bundles_post_ra>
